<compile_context>
chip_gen: v6e
topology: v6e:2x2x1
jax: 0.10.0
libtpu: 0.0.40
codegen_flags: <defaults>
</compile_context>

<pallas_src>
import functools

import jax
import jax.numpy as jnp
from jax.experimental import pallas as pl
from jax.experimental.pallas import tpu as pltpu


# ----------------------------------------------------------------------------
# Fused forward kernel
# ----------------------------------------------------------------------------
def _make_fused_kernel(T, B, H, n_layers):
    def kernel(*refs):
        it = iter(refs)
        x_ref = next(it)          # (T*B, D_in)  time-major flattened input
        emb_wt_ref = next(it)     # (D_in, E)
        emb_b_ref = next(it)      # (1, E)
        layers = [(next(it), next(it), next(it)) for _ in range(n_layers)]
        w1_t_ref = next(it)       # (H, d_a)
        b1_ref = next(it)         # (1, d_a)
        w2_t_ref = next(it)       # (d_a, r)
        b2_ref = next(it)         # (1, r)
        wc_t_ref = next(it)       # (H, C)  (pre-scaled by 1/r)
        bc_ref = next(it)         # (1, C)
        attn_ref = next(it)       # out: (T, B, r)
        logits_ref = next(it)     # out: (B, C)
        xgi_ref = next(it)        # scratch (T, B, H) per-gate input projections
        xgf_ref = next(it)
        xgg_ref = next(it)
        xgo_ref = next(it)
        seq_ref = next(it)        # scratch (T, B, H) current layer outputs

        f32 = jnp.float32

        # ---- embedding linear (dropout == identity in eval mode) ------------
        inp = jnp.dot(x_ref[...], emb_wt_ref[...],
                      preferred_element_type=f32) + emb_b_ref[...]       # (T*B, E)

        # ---- stacked LSTM (zero initial h/c == init_hidden()) ---------------
        for wih_t_ref, whh_ref, b_ref in layers:
            # Hoisted input projection for all timesteps: one big MXU matmul,
            # bias (b_ih + b_hh) folded in.
            xg = jnp.dot(inp, wih_t_ref[...],
                         preferred_element_type=f32) + b_ref[...]        # (T*B, 4H)
            # Split per gate ONCE, outside the recurrence, so the time loop
            # never does lane-axis slicing.
            xgi_ref[...] = xg[:, 0 * H:1 * H].reshape(T, B, H)
            xgf_ref[...] = xg[:, 1 * H:2 * H].reshape(T, B, H)
            xgg_ref[...] = xg[:, 2 * H:3 * H].reshape(T, B, H)
            xgo_ref[...] = xg[:, 3 * H:4 * H].reshape(T, B, H)

            w_i = whh_ref[0]      # per-gate recurrent weights, pre-transposed (H, H)
            w_f = whh_ref[1]
            w_g = whh_ref[2]
            w_o = whh_ref[3]

            def step(t, carry):
                h, c = carry
                i_g = jax.nn.sigmoid(
                    xgi_ref[t] + jnp.dot(h, w_i, preferred_element_type=f32))
                f_g = jax.nn.sigmoid(
                    xgf_ref[t] + jnp.dot(h, w_f, preferred_element_type=f32))
                g_g = jnp.tanh(
                    xgg_ref[t] + jnp.dot(h, w_g, preferred_element_type=f32))
                o_g = jax.nn.sigmoid(
                    xgo_ref[t] + jnp.dot(h, w_o, preferred_element_type=f32))
                c_new = f_g * c + i_g * g_g
                h_new = o_g * jnp.tanh(c_new)
                seq_ref[t] = h_new
                return (h_new, c_new)

            zeros = jnp.zeros((B, H), f32)
            jax.lax.fori_loop(0, T, step, (zeros, zeros), unroll=True)

            # This layer's outputs feed the next layer's input projection.
            # TODO(synk): inter-layer LSTM dropout == identity (eval mode).
            inp = seq_ref[...].reshape(T * B, H)

        # ---- attention head + classifier -------------------------------------
        seq = seq_ref[...]                                                # (T, B, H)
        x1 = jnp.tanh(jnp.dot(inp, w1_t_ref[...],
                              preferred_element_type=f32) + b1_ref[...])  # (T*B, d_a)
        s = jnp.dot(x1, w2_t_ref[...],
                    preferred_element_type=f32) + b2_ref[...]             # (T*B, r)
        nr = s.shape[-1]
        s = s.reshape(T, B, nr)
        # softmax over the time axis (torch F.softmax(x, dim=1)); divide on EUP.
        s = s - jnp.max(s, axis=0, keepdims=True)
        e = jnp.exp(s)
        p = e * pl.reciprocal(jnp.sum(e, axis=0, keepdims=True), approx=True)

        # avg_embeddings = sum_r(attention @ outputs) / r
        #                = sum_t (sum_r p[t,b,:]) * outputs[t,b,:] / r
        # (1/r is folded into wc in the wrapper, so no (B,r,H) intermediate.)
        q = jnp.sum(p, axis=2, keepdims=True)                             # (T, B, 1)
        avg = jnp.sum(q * seq, axis=0)                                    # (B, H)

        logits_ref[...] = jnp.dot(avg, wc_t_ref[...],
                                  preferred_element_type=f32) + bc_ref[...]
        attn_ref[...] = p                                                 # (T, B, r)

    return kernel


def _full_spec(shape):
    n = len(shape)
    return pl.BlockSpec(shape, lambda i, _n=n: (0,) * _n)


# ----------------------------------------------------------------------------
# Wrapper: weight pre-layout + single pallas_call
# ----------------------------------------------------------------------------
def structured_self_attention_forward(x, params, *, n_layers):
    """Forward pass matching StructuredSelfAttention.forward (eval mode).

    Returns (logits, attention) with shapes (B, num_class) and (B, r, max_len).
    """
    B, T, D_in = x.shape
    E = params["emb_w"].shape[0]
    H = params["w_hh_0"].shape[1]
    d_a = params["w1"].shape[0]
    r = params["w2"].shape[0]
    C = params["wc"].shape[0]

    # One transpose at entry: time-major, flattened input for the fused kernel.
    x_2d = jnp.transpose(x, (1, 0, 2)).reshape(T * B, D_in)

    # Pre-transpose every weight so the kernel never transposes on-chip;
    # recurrent weights split per gate; 1/r folded into the classifier weight.
    args = [x_2d, params["emb_w"].T, params["emb_b"].reshape(1, E)]
    for l in range(n_layers):
        w_ih = params[f"w_ih_{l}"]                               # (4H, in_dim)
        w_hh = params[f"w_hh_{l}"]                               # (4H, H)
        args.append(w_ih.T)                                      # (in_dim, 4H)
        args.append(w_hh.reshape(4, H, H).transpose(0, 2, 1))    # (4, H, H)
        args.append((params[f"b_ih_{l}"] + params[f"b_hh_{l}"]).reshape(1, 4 * H))
    args += [
        params["w1"].T, params["b1"].reshape(1, d_a),
        params["w2"].T, params["b2"].reshape(1, r),
        (params["wc"] / float(r)).T, params["bc"].reshape(1, C),
    ]

    attn_tbr, logits = pl.pallas_call(
        _make_fused_kernel(T, B, H, n_layers),
        out_shape=(
            jax.ShapeDtypeStruct((T, B, r), jnp.float32),
            jax.ShapeDtypeStruct((B, C), jnp.float32),
        ),
        grid=(1,),
        in_specs=[_full_spec(a.shape) for a in args],
        out_specs=(
            pl.BlockSpec((T, B, r), lambda i: (0, 0, 0)),
            pl.BlockSpec((B, C), lambda i: (0, 0)),
        ),
        scratch_shapes=[pltpu.VMEM((T, B, H), jnp.float32) for _ in range(5)],
        compiler_params=pltpu.CompilerParams(
            dimension_semantics=("arbitrary",)),
    )(*args)

    # One transpose at exit: (T, B, r) -> (B, r, T), matching torch layout.
    attn = jnp.transpose(attn_tbr, (1, 2, 0))
    return logits, attn


# ----------------------------------------------------------------------------
# Parameter construction (deterministic, PyTorch-like uniform init).
# ----------------------------------------------------------------------------
def init_params(key, d_in, emb_dim, hid, d_a, r, n_class, n_layers):
    params = {}

    def uni(k, shape, scale):
        return jax.random.uniform(k, shape, jnp.float32, -scale, scale)

    keys = jax.random.split(key, 8 + 4 * n_layers)
    ki = iter(keys)

    s = 1.0 / (d_in ** 0.5)
    params["emb_w"] = uni(next(ki), (emb_dim, d_in), s)
    params["emb_b"] = uni(next(ki), (emb_dim,), s)

    s = 1.0 / (hid ** 0.5)
    for l in range(n_layers):
        in_dim = emb_dim if l == 0 else hid
        params[f"w_ih_{l}"] = uni(next(ki), (4 * hid, in_dim), s)
        params[f"w_hh_{l}"] = uni(next(ki), (4 * hid, hid), s)
        params[f"b_ih_{l}"] = uni(next(ki), (4 * hid,), s)
        params[f"b_hh_{l}"] = uni(next(ki), (4 * hid,), s)

    s = 1.0 / (hid ** 0.5)
    params["w1"] = uni(next(ki), (d_a, hid), s)
    params["b1"] = jnp.zeros((d_a,), jnp.float32)       # bias.data.fill_(0)

    s = 1.0 / (d_a ** 0.5)
    params["w2"] = uni(next(ki), (r, d_a), s)
    params["b2"] = jnp.zeros((r,), jnp.float32)         # bias.data.fill_(0)

    s = 1.0 / (hid ** 0.5)
    params["wc"] = uni(next(ki), (n_class, hid), s)
    params["bc"] = uni(next(ki), (n_class,), s)
    return params


# ----------------------------------------------------------------------------
# Pure-JAX reference (mirrors the PyTorch module) for a sanity check.
# ----------------------------------------------------------------------------
def _reference_forward(x, params, *, n_layers):
    B, T, D_in = x.shape
    H = params["w_hh_0"].shape[1]
    r = params["w2"].shape[0]
    emb = x.reshape(B * T, D_in) @ params["emb_w"].T + params["emb_b"]
    h_seq = emb.reshape(B, T, -1)
    for l in range(n_layers):
        w_ih = params[f"w_ih_{l}"]
        w_hh = params[f"w_hh_{l}"]
        b = params[f"b_ih_{l}"] + params[f"b_hh_{l}"]
        h = jnp.zeros((B, H), jnp.float32)
        c = jnp.zeros((B, H), jnp.float32)
        outs = []
        for t in range(T):
            g = h_seq[:, t, :] @ w_ih.T + h @ w_hh.T + b
            i_g = jax.nn.sigmoid(g[:, 0 * H:1 * H])
            f_g = jax.nn.sigmoid(g[:, 1 * H:2 * H])
            g_g = jnp.tanh(g[:, 2 * H:3 * H])
            o_g = jax.nn.sigmoid(g[:, 3 * H:4 * H])
            c = f_g * c + i_g * g_g
            h = o_g * jnp.tanh(c)
            outs.append(h)
        h_seq = jnp.stack(outs, axis=1)
    x1 = jnp.tanh(h_seq @ params["w1"].T + params["b1"])
    s = x1 @ params["w2"].T + params["b2"]
    p = jax.nn.softmax(s, axis=1)
    attn = jnp.transpose(p, (0, 2, 1))
    sent = attn @ h_seq
    avg = jnp.sum(sent, axis=1) / r
    logits = avg @ params["wc"].T + params["bc"]
    return logits, attn


if __name__ == "__main__":
    # Small, module-consistent shapes.
    B, T, D_IN = 4, 8, 12          # batch, max_len, per-step input dim
    E, H = 32, 32                  # embedding_dim, lstm_hid_dim
    D_A, R, N_CLASS = 16, 4, 5     # d_a, attention hops, num_class
    N_LAYERS = 2

    key = jax.random.PRNGKey(0)
    k_x, k_p = jax.random.split(key)
    x = jax.random.normal(k_x, (B, T, D_IN), jnp.float32)
    params = init_params(k_p, D_IN, E, H, D_A, R, N_CLASS, N_LAYERS)

    fwd = jax.jit(functools.partial(structured_self_attention_forward,
                                    n_layers=N_LAYERS))
    logits, attn = fwd(x, params)
    jax.block_until_ready((logits, attn))

    assert logits.shape == (B, N_CLASS)
    assert attn.shape == (B, R, T)

    # Loose-tolerance sanity check against a plain JAX reference (tolerance
    # absorbs MXU precision + approx-reciprocal softmax differences).
    ref_logits, ref_attn = _reference_forward(x, params, n_layers=N_LAYERS)
    assert jnp.allclose(logits, ref_logits, rtol=2e-2, atol=2e-2)
    assert jnp.allclose(attn, ref_attn, rtol=2e-2, atol=2e-2)

    print("KERNEL_OK")
</pallas_src>

<mosaic_0001>
module attributes {stable_mosaic.version = 11 : i64} {
  func.func @kernel(%arg0: i32, %arg1: memref<32x12xf32, #tpu.memory_space<vmem>>, %arg2: memref<12x32xf32, #tpu.memory_space<vmem>>, %arg3: memref<1x32xf32, #tpu.memory_space<vmem>>, %arg4: memref<32x128xf32, #tpu.memory_space<vmem>>, %arg5: memref<4x32x32xf32, #tpu.memory_space<vmem>>, %arg6: memref<1x128xf32, #tpu.memory_space<vmem>>, %arg7: memref<32x128xf32, #tpu.memory_space<vmem>>, %arg8: memref<4x32x32xf32, #tpu.memory_space<vmem>>, %arg9: memref<1x128xf32, #tpu.memory_space<vmem>>, %arg10: memref<32x16xf32, #tpu.memory_space<vmem>>, %arg11: memref<1x16xf32, #tpu.memory_space<vmem>>, %arg12: memref<16x4xf32, #tpu.memory_space<vmem>>, %arg13: memref<1x4xf32, #tpu.memory_space<vmem>>, %arg14: memref<32x5xf32, #tpu.memory_space<vmem>>, %arg15: memref<1x5xf32, #tpu.memory_space<vmem>>, %arg16: memref<8x4x4xf32, #tpu.memory_space<vmem>>, %arg17: memref<4x5xf32, #tpu.memory_space<vmem>>, %arg18: memref<8x4x32xf32, #tpu.memory_space<vmem>>, %arg19: memref<8x4x32xf32, #tpu.memory_space<vmem>>, %arg20: memref<8x4x32xf32, #tpu.memory_space<vmem>>, %arg21: memref<8x4x32xf32, #tpu.memory_space<vmem>>, %arg22: memref<8x4x32xf32, #tpu.memory_space<vmem>>) attributes {dimension_semantics = [#tpu.dimension_semantics<arbitrary>], iteration_bounds = array<i64: 1>, scalar_prefetch = 0 : i64, scratch_operands = 5 : i64, tpu.core_type = #tpu.core_type<tc>, window_params = [{pipeline_mode = #tpu.pipeline_mode<synchronous>, transform_indices = @transform_0, window_bounds = array<i64: 32, 12>}, {pipeline_mode = #tpu.pipeline_mode<synchronous>, transform_indices = @transform_1, window_bounds = array<i64: 12, 32>}, {pipeline_mode = #tpu.pipeline_mode<synchronous>, transform_indices = @transform_2, window_bounds = array<i64: 1, 32>}, {pipeline_mode = #tpu.pipeline_mode<synchronous>, transform_indices = @transform_3, window_bounds = array<i64: 32, 128>}, {pipeline_mode = #tpu.pipeline_mode<synchronous>, transform_indices = @transform_4, window_bounds = array<i64: 4, 32, 32>}, {pipeline_mode = #tpu.pipeline_mode<synchronous>, transform_indices = @transform_5, window_bounds = array<i64: 1, 128>}, {pipeline_mode = #tpu.pipeline_mode<synchronous>, transform_indices = @transform_6, window_bounds = array<i64: 32, 128>}, {pipeline_mode = #tpu.pipeline_mode<synchronous>, transform_indices = @transform_7, window_bounds = array<i64: 4, 32, 32>}, {pipeline_mode = #tpu.pipeline_mode<synchronous>, transform_indices = @transform_8, window_bounds = array<i64: 1, 128>}, {pipeline_mode = #tpu.pipeline_mode<synchronous>, transform_indices = @transform_9, window_bounds = array<i64: 32, 16>}, {pipeline_mode = #tpu.pipeline_mode<synchronous>, transform_indices = @transform_10, window_bounds = array<i64: 1, 16>}, {pipeline_mode = #tpu.pipeline_mode<synchronous>, transform_indices = @transform_11, window_bounds = array<i64: 16, 4>}, {pipeline_mode = #tpu.pipeline_mode<synchronous>, transform_indices = @transform_12, window_bounds = array<i64: 1, 4>}, {pipeline_mode = #tpu.pipeline_mode<synchronous>, transform_indices = @transform_13, window_bounds = array<i64: 32, 5>}, {pipeline_mode = #tpu.pipeline_mode<synchronous>, transform_indices = @transform_14, window_bounds = array<i64: 1, 5>}, {pipeline_mode = #tpu.pipeline_mode<synchronous>, transform_indices = @transform_15, window_bounds = array<i64: 8, 4, 4>}, {pipeline_mode = #tpu.pipeline_mode<synchronous>, transform_indices = @transform_16, window_bounds = array<i64: 4, 5>}]} {
    %c0 = arith.constant 0 : index
    %c0_0 = arith.constant 0 : index
    %0 = vector.load %arg1[%c0, %c0_0] : memref<32x12xf32, #tpu.memory_space<vmem>>, vector<32x12xf32>
    %c0_1 = arith.constant 0 : index
    %c0_2 = arith.constant 0 : index
    %1 = vector.load %arg2[%c0_1, %c0_2] : memref<12x32xf32, #tpu.memory_space<vmem>>, vector<12x32xf32>
    %cst = arith.constant dense<0.000000e+00> : vector<32x32xf32>
    %2 = tpu.matmul %0, %1, %cst {dimension_numbers = #tpu.dot_dimension_numbers<[1], [0], [0], [1], [0, 0, 1, 1], [], []>} : vector<32x12xf32>, vector<12x32xf32>, vector<32x32xf32> -> vector<32x32xf32>
    %c0_3 = arith.constant 0 : index
    %c0_4 = arith.constant 0 : index
    %3 = vector.load %arg3[%c0_3, %c0_4] : memref<1x32xf32, #tpu.memory_space<vmem>>, vector<1x32xf32>
    %4 = vector.broadcast %3 : vector<1x32xf32> to vector<32x32xf32>
    %5 = arith.addf %2, %4 : vector<32x32xf32>
    %c0_5 = arith.constant 0 : index
    %c0_6 = arith.constant 0 : index
    %6 = vector.load %arg4[%c0_5, %c0_6] : memref<32x128xf32, #tpu.memory_space<vmem>>, vector<32x128xf32>
    %cst_7 = arith.constant dense<0.000000e+00> : vector<32x128xf32>
    %7 = tpu.matmul %5, %6, %cst_7 {dimension_numbers = #tpu.dot_dimension_numbers<[1], [0], [0], [1], [0, 0, 1, 1], [], []>} : vector<32x32xf32>, vector<32x128xf32>, vector<32x128xf32> -> vector<32x128xf32>
    %c0_8 = arith.constant 0 : index
    %c0_9 = arith.constant 0 : index
    %8 = vector.load %arg6[%c0_8, %c0_9] : memref<1x128xf32, #tpu.memory_space<vmem>>, vector<1x128xf32>
    %9 = vector.broadcast %8 : vector<1x128xf32> to vector<32x128xf32>
    %10 = arith.addf %7, %9 : vector<32x128xf32>
    %11 = vector.extract_strided_slice %10 {offsets = [0, 0], sizes = [32, 32], strides = [1, 1]} : vector<32x128xf32> to vector<32x32xf32>
    %12 = vector.shape_cast %11 : vector<32x32xf32> to vector<8x4x32xf32>
    %c0_10 = arith.constant 0 : index
    %c0_11 = arith.constant 0 : index
    %c0_12 = arith.constant 0 : index
    %13 = vector.load %arg18[%c0_10, %c0_11, %c0_12] : memref<8x4x32xf32, #tpu.memory_space<vmem>>, vector<8x4x32xf32>
    tpu.vector_store %arg18[%c0_10, %c0_11, %c0_12], %12 {strides = array<i32>} : memref<8x4x32xf32, #tpu.memory_space<vmem>>, vector<8x4x32xf32>,
    %14 = vector.extract_strided_slice %10 {offsets = [0, 32], sizes = [32, 32], strides = [1, 1]} : vector<32x128xf32> to vector<32x32xf32>
    %15 = vector.shape_cast %14 : vector<32x32xf32> to vector<8x4x32xf32>
    %c0_13 = arith.constant 0 : index
    %c0_14 = arith.constant 0 : index
    %c0_15 = arith.constant 0 : index
    %16 = vector.load %arg19[%c0_13, %c0_14, %c0_15] : memref<8x4x32xf32, #tpu.memory_space<vmem>>, vector<8x4x32xf32>
    tpu.vector_store %arg19[%c0_13, %c0_14, %c0_15], %15 {strides = array<i32>} : memref<8x4x32xf32, #tpu.memory_space<vmem>>, vector<8x4x32xf32>,
    %17 = vector.extract_strided_slice %10 {offsets = [0, 64], sizes = [32, 32], strides = [1, 1]} : vector<32x128xf32> to vector<32x32xf32>
    %18 = vector.shape_cast %17 : vector<32x32xf32> to vector<8x4x32xf32>
    %c0_16 = arith.constant 0 : index
    %c0_17 = arith.constant 0 : index
    %c0_18 = arith.constant 0 : index
    %19 = vector.load %arg20[%c0_16, %c0_17, %c0_18] : memref<8x4x32xf32, #tpu.memory_space<vmem>>, vector<8x4x32xf32>
    tpu.vector_store %arg20[%c0_16, %c0_17, %c0_18], %18 {strides = array<i32>} : memref<8x4x32xf32, #tpu.memory_space<vmem>>, vector<8x4x32xf32>,
    %20 = vector.extract_strided_slice %10 {offsets = [0, 96], sizes = [32, 32], strides = [1, 1]} : vector<32x128xf32> to vector<32x32xf32>
    %21 = vector.shape_cast %20 : vector<32x32xf32> to vector<8x4x32xf32>
    %c0_19 = arith.constant 0 : index
    %c0_20 = arith.constant 0 : index
    %c0_21 = arith.constant 0 : index
    %22 = vector.load %arg21[%c0_19, %c0_20, %c0_21] : memref<8x4x32xf32, #tpu.memory_space<vmem>>, vector<8x4x32xf32>
    tpu.vector_store %arg21[%c0_19, %c0_20, %c0_21], %21 {strides = array<i32>} : memref<8x4x32xf32, #tpu.memory_space<vmem>>, vector<8x4x32xf32>,
    %c0_22 = arith.constant 0 : index
    %c0_23 = arith.constant 0 : index
    %c0_24 = arith.constant 0 : index
    %23 = vector.load %arg5[%c0_22, %c0_23, %c0_24] : memref<4x32x32xf32, #tpu.memory_space<vmem>>, vector<1x32x32xf32>
    %24 = vector.shape_cast %23 : vector<1x32x32xf32> to vector<32x32xf32>
    %c1 = arith.constant 1 : index
    %c0_25 = arith.constant 0 : index
    %c0_26 = arith.constant 0 : index
    %25 = vector.load %arg5[%c1, %c0_25, %c0_26] : memref<4x32x32xf32, #tpu.memory_space<vmem>>, vector<1x32x32xf32>
    %26 = vector.shape_cast %25 : vector<1x32x32xf32> to vector<32x32xf32>
    %c2 = arith.constant 2 : index
    %c0_27 = arith.constant 0 : index
    %c0_28 = arith.constant 0 : index
    %27 = vector.load %arg5[%c2, %c0_27, %c0_28] : memref<4x32x32xf32, #tpu.memory_space<vmem>>, vector<1x32x32xf32>
    %28 = vector.shape_cast %27 : vector<1x32x32xf32> to vector<32x32xf32>
    %c3 = arith.constant 3 : index
    %c0_29 = arith.constant 0 : index
    %c0_30 = arith.constant 0 : index
    %29 = vector.load %arg5[%c3, %c0_29, %c0_30] : memref<4x32x32xf32, #tpu.memory_space<vmem>>, vector<1x32x32xf32>
    %30 = vector.shape_cast %29 : vector<1x32x32xf32> to vector<32x32xf32>
    %cst_31 = arith.constant 0.000000e+00 : f32
    %31 = vector.broadcast %cst_31 : f32 to vector<4x32xf32>
    %c0_i32 = arith.constant 0 : i32
    %32 = arith.index_cast %c0_i32 : i32 to index
    %c0_32 = arith.constant 0 : index
    %c0_33 = arith.constant 0 : index
    %33 = vector.load %arg18[%32, %c0_32, %c0_33] : memref<8x4x32xf32, #tpu.memory_space<vmem>>, vector<1x4x32xf32>
    %34 = vector.shape_cast %33 : vector<1x4x32xf32> to vector<4x32xf32>
    %cst_34 = arith.constant dense<0.000000e+00> : vector<4x32xf32>
    %35 = tpu.matmul %31, %24, %cst_34 {dimension_numbers = #tpu.dot_dimension_numbers<[1], [0], [0], [1], [0, 0, 1, 1], [], []>} : vector<4x32xf32>, vector<32x32xf32>, vector<4x32xf32> -> vector<4x32xf32>
    %36 = arith.addf %34, %35 : vector<4x32xf32>
    %37 = arith.negf %36 : vector<4x32xf32>
    %38 = math.exp %37 : vector<4x32xf32>
    %cst_35 = arith.constant 1.000000e+00 : f32
    %39 = vector.broadcast %cst_35 : f32 to vector<4x32xf32>
    %40 = arith.addf %39, %38 : vector<4x32xf32>
    %41 = arith.divf %39, %40 : vector<4x32xf32>
    %42 = arith.index_cast %c0_i32 : i32 to index
    %c0_36 = arith.constant 0 : index
    %c0_37 = arith.constant 0 : index
    %43 = vector.load %arg19[%42, %c0_36, %c0_37] : memref<8x4x32xf32, #tpu.memory_space<vmem>>, vector<1x4x32xf32>
    %44 = vector.shape_cast %43 : vector<1x4x32xf32> to vector<4x32xf32>
    %cst_38 = arith.constant dense<0.000000e+00> : vector<4x32xf32>
    %45 = tpu.matmul %31, %26, %cst_38 {dimension_numbers = #tpu.dot_dimension_numbers<[1], [0], [0], [1], [0, 0, 1, 1], [], []>} : vector<4x32xf32>, vector<32x32xf32>, vector<4x32xf32> -> vector<4x32xf32>
    %46 = arith.addf %44, %45 : vector<4x32xf32>
    %47 = arith.negf %46 : vector<4x32xf32>
    %48 = math.exp %47 : vector<4x32xf32>
    %cst_39 = arith.constant 1.000000e+00 : f32
    %49 = vector.broadcast %cst_39 : f32 to vector<4x32xf32>
    %50 = arith.addf %49, %48 : vector<4x32xf32>
    %51 = arith.divf %49, %50 : vector<4x32xf32>
    %52 = arith.index_cast %c0_i32 : i32 to index
    %c0_40 = arith.constant 0 : index
    %c0_41 = arith.constant 0 : index
    %53 = vector.load %arg20[%52, %c0_40, %c0_41] : memref<8x4x32xf32, #tpu.memory_space<vmem>>, vector<1x4x32xf32>
    %54 = vector.shape_cast %53 : vector<1x4x32xf32> to vector<4x32xf32>
    %cst_42 = arith.constant dense<0.000000e+00> : vector<4x32xf32>
    %55 = tpu.matmul %31, %28, %cst_42 {dimension_numbers = #tpu.dot_dimension_numbers<[1], [0], [0], [1], [0, 0, 1, 1], [], []>} : vector<4x32xf32>, vector<32x32xf32>, vector<4x32xf32> -> vector<4x32xf32>
    %56 = arith.addf %54, %55 : vector<4x32xf32>
    %57 = math.tanh %56 : vector<4x32xf32>
    %58 = arith.index_cast %c0_i32 : i32 to index
    %c0_43 = arith.constant 0 : index
    %c0_44 = arith.constant 0 : index
    %59 = vector.load %arg21[%58, %c0_43, %c0_44] : memref<8x4x32xf32, #tpu.memory_space<vmem>>, vector<1x4x32xf32>
    %60 = vector.shape_cast %59 : vector<1x4x32xf32> to vector<4x32xf32>
    %cst_45 = arith.constant dense<0.000000e+00> : vector<4x32xf32>
    %61 = tpu.matmul %31, %30, %cst_45 {dimension_numbers = #tpu.dot_dimension_numbers<[1], [0], [0], [1], [0, 0, 1, 1], [], []>} : vector<4x32xf32>, vector<32x32xf32>, vector<4x32xf32> -> vector<4x32xf32>
    %62 = arith.addf %60, %61 : vector<4x32xf32>
    %63 = arith.negf %62 : vector<4x32xf32>
    %64 = math.exp %63 : vector<4x32xf32>
    %cst_46 = arith.constant 1.000000e+00 : f32
    %65 = vector.broadcast %cst_46 : f32 to vector<4x32xf32>
    %66 = arith.addf %65, %64 : vector<4x32xf32>
    %67 = arith.divf %65, %66 : vector<4x32xf32>
    %68 = arith.mulf %51, %31 : vector<4x32xf32>
    %69 = arith.mulf %41, %57 : vector<4x32xf32>
    %70 = arith.addf %68, %69 : vector<4x32xf32>
    %71 = math.tanh %70 : vector<4x32xf32>
    %72 = arith.mulf %67, %71 : vector<4x32xf32>
    %73 = arith.index_cast %c0_i32 : i32 to index
    %c0_47 = arith.constant 0 : index
    %c0_48 = arith.constant 0 : index
    %74 = vector.load %arg22[%73, %c0_47, %c0_48] : memref<8x4x32xf32, #tpu.memory_space<vmem>>, vector<1x4x32xf32>
    %75 = vector.shape_cast %74 : vector<1x4x32xf32> to vector<4x32xf32>
    %76 = vector.shape_cast %72 : vector<4x32xf32> to vector<1x4x32xf32>
    tpu.vector_store %arg22[%73, %c0_47, %c0_48], %76 {strides = array<i32>} : memref<8x4x32xf32, #tpu.memory_space<vmem>>, vector<1x4x32xf32>,
    %c1_i32 = arith.constant 1 : i32
    %77 = arith.index_cast %c1_i32 : i32 to index
    %c0_49 = arith.constant 0 : index
    %c0_50 = arith.constant 0 : index
    %78 = vector.load %arg18[%77, %c0_49, %c0_50] : memref<8x4x32xf32, #tpu.memory_space<vmem>>, vector<1x4x32xf32>
    %79 = vector.shape_cast %78 : vector<1x4x32xf32> to vector<4x32xf32>
    %cst_51 = arith.constant dense<0.000000e+00> : vector<4x32xf32>
    %80 = tpu.matmul %72, %24, %cst_51 {dimension_numbers = #tpu.dot_dimension_numbers<[1], [0], [0], [1], [0, 0, 1, 1], [], []>} : vector<4x32xf32>, vector<32x32xf32>, vector<4x32xf32> -> vector<4x32xf32>
    %81 = arith.addf %79, %80 : vector<4x32xf32>
    %82 = arith.negf %81 : vector<4x32xf32>
    %83 = math.exp %82 : vector<4x32xf32>
    %cst_52 = arith.constant 1.000000e+00 : f32
    %84 = vector.broadcast %cst_52 : f32 to vector<4x32xf32>
    %85 = arith.addf %84, %83 : vector<4x32xf32>
    %86 = arith.divf %84, %85 : vector<4x32xf32>
    %87 = arith.index_cast %c1_i32 : i32 to index
    %c0_53 = arith.constant 0 : index
    %c0_54 = arith.constant 0 : index
    %88 = vector.load %arg19[%87, %c0_53, %c0_54] : memref<8x4x32xf32, #tpu.memory_space<vmem>>, vector<1x4x32xf32>
    %89 = vector.shape_cast %88 : vector<1x4x32xf32> to vector<4x32xf32>
    %cst_55 = arith.constant dense<0.000000e+00> : vector<4x32xf32>
    %90 = tpu.matmul %72, %26, %cst_55 {dimension_numbers = #tpu.dot_dimension_numbers<[1], [0], [0], [1], [0, 0, 1, 1], [], []>} : vector<4x32xf32>, vector<32x32xf32>, vector<4x32xf32> -> vector<4x32xf32>
    %91 = arith.addf %89, %90 : vector<4x32xf32>
    %92 = arith.negf %91 : vector<4x32xf32>
    %93 = math.exp %92 : vector<4x32xf32>
    %cst_56 = arith.constant 1.000000e+00 : f32
    %94 = vector.broadcast %cst_56 : f32 to vector<4x32xf32>
    %95 = arith.addf %94, %93 : vector<4x32xf32>
    %96 = arith.divf %94, %95 : vector<4x32xf32>
    %97 = arith.index_cast %c1_i32 : i32 to index
    %c0_57 = arith.constant 0 : index
    %c0_58 = arith.constant 0 : index
    %98 = vector.load %arg20[%97, %c0_57, %c0_58] : memref<8x4x32xf32, #tpu.memory_space<vmem>>, vector<1x4x32xf32>
    %99 = vector.shape_cast %98 : vector<1x4x32xf32> to vector<4x32xf32>
    %cst_59 = arith.constant dense<0.000000e+00> : vector<4x32xf32>
    %100 = tpu.matmul %72, %28, %cst_59 {dimension_numbers = #tpu.dot_dimension_numbers<[1], [0], [0], [1], [0, 0, 1, 1], [], []>} : vector<4x32xf32>, vector<32x32xf32>, vector<4x32xf32> -> vector<4x32xf32>
    %101 = arith.addf %99, %100 : vector<4x32xf32>
    %102 = math.tanh %101 : vector<4x32xf32>
    %103 = arith.index_cast %c1_i32 : i32 to index
    %c0_60 = arith.constant 0 : index
    %c0_61 = arith.constant 0 : index
    %104 = vector.load %arg21[%103, %c0_60, %c0_61] : memref<8x4x32xf32, #tpu.memory_space<vmem>>, vector<1x4x32xf32>
    %105 = vector.shape_cast %104 : vector<1x4x32xf32> to vector<4x32xf32>
    %cst_62 = arith.constant dense<0.000000e+00> : vector<4x32xf32>
    %106 = tpu.matmul %72, %30, %cst_62 {dimension_numbers = #tpu.dot_dimension_numbers<[1], [0], [0], [1], [0, 0, 1, 1], [], []>} : vector<4x32xf32>, vector<32x32xf32>, vector<4x32xf32> -> vector<4x32xf32>
    %107 = arith.addf %105, %106 : vector<4x32xf32>
    %108 = arith.negf %107 : vector<4x32xf32>
    %109 = math.exp %108 : vector<4x32xf32>
    %cst_63 = arith.constant 1.000000e+00 : f32
    %110 = vector.broadcast %cst_63 : f32 to vector<4x32xf32>
    %111 = arith.addf %110, %109 : vector<4x32xf32>
    %112 = arith.divf %110, %111 : vector<4x32xf32>
    %113 = arith.mulf %96, %70 : vector<4x32xf32>
    %114 = arith.mulf %86, %102 : vector<4x32xf32>
    %115 = arith.addf %113, %114 : vector<4x32xf32>
    %116 = math.tanh %115 : vector<4x32xf32>
    %117 = arith.mulf %112, %116 : vector<4x32xf32>
    %118 = arith.index_cast %c1_i32 : i32 to index
    %c0_64 = arith.constant 0 : index
    %c0_65 = arith.constant 0 : index
    %119 = vector.load %arg22[%118, %c0_64, %c0_65] : memref<8x4x32xf32, #tpu.memory_space<vmem>>, vector<1x4x32xf32>
    %120 = vector.shape_cast %119 : vector<1x4x32xf32> to vector<4x32xf32>
    %121 = vector.shape_cast %117 : vector<4x32xf32> to vector<1x4x32xf32>
    tpu.vector_store %arg22[%118, %c0_64, %c0_65], %121 {strides = array<i32>} : memref<8x4x32xf32, #tpu.memory_space<vmem>>, vector<1x4x32xf32>,
    %c2_i32 = arith.constant 2 : i32
    %122 = arith.index_cast %c2_i32 : i32 to index
    %c0_66 = arith.constant 0 : index
    %c0_67 = arith.constant 0 : index
    %123 = vector.load %arg18[%122, %c0_66, %c0_67] : memref<8x4x32xf32, #tpu.memory_space<vmem>>, vector<1x4x32xf32>
    %124 = vector.shape_cast %123 : vector<1x4x32xf32> to vector<4x32xf32>
    %cst_68 = arith.constant dense<0.000000e+00> : vector<4x32xf32>
    %125 = tpu.matmul %117, %24, %cst_68 {dimension_numbers = #tpu.dot_dimension_numbers<[1], [0], [0], [1], [0, 0, 1, 1], [], []>} : vector<4x32xf32>, vector<32x32xf32>, vector<4x32xf32> -> vector<4x32xf32>
    %126 = arith.addf %124, %125 : vector<4x32xf32>
    %127 = arith.negf %126 : vector<4x32xf32>
    %128 = math.exp %127 : vector<4x32xf32>
    %cst_69 = arith.constant 1.000000e+00 : f32
    %129 = vector.broadcast %cst_69 : f32 to vector<4x32xf32>
    %130 = arith.addf %129, %128 : vector<4x32xf32>
    %131 = arith.divf %129, %130 : vector<4x32xf32>
    %132 = arith.index_cast %c2_i32 : i32 to index
    %c0_70 = arith.constant 0 : index
    %c0_71 = arith.constant 0 : index
    %133 = vector.load %arg19[%132, %c0_70, %c0_71] : memref<8x4x32xf32, #tpu.memory_space<vmem>>, vector<1x4x32xf32>
    %134 = vector.shape_cast %133 : vector<1x4x32xf32> to vector<4x32xf32>
    %cst_72 = arith.constant dense<0.000000e+00> : vector<4x32xf32>
    %135 = tpu.matmul %117, %26, %cst_72 {dimension_numbers = #tpu.dot_dimension_numbers<[1], [0], [0], [1], [0, 0, 1, 1], [], []>} : vector<4x32xf32>, vector<32x32xf32>, vector<4x32xf32> -> vector<4x32xf32>
    %136 = arith.addf %134, %135 : vector<4x32xf32>
    %137 = arith.negf %136 : vector<4x32xf32>
    %138 = math.exp %137 : vector<4x32xf32>
    %cst_73 = arith.constant 1.000000e+00 : f32
    %139 = vector.broadcast %cst_73 : f32 to vector<4x32xf32>
    %140 = arith.addf %139, %138 : vector<4x32xf32>
    %141 = arith.divf %139, %140 : vector<4x32xf32>
    %142 = arith.index_cast %c2_i32 : i32 to index
    %c0_74 = arith.constant 0 : index
    %c0_75 = arith.constant 0 : index
    %143 = vector.load %arg20[%142, %c0_74, %c0_75] : memref<8x4x32xf32, #tpu.memory_space<vmem>>, vector<1x4x32xf32>
    %144 = vector.shape_cast %143 : vector<1x4x32xf32> to vector<4x32xf32>
    %cst_76 = arith.constant dense<0.000000e+00> : vector<4x32xf32>
    %145 = tpu.matmul %117, %28, %cst_76 {dimension_numbers = #tpu.dot_dimension_numbers<[1], [0], [0], [1], [0, 0, 1, 1], [], []>} : vector<4x32xf32>, vector<32x32xf32>, vector<4x32xf32> -> vector<4x32xf32>
    %146 = arith.addf %144, %145 : vector<4x32xf32>
    %147 = math.tanh %146 : vector<4x32xf32>
    %148 = arith.index_cast %c2_i32 : i32 to index
    %c0_77 = arith.constant 0 : index
    %c0_78 = arith.constant 0 : index
    %149 = vector.load %arg21[%148, %c0_77, %c0_78] : memref<8x4x32xf32, #tpu.memory_space<vmem>>, vector<1x4x32xf32>
    %150 = vector.shape_cast %149 : vector<1x4x32xf32> to vector<4x32xf32>
    %cst_79 = arith.constant dense<0.000000e+00> : vector<4x32xf32>
    %151 = tpu.matmul %117, %30, %cst_79 {dimension_numbers = #tpu.dot_dimension_numbers<[1], [0], [0], [1], [0, 0, 1, 1], [], []>} : vector<4x32xf32>, vector<32x32xf32>, vector<4x32xf32> -> vector<4x32xf32>
    %152 = arith.addf %150, %151 : vector<4x32xf32>
    %153 = arith.negf %152 : vector<4x32xf32>
    %154 = math.exp %153 : vector<4x32xf32>
    %cst_80 = arith.constant 1.000000e+00 : f32
    %155 = vector.broadcast %cst_80 : f32 to vector<4x32xf32>
    %156 = arith.addf %155, %154 : vector<4x32xf32>
    %157 = arith.divf %155, %156 : vector<4x32xf32>
    %158 = arith.mulf %141, %115 : vector<4x32xf32>
    %159 = arith.mulf %131, %147 : vector<4x32xf32>
    %160 = arith.addf %158, %159 : vector<4x32xf32>
    %161 = math.tanh %160 : vector<4x32xf32>
    %162 = arith.mulf %157, %161 : vector<4x32xf32>
    %163 = arith.index_cast %c2_i32 : i32 to index
    %c0_81 = arith.constant 0 : index
    %c0_82 = arith.constant 0 : index
    %164 = vector.load %arg22[%163, %c0_81, %c0_82] : memref<8x4x32xf32, #tpu.memory_space<vmem>>, vector<1x4x32xf32>
    %165 = vector.shape_cast %164 : vector<1x4x32xf32> to vector<4x32xf32>
    %166 = vector.shape_cast %162 : vector<4x32xf32> to vector<1x4x32xf32>
    tpu.vector_store %arg22[%163, %c0_81, %c0_82], %166 {strides = array<i32>} : memref<8x4x32xf32, #tpu.memory_space<vmem>>, vector<1x4x32xf32>,
    %c3_i32 = arith.constant 3 : i32
    %167 = arith.index_cast %c3_i32 : i32 to index
    %c0_83 = arith.constant 0 : index
    %c0_84 = arith.constant 0 : index
    %168 = vector.load %arg18[%167, %c0_83, %c0_84] : memref<8x4x32xf32, #tpu.memory_space<vmem>>, vector<1x4x32xf32>
    %169 = vector.shape_cast %168 : vector<1x4x32xf32> to vector<4x32xf32>
    %cst_85 = arith.constant dense<0.000000e+00> : vector<4x32xf32>
    %170 = tpu.matmul %162, %24, %cst_85 {dimension_numbers = #tpu.dot_dimension_numbers<[1], [0], [0], [1], [0, 0, 1, 1], [], []>} : vector<4x32xf32>, vector<32x32xf32>, vector<4x32xf32> -> vector<4x32xf32>
    %171 = arith.addf %169, %170 : vector<4x32xf32>
    %172 = arith.negf %171 : vector<4x32xf32>
    %173 = math.exp %172 : vector<4x32xf32>
    %cst_86 = arith.constant 1.000000e+00 : f32
    %174 = vector.broadcast %cst_86 : f32 to vector<4x32xf32>
    %175 = arith.addf %174, %173 : vector<4x32xf32>
    %176 = arith.divf %174, %175 : vector<4x32xf32>
    %177 = arith.index_cast %c3_i32 : i32 to index
    %c0_87 = arith.constant 0 : index
    %c0_88 = arith.constant 0 : index
    %178 = vector.load %arg19[%177, %c0_87, %c0_88] : memref<8x4x32xf32, #tpu.memory_space<vmem>>, vector<1x4x32xf32>
    %179 = vector.shape_cast %178 : vector<1x4x32xf32> to vector<4x32xf32>
    %cst_89 = arith.constant dense<0.000000e+00> : vector<4x32xf32>
    %180 = tpu.matmul %162, %26, %cst_89 {dimension_numbers = #tpu.dot_dimension_numbers<[1], [0], [0], [1], [0, 0, 1, 1], [], []>} : vector<4x32xf32>, vector<32x32xf32>, vector<4x32xf32> -> vector<4x32xf32>
    %181 = arith.addf %179, %180 : vector<4x32xf32>
    %182 = arith.negf %181 : vector<4x32xf32>
    %183 = math.exp %182 : vector<4x32xf32>
    %cst_90 = arith.constant 1.000000e+00 : f32
    %184 = vector.broadcast %cst_90 : f32 to vector<4x32xf32>
    %185 = arith.addf %184, %183 : vector<4x32xf32>
    %186 = arith.divf %184, %185 : vector<4x32xf32>
    %187 = arith.index_cast %c3_i32 : i32 to index
    %c0_91 = arith.constant 0 : index
    %c0_92 = arith.constant 0 : index
    %188 = vector.load %arg20[%187, %c0_91, %c0_92] : memref<8x4x32xf32, #tpu.memory_space<vmem>>, vector<1x4x32xf32>
    %189 = vector.shape_cast %188 : vector<1x4x32xf32> to vector<4x32xf32>
    %cst_93 = arith.constant dense<0.000000e+00> : vector<4x32xf32>
    %190 = tpu.matmul %162, %28, %cst_93 {dimension_numbers = #tpu.dot_dimension_numbers<[1], [0], [0], [1], [0, 0, 1, 1], [], []>} : vector<4x32xf32>, vector<32x32xf32>, vector<4x32xf32> -> vector<4x32xf32>
    %191 = arith.addf %189, %190 : vector<4x32xf32>
    %192 = math.tanh %191 : vector<4x32xf32>
    %193 = arith.index_cast %c3_i32 : i32 to index
    %c0_94 = arith.constant 0 : index
    %c0_95 = arith.constant 0 : index
    %194 = vector.load %arg21[%193, %c0_94, %c0_95] : memref<8x4x32xf32, #tpu.memory_space<vmem>>, vector<1x4x32xf32>
    %195 = vector.shape_cast %194 : vector<1x4x32xf32> to vector<4x32xf32>
    %cst_96 = arith.constant dense<0.000000e+00> : vector<4x32xf32>
    %196 = tpu.matmul %162, %30, %cst_96 {dimension_numbers = #tpu.dot_dimension_numbers<[1], [0], [0], [1], [0, 0, 1, 1], [], []>} : vector<4x32xf32>, vector<32x32xf32>, vector<4x32xf32> -> vector<4x32xf32>
    %197 = arith.addf %195, %196 : vector<4x32xf32>
    %198 = arith.negf %197 : vector<4x32xf32>
    %199 = math.exp %198 : vector<4x32xf32>
    %cst_97 = arith.constant 1.000000e+00 : f32
    %200 = vector.broadcast %cst_97 : f32 to vector<4x32xf32>
    %201 = arith.addf %200, %199 : vector<4x32xf32>
    %202 = arith.divf %200, %201 : vector<4x32xf32>
    %203 = arith.mulf %186, %160 : vector<4x32xf32>
    %204 = arith.mulf %176, %192 : vector<4x32xf32>
    %205 = arith.addf %203, %204 : vector<4x32xf32>
    %206 = math.tanh %205 : vector<4x32xf32>
    %207 = arith.mulf %202, %206 : vector<4x32xf32>
    %208 = arith.index_cast %c3_i32 : i32 to index
    %c0_98 = arith.constant 0 : index
    %c0_99 = arith.constant 0 : index
    %209 = vector.load %arg22[%208, %c0_98, %c0_99] : memref<8x4x32xf32, #tpu.memory_space<vmem>>, vector<1x4x32xf32>
    %210 = vector.shape_cast %209 : vector<1x4x32xf32> to vector<4x32xf32>
    %211 = vector.shape_cast %207 : vector<4x32xf32> to vector<1x4x32xf32>
    tpu.vector_store %arg22[%208, %c0_98, %c0_99], %211 {strides = array<i32>} : memref<8x4x32xf32, #tpu.memory_space<vmem>>, vector<1x4x32xf32>,
    %c4_i32 = arith.constant 4 : i32
    %212 = arith.index_cast %c4_i32 : i32 to index
    %c0_100 = arith.constant 0 : index
    %c0_101 = arith.constant 0 : index
    %213 = vector.load %arg18[%212, %c0_100, %c0_101] : memref<8x4x32xf32, #tpu.memory_space<vmem>>, vector<1x4x32xf32>
    %214 = vector.shape_cast %213 : vector<1x4x32xf32> to vector<4x32xf32>
    %cst_102 = arith.constant dense<0.000000e+00> : vector<4x32xf32>
    %215 = tpu.matmul %207, %24, %cst_102 {dimension_numbers = #tpu.dot_dimension_numbers<[1], [0], [0], [1], [0, 0, 1, 1], [], []>} : vector<4x32xf32>, vector<32x32xf32>, vector<4x32xf32> -> vector<4x32xf32>
    %216 = arith.addf %214, %215 : vector<4x32xf32>
    %217 = arith.negf %216 : vector<4x32xf32>
    %218 = math.exp %217 : vector<4x32xf32>
    %cst_103 = arith.constant 1.000000e+00 : f32
    %219 = vector.broadcast %cst_103 : f32 to vector<4x32xf32>
    %220 = arith.addf %219, %218 : vector<4x32xf32>
    %221 = arith.divf %219, %220 : vector<4x32xf32>
    %222 = arith.index_cast %c4_i32 : i32 to index
    %c0_104 = arith.constant 0 : index
    %c0_105 = arith.constant 0 : index
    %223 = vector.load %arg19[%222, %c0_104, %c0_105] : memref<8x4x32xf32, #tpu.memory_space<vmem>>, vector<1x4x32xf32>
    %224 = vector.shape_cast %223 : vector<1x4x32xf32> to vector<4x32xf32>
    %cst_106 = arith.constant dense<0.000000e+00> : vector<4x32xf32>
    %225 = tpu.matmul %207, %26, %cst_106 {dimension_numbers = #tpu.dot_dimension_numbers<[1], [0], [0], [1], [0, 0, 1, 1], [], []>} : vector<4x32xf32>, vector<32x32xf32>, vector<4x32xf32> -> vector<4x32xf32>
    %226 = arith.addf %224, %225 : vector<4x32xf32>
    %227 = arith.negf %226 : vector<4x32xf32>
    %228 = math.exp %227 : vector<4x32xf32>
    %cst_107 = arith.constant 1.000000e+00 : f32
    %229 = vector.broadcast %cst_107 : f32 to vector<4x32xf32>
    %230 = arith.addf %229, %228 : vector<4x32xf32>
    %231 = arith.divf %229, %230 : vector<4x32xf32>
    %232 = arith.index_cast %c4_i32 : i32 to index
    %c0_108 = arith.constant 0 : index
    %c0_109 = arith.constant 0 : index
    %233 = vector.load %arg20[%232, %c0_108, %c0_109] : memref<8x4x32xf32, #tpu.memory_space<vmem>>, vector<1x4x32xf32>
    %234 = vector.shape_cast %233 : vector<1x4x32xf32> to vector<4x32xf32>
    %cst_110 = arith.constant dense<0.000000e+00> : vector<4x32xf32>
    %235 = tpu.matmul %207, %28, %cst_110 {dimension_numbers = #tpu.dot_dimension_numbers<[1], [0], [0], [1], [0, 0, 1, 1], [], []>} : vector<4x32xf32>, vector<32x32xf32>, vector<4x32xf32> -> vector<4x32xf32>
    %236 = arith.addf %234, %235 : vector<4x32xf32>
    %237 = math.tanh %236 : vector<4x32xf32>
    %238 = arith.index_cast %c4_i32 : i32 to index
    %c0_111 = arith.constant 0 : index
    %c0_112 = arith.constant 0 : index
    %239 = vector.load %arg21[%238, %c0_111, %c0_112] : memref<8x4x32xf32, #tpu.memory_space<vmem>>, vector<1x4x32xf32>
    %240 = vector.shape_cast %239 : vector<1x4x32xf32> to vector<4x32xf32>
    %cst_113 = arith.constant dense<0.000000e+00> : vector<4x32xf32>
    %241 = tpu.matmul %207, %30, %cst_113 {dimension_numbers = #tpu.dot_dimension_numbers<[1], [0], [0], [1], [0, 0, 1, 1], [], []>} : vector<4x32xf32>, vector<32x32xf32>, vector<4x32xf32> -> vector<4x32xf32>
    %242 = arith.addf %240, %241 : vector<4x32xf32>
    %243 = arith.negf %242 : vector<4x32xf32>
    %244 = math.exp %243 : vector<4x32xf32>
    %cst_114 = arith.constant 1.000000e+00 : f32
    %245 = vector.broadcast %cst_114 : f32 to vector<4x32xf32>
    %246 = arith.addf %245, %244 : vector<4x32xf32>
    %247 = arith.divf %245, %246 : vector<4x32xf32>
    %248 = arith.mulf %231, %205 : vector<4x32xf32>
    %249 = arith.mulf %221, %237 : vector<4x32xf32>
    %250 = arith.addf %248, %249 : vector<4x32xf32>
    %251 = math.tanh %250 : vector<4x32xf32>
    %252 = arith.mulf %247, %251 : vector<4x32xf32>
    %253 = arith.index_cast %c4_i32 : i32 to index
    %c0_115 = arith.constant 0 : index
    %c0_116 = arith.constant 0 : index
    %254 = vector.load %arg22[%253, %c0_115, %c0_116] : memref<8x4x32xf32, #tpu.memory_space<vmem>>, vector<1x4x32xf32>
    %255 = vector.shape_cast %254 : vector<1x4x32xf32> to vector<4x32xf32>
    %256 = vector.shape_cast %252 : vector<4x32xf32> to vector<1x4x32xf32>
    tpu.vector_store %arg22[%253, %c0_115, %c0_116], %256 {strides = array<i32>} : memref<8x4x32xf32, #tpu.memory_space<vmem>>, vector<1x4x32xf32>,
    %c5_i32 = arith.constant 5 : i32
    %257 = arith.index_cast %c5_i32 : i32 to index
    %c0_117 = arith.constant 0 : index
    %c0_118 = arith.constant 0 : index
    %258 = vector.load %arg18[%257, %c0_117, %c0_118] : memref<8x4x32xf32, #tpu.memory_space<vmem>>, vector<1x4x32xf32>
    %259 = vector.shape_cast %258 : vector<1x4x32xf32> to vector<4x32xf32>
    %cst_119 = arith.constant dense<0.000000e+00> : vector<4x32xf32>
    %260 = tpu.matmul %252, %24, %cst_119 {dimension_numbers = #tpu.dot_dimension_numbers<[1], [0], [0], [1], [0, 0, 1, 1], [], []>} : vector<4x32xf32>, vector<32x32xf32>, vector<4x32xf32> -> vector<4x32xf32>
    %261 = arith.addf %259, %260 : vector<4x32xf32>
    %262 = arith.negf %261 : vector<4x32xf32>
    %263 = math.exp %262 : vector<4x32xf32>
    %cst_120 = arith.constant 1.000000e+00 : f32
    %264 = vector.broadcast %cst_120 : f32 to vector<4x32xf32>
    %265 = arith.addf %264, %263 : vector<4x32xf32>
    %266 = arith.divf %264, %265 : vector<4x32xf32>
    %267 = arith.index_cast %c5_i32 : i32 to index
    %c0_121 = arith.constant 0 : index
    %c0_122 = arith.constant 0 : index
    %268 = vector.load %arg19[%267, %c0_121, %c0_122] : memref<8x4x32xf32, #tpu.memory_space<vmem>>, vector<1x4x32xf32>
    %269 = vector.shape_cast %268 : vector<1x4x32xf32> to vector<4x32xf32>
    %cst_123 = arith.constant dense<0.000000e+00> : vector<4x32xf32>
    %270 = tpu.matmul %252, %26, %cst_123 {dimension_numbers = #tpu.dot_dimension_numbers<[1], [0], [0], [1], [0, 0, 1, 1], [], []>} : vector<4x32xf32>, vector<32x32xf32>, vector<4x32xf32> -> vector<4x32xf32>
    %271 = arith.addf %269, %270 : vector<4x32xf32>
    %272 = arith.negf %271 : vector<4x32xf32>
    %273 = math.exp %272 : vector<4x32xf32>
    %cst_124 = arith.constant 1.000000e+00 : f32
    %274 = vector.broadcast %cst_124 : f32 to vector<4x32xf32>
    %275 = arith.addf %274, %273 : vector<4x32xf32>
    %276 = arith.divf %274, %275 : vector<4x32xf32>
    %277 = arith.index_cast %c5_i32 : i32 to index
    %c0_125 = arith.constant 0 : index
    %c0_126 = arith.constant 0 : index
    %278 = vector.load %arg20[%277, %c0_125, %c0_126] : memref<8x4x32xf32, #tpu.memory_space<vmem>>, vector<1x4x32xf32>
    %279 = vector.shape_cast %278 : vector<1x4x32xf32> to vector<4x32xf32>
    %cst_127 = arith.constant dense<0.000000e+00> : vector<4x32xf32>
    %280 = tpu.matmul %252, %28, %cst_127 {dimension_numbers = #tpu.dot_dimension_numbers<[1], [0], [0], [1], [0, 0, 1, 1], [], []>} : vector<4x32xf32>, vector<32x32xf32>, vector<4x32xf32> -> vector<4x32xf32>
    %281 = arith.addf %279, %280 : vector<4x32xf32>
    %282 = math.tanh %281 : vector<4x32xf32>
    %283 = arith.index_cast %c5_i32 : i32 to index
    %c0_128 = arith.constant 0 : index
    %c0_129 = arith.constant 0 : index
    %284 = vector.load %arg21[%283, %c0_128, %c0_129] : memref<8x4x32xf32, #tpu.memory_space<vmem>>, vector<1x4x32xf32>
    %285 = vector.shape_cast %284 : vector<1x4x32xf32> to vector<4x32xf32>
    %cst_130 = arith.constant dense<0.000000e+00> : vector<4x32xf32>
    %286 = tpu.matmul %252, %30, %cst_130 {dimension_numbers = #tpu.dot_dimension_numbers<[1], [0], [0], [1], [0, 0, 1, 1], [], []>} : vector<4x32xf32>, vector<32x32xf32>, vector<4x32xf32> -> vector<4x32xf32>
    %287 = arith.addf %285, %286 : vector<4x32xf32>
    %288 = arith.negf %287 : vector<4x32xf32>
    %289 = math.exp %288 : vector<4x32xf32>
    %cst_131 = arith.constant 1.000000e+00 : f32
    %290 = vector.broadcast %cst_131 : f32 to vector<4x32xf32>
    %291 = arith.addf %290, %289 : vector<4x32xf32>
    %292 = arith.divf %290, %291 : vector<4x32xf32>
    %293 = arith.mulf %276, %250 : vector<4x32xf32>
    %294 = arith.mulf %266, %282 : vector<4x32xf32>
    %295 = arith.addf %293, %294 : vector<4x32xf32>
    %296 = math.tanh %295 : vector<4x32xf32>
    %297 = arith.mulf %292, %296 : vector<4x32xf32>
    %298 = arith.index_cast %c5_i32 : i32 to index
    %c0_132 = arith.constant 0 : index
    %c0_133 = arith.constant 0 : index
    %299 = vector.load %arg22[%298, %c0_132, %c0_133] : memref<8x4x32xf32, #tpu.memory_space<vmem>>, vector<1x4x32xf32>
    %300 = vector.shape_cast %299 : vector<1x4x32xf32> to vector<4x32xf32>
    %301 = vector.shape_cast %297 : vector<4x32xf32> to vector<1x4x32xf32>
    tpu.vector_store %arg22[%298, %c0_132, %c0_133], %301 {strides = array<i32>} : memref<8x4x32xf32, #tpu.memory_space<vmem>>, vector<1x4x32xf32>,
    %c6_i32 = arith.constant 6 : i32
    %302 = arith.index_cast %c6_i32 : i32 to index
    %c0_134 = arith.constant 0 : index
    %c0_135 = arith.constant 0 : index
    %303 = vector.load %arg18[%302, %c0_134, %c0_135] : memref<8x4x32xf32, #tpu.memory_space<vmem>>, vector<1x4x32xf32>
    %304 = vector.shape_cast %303 : vector<1x4x32xf32> to vector<4x32xf32>
    %cst_136 = arith.constant dense<0.000000e+00> : vector<4x32xf32>
    %305 = tpu.matmul %297, %24, %cst_136 {dimension_numbers = #tpu.dot_dimension_numbers<[1], [0], [0], [1], [0, 0, 1, 1], [], []>} : vector<4x32xf32>, vector<32x32xf32>, vector<4x32xf32> -> vector<4x32xf32>
    %306 = arith.addf %304, %305 : vector<4x32xf32>
    %307 = arith.negf %306 : vector<4x32xf32>
    %308 = math.exp %307 : vector<4x32xf32>
    %cst_137 = arith.constant 1.000000e+00 : f32
    %309 = vector.broadcast %cst_137 : f32 to vector<4x32xf32>
    %310 = arith.addf %309, %308 : vector<4x32xf32>
    %311 = arith.divf %309, %310 : vector<4x32xf32>
    %312 = arith.index_cast %c6_i32 : i32 to index
    %c0_138 = arith.constant 0 : index
    %c0_139 = arith.constant 0 : index
    %313 = vector.load %arg19[%312, %c0_138, %c0_139] : memref<8x4x32xf32, #tpu.memory_space<vmem>>, vector<1x4x32xf32>
    %314 = vector.shape_cast %313 : vector<1x4x32xf32> to vector<4x32xf32>
    %cst_140 = arith.constant dense<0.000000e+00> : vector<4x32xf32>
    %315 = tpu.matmul %297, %26, %cst_140 {dimension_numbers = #tpu.dot_dimension_numbers<[1], [0], [0], [1], [0, 0, 1, 1], [], []>} : vector<4x32xf32>, vector<32x32xf32>, vector<4x32xf32> -> vector<4x32xf32>
    %316 = arith.addf %314, %315 : vector<4x32xf32>
    %317 = arith.negf %316 : vector<4x32xf32>
    %318 = math.exp %317 : vector<4x32xf32>
    %cst_141 = arith.constant 1.000000e+00 : f32
    %319 = vector.broadcast %cst_141 : f32 to vector<4x32xf32>
    %320 = arith.addf %319, %318 : vector<4x32xf32>
    %321 = arith.divf %319, %320 : vector<4x32xf32>
    %322 = arith.index_cast %c6_i32 : i32 to index
    %c0_142 = arith.constant 0 : index
    %c0_143 = arith.constant 0 : index
    %323 = vector.load %arg20[%322, %c0_142, %c0_143] : memref<8x4x32xf32, #tpu.memory_space<vmem>>, vector<1x4x32xf32>
    %324 = vector.shape_cast %323 : vector<1x4x32xf32> to vector<4x32xf32>
    %cst_144 = arith.constant dense<0.000000e+00> : vector<4x32xf32>
    %325 = tpu.matmul %297, %28, %cst_144 {dimension_numbers = #tpu.dot_dimension_numbers<[1], [0], [0], [1], [0, 0, 1, 1], [], []>} : vector<4x32xf32>, vector<32x32xf32>, vector<4x32xf32> -> vector<4x32xf32>
    %326 = arith.addf %324, %325 : vector<4x32xf32>
    %327 = math.tanh %326 : vector<4x32xf32>
    %328 = arith.index_cast %c6_i32 : i32 to index
    %c0_145 = arith.constant 0 : index
    %c0_146 = arith.constant 0 : index
    %329 = vector.load %arg21[%328, %c0_145, %c0_146] : memref<8x4x32xf32, #tpu.memory_space<vmem>>, vector<1x4x32xf32>
    %330 = vector.shape_cast %329 : vector<1x4x32xf32> to vector<4x32xf32>
    %cst_147 = arith.constant dense<0.000000e+00> : vector<4x32xf32>
    %331 = tpu.matmul %297, %30, %cst_147 {dimension_numbers = #tpu.dot_dimension_numbers<[1], [0], [0], [1], [0, 0, 1, 1], [], []>} : vector<4x32xf32>, vector<32x32xf32>, vector<4x32xf32> -> vector<4x32xf32>
    %332 = arith.addf %330, %331 : vector<4x32xf32>
    %333 = arith.negf %332 : vector<4x32xf32>
    %334 = math.exp %333 : vector<4x32xf32>
    %cst_148 = arith.constant 1.000000e+00 : f32
    %335 = vector.broadcast %cst_148 : f32 to vector<4x32xf32>
    %336 = arith.addf %335, %334 : vector<4x32xf32>
    %337 = arith.divf %335, %336 : vector<4x32xf32>
    %338 = arith.mulf %321, %295 : vector<4x32xf32>
    %339 = arith.mulf %311, %327 : vector<4x32xf32>
    %340 = arith.addf %338, %339 : vector<4x32xf32>
    %341 = math.tanh %340 : vector<4x32xf32>
    %342 = arith.mulf %337, %341 : vector<4x32xf32>
    %343 = arith.index_cast %c6_i32 : i32 to index
    %c0_149 = arith.constant 0 : index
    %c0_150 = arith.constant 0 : index
    %344 = vector.load %arg22[%343, %c0_149, %c0_150] : memref<8x4x32xf32, #tpu.memory_space<vmem>>, vector<1x4x32xf32>
    %345 = vector.shape_cast %344 : vector<1x4x32xf32> to vector<4x32xf32>
    %346 = vector.shape_cast %342 : vector<4x32xf32> to vector<1x4x32xf32>
    tpu.vector_store %arg22[%343, %c0_149, %c0_150], %346 {strides = array<i32>} : memref<8x4x32xf32, #tpu.memory_space<vmem>>, vector<1x4x32xf32>,
    %c7_i32 = arith.constant 7 : i32
    %347 = arith.index_cast %c7_i32 : i32 to index
    %c0_151 = arith.constant 0 : index
    %c0_152 = arith.constant 0 : index
    %348 = vector.load %arg18[%347, %c0_151, %c0_152] : memref<8x4x32xf32, #tpu.memory_space<vmem>>, vector<1x4x32xf32>
    %349 = vector.shape_cast %348 : vector<1x4x32xf32> to vector<4x32xf32>
    %cst_153 = arith.constant dense<0.000000e+00> : vector<4x32xf32>
    %350 = tpu.matmul %342, %24, %cst_153 {dimension_numbers = #tpu.dot_dimension_numbers<[1], [0], [0], [1], [0, 0, 1, 1], [], []>} : vector<4x32xf32>, vector<32x32xf32>, vector<4x32xf32> -> vector<4x32xf32>
    %351 = arith.addf %349, %350 : vector<4x32xf32>
    %352 = arith.negf %351 : vector<4x32xf32>
    %353 = math.exp %352 : vector<4x32xf32>
    %cst_154 = arith.constant 1.000000e+00 : f32
    %354 = vector.broadcast %cst_154 : f32 to vector<4x32xf32>
    %355 = arith.addf %354, %353 : vector<4x32xf32>
    %356 = arith.divf %354, %355 : vector<4x32xf32>
    %357 = arith.index_cast %c7_i32 : i32 to index
    %c0_155 = arith.constant 0 : index
    %c0_156 = arith.constant 0 : index
    %358 = vector.load %arg19[%357, %c0_155, %c0_156] : memref<8x4x32xf32, #tpu.memory_space<vmem>>, vector<1x4x32xf32>
    %359 = vector.shape_cast %358 : vector<1x4x32xf32> to vector<4x32xf32>
    %cst_157 = arith.constant dense<0.000000e+00> : vector<4x32xf32>
    %360 = tpu.matmul %342, %26, %cst_157 {dimension_numbers = #tpu.dot_dimension_numbers<[1], [0], [0], [1], [0, 0, 1, 1], [], []>} : vector<4x32xf32>, vector<32x32xf32>, vector<4x32xf32> -> vector<4x32xf32>
    %361 = arith.addf %359, %360 : vector<4x32xf32>
    %362 = arith.negf %361 : vector<4x32xf32>
    %363 = math.exp %362 : vector<4x32xf32>
    %cst_158 = arith.constant 1.000000e+00 : f32
    %364 = vector.broadcast %cst_158 : f32 to vector<4x32xf32>
    %365 = arith.addf %364, %363 : vector<4x32xf32>
    %366 = arith.divf %364, %365 : vector<4x32xf32>
    %367 = arith.index_cast %c7_i32 : i32 to index
    %c0_159 = arith.constant 0 : index
    %c0_160 = arith.constant 0 : index
    %368 = vector.load %arg20[%367, %c0_159, %c0_160] : memref<8x4x32xf32, #tpu.memory_space<vmem>>, vector<1x4x32xf32>
    %369 = vector.shape_cast %368 : vector<1x4x32xf32> to vector<4x32xf32>
    %cst_161 = arith.constant dense<0.000000e+00> : vector<4x32xf32>
    %370 = tpu.matmul %342, %28, %cst_161 {dimension_numbers = #tpu.dot_dimension_numbers<[1], [0], [0], [1], [0, 0, 1, 1], [], []>} : vector<4x32xf32>, vector<32x32xf32>, vector<4x32xf32> -> vector<4x32xf32>
    %371 = arith.addf %369, %370 : vector<4x32xf32>
    %372 = math.tanh %371 : vector<4x32xf32>
    %373 = arith.index_cast %c7_i32 : i32 to index
    %c0_162 = arith.constant 0 : index
    %c0_163 = arith.constant 0 : index
    %374 = vector.load %arg21[%373, %c0_162, %c0_163] : memref<8x4x32xf32, #tpu.memory_space<vmem>>, vector<1x4x32xf32>
    %375 = vector.shape_cast %374 : vector<1x4x32xf32> to vector<4x32xf32>
    %cst_164 = arith.constant dense<0.000000e+00> : vector<4x32xf32>
    %376 = tpu.matmul %342, %30, %cst_164 {dimension_numbers = #tpu.dot_dimension_numbers<[1], [0], [0], [1], [0, 0, 1, 1], [], []>} : vector<4x32xf32>, vector<32x32xf32>, vector<4x32xf32> -> vector<4x32xf32>
    %377 = arith.addf %375, %376 : vector<4x32xf32>
    %378 = arith.negf %377 : vector<4x32xf32>
    %379 = math.exp %378 : vector<4x32xf32>
    %cst_165 = arith.constant 1.000000e+00 : f32
    %380 = vector.broadcast %cst_165 : f32 to vector<4x32xf32>
    %381 = arith.addf %380, %379 : vector<4x32xf32>
    %382 = arith.divf %380, %381 : vector<4x32xf32>
    %383 = arith.mulf %366, %340 : vector<4x32xf32>
    %384 = arith.mulf %356, %372 : vector<4x32xf32>
    %385 = arith.addf %383, %384 : vector<4x32xf32>
    %386 = math.tanh %385 : vector<4x32xf32>
    %387 = arith.mulf %382, %386 : vector<4x32xf32>
    %388 = arith.index_cast %c7_i32 : i32 to index
    %c0_166 = arith.constant 0 : index
    %c0_167 = arith.constant 0 : index
    %389 = vector.load %arg22[%388, %c0_166, %c0_167] : memref<8x4x32xf32, #tpu.memory_space<vmem>>, vector<1x4x32xf32>
    %390 = vector.shape_cast %389 : vector<1x4x32xf32> to vector<4x32xf32>
    %391 = vector.shape_cast %387 : vector<4x32xf32> to vector<1x4x32xf32>
    tpu.vector_store %arg22[%388, %c0_166, %c0_167], %391 {strides = array<i32>} : memref<8x4x32xf32, #tpu.memory_space<vmem>>, vector<1x4x32xf32>,
    %c8_i32 = arith.constant 8 : i32
    %c0_168 = arith.constant 0 : index
    %c0_169 = arith.constant 0 : index
    %c0_170 = arith.constant 0 : index
    %392 = vector.load %arg22[%c0_168, %c0_169, %c0_170] : memref<8x4x32xf32, #tpu.memory_space<vmem>>, vector<8x4x32xf32>
    %393 = vector.shape_cast %392 : vector<8x4x32xf32> to vector<32x32xf32>
    %c0_171 = arith.constant 0 : index
    %c0_172 = arith.constant 0 : index
    %394 = vector.load %arg7[%c0_171, %c0_172] : memref<32x128xf32, #tpu.memory_space<vmem>>, vector<32x128xf32>
    %cst_173 = arith.constant dense<0.000000e+00> : vector<32x128xf32>
    %395 = tpu.matmul %393, %394, %cst_173 {dimension_numbers = #tpu.dot_dimension_numbers<[1], [0], [0], [1], [0, 0, 1, 1], [], []>} : vector<32x32xf32>, vector<32x128xf32>, vector<32x128xf32> -> vector<32x128xf32>
    %c0_174 = arith.constant 0 : index
    %c0_175 = arith.constant 0 : index
    %396 = vector.load %arg9[%c0_174, %c0_175] : memref<1x128xf32, #tpu.memory_space<vmem>>, vector<1x128xf32>
    %397 = vector.broadcast %396 : vector<1x128xf32> to vector<32x128xf32>
    %398 = arith.addf %395, %397 : vector<32x128xf32>
    %399 = vector.extract_strided_slice %398 {offsets = [0, 0], sizes = [32, 32], strides = [1, 1]} : vector<32x128xf32> to vector<32x32xf32>
    %400 = vector.shape_cast %399 : vector<32x32xf32> to vector<8x4x32xf32>
    %c0_176 = arith.constant 0 : index
    %c0_177 = arith.constant 0 : index
    %c0_178 = arith.constant 0 : index
    %401 = vector.load %arg18[%c0_176, %c0_177, %c0_178] : memref<8x4x32xf32, #tpu.memory_space<vmem>>, vector<8x4x32xf32>
    tpu.vector_store %arg18[%c0_176, %c0_177, %c0_178], %400 {strides = array<i32>} : memref<8x4x32xf32, #tpu.memory_space<vmem>>, vector<8x4x32xf32>,
    %402 = vector.extract_strided_slice %398 {offsets = [0, 32], sizes = [32, 32], strides = [1, 1]} : vector<32x128xf32> to vector<32x32xf32>
    %403 = vector.shape_cast %402 : vector<32x32xf32> to vector<8x4x32xf32>
    %c0_179 = arith.constant 0 : index
    %c0_180 = arith.constant 0 : index
    %c0_181 = arith.constant 0 : index
    %404 = vector.load %arg19[%c0_179, %c0_180, %c0_181] : memref<8x4x32xf32, #tpu.memory_space<vmem>>, vector<8x4x32xf32>
    tpu.vector_store %arg19[%c0_179, %c0_180, %c0_181], %403 {strides = array<i32>} : memref<8x4x32xf32, #tpu.memory_space<vmem>>, vector<8x4x32xf32>,
    %405 = vector.extract_strided_slice %398 {offsets = [0, 64], sizes = [32, 32], strides = [1, 1]} : vector<32x128xf32> to vector<32x32xf32>
    %406 = vector.shape_cast %405 : vector<32x32xf32> to vector<8x4x32xf32>
    %c0_182 = arith.constant 0 : index
    %c0_183 = arith.constant 0 : index
    %c0_184 = arith.constant 0 : index
    %407 = vector.load %arg20[%c0_182, %c0_183, %c0_184] : memref<8x4x32xf32, #tpu.memory_space<vmem>>, vector<8x4x32xf32>
    tpu.vector_store %arg20[%c0_182, %c0_183, %c0_184], %406 {strides = array<i32>} : memref<8x4x32xf32, #tpu.memory_space<vmem>>, vector<8x4x32xf32>,
    %408 = vector.extract_strided_slice %398 {offsets = [0, 96], sizes = [32, 32], strides = [1, 1]} : vector<32x128xf32> to vector<32x32xf32>
    %409 = vector.shape_cast %408 : vector<32x32xf32> to vector<8x4x32xf32>
    %c0_185 = arith.constant 0 : index
    %c0_186 = arith.constant 0 : index
    %c0_187 = arith.constant 0 : index
    %410 = vector.load %arg21[%c0_185, %c0_186, %c0_187] : memref<8x4x32xf32, #tpu.memory_space<vmem>>, vector<8x4x32xf32>
    tpu.vector_store %arg21[%c0_185, %c0_186, %c0_187], %409 {strides = array<i32>} : memref<8x4x32xf32, #tpu.memory_space<vmem>>, vector<8x4x32xf32>,
    %c0_188 = arith.constant 0 : index
    %c0_189 = arith.constant 0 : index
    %c0_190 = arith.constant 0 : index
    %411 = vector.load %arg8[%c0_188, %c0_189, %c0_190] : memref<4x32x32xf32, #tpu.memory_space<vmem>>, vector<1x32x32xf32>
    %412 = vector.shape_cast %411 : vector<1x32x32xf32> to vector<32x32xf32>
    %c1_191 = arith.constant 1 : index
    %c0_192 = arith.constant 0 : index
    %c0_193 = arith.constant 0 : index
    %413 = vector.load %arg8[%c1_191, %c0_192, %c0_193] : memref<4x32x32xf32, #tpu.memory_space<vmem>>, vector<1x32x32xf32>
    %414 = vector.shape_cast %413 : vector<1x32x32xf32> to vector<32x32xf32>
    %c2_194 = arith.constant 2 : index
    %c0_195 = arith.constant 0 : index
    %c0_196 = arith.constant 0 : index
    %415 = vector.load %arg8[%c2_194, %c0_195, %c0_196] : memref<4x32x32xf32, #tpu.memory_space<vmem>>, vector<1x32x32xf32>
    %416 = vector.shape_cast %415 : vector<1x32x32xf32> to vector<32x32xf32>
    %c3_197 = arith.constant 3 : index
    %c0_198 = arith.constant 0 : index
    %c0_199 = arith.constant 0 : index
    %417 = vector.load %arg8[%c3_197, %c0_198, %c0_199] : memref<4x32x32xf32, #tpu.memory_space<vmem>>, vector<1x32x32xf32>
    %418 = vector.shape_cast %417 : vector<1x32x32xf32> to vector<32x32xf32>
    %cst_200 = arith.constant 0.000000e+00 : f32
    %419 = vector.broadcast %cst_200 : f32 to vector<4x32xf32>
    %c0_i32_201 = arith.constant 0 : i32
    %420 = arith.index_cast %c0_i32_201 : i32 to index
    %c0_202 = arith.constant 0 : index
    %c0_203 = arith.constant 0 : index
    %421 = vector.load %arg18[%420, %c0_202, %c0_203] : memref<8x4x32xf32, #tpu.memory_space<vmem>>, vector<1x4x32xf32>
    %422 = vector.shape_cast %421 : vector<1x4x32xf32> to vector<4x32xf32>
    %cst_204 = arith.constant dense<0.000000e+00> : vector<4x32xf32>
    %423 = tpu.matmul %419, %412, %cst_204 {dimension_numbers = #tpu.dot_dimension_numbers<[1], [0], [0], [1], [0, 0, 1, 1], [], []>} : vector<4x32xf32>, vector<32x32xf32>, vector<4x32xf32> -> vector<4x32xf32>
    %424 = arith.addf %422, %423 : vector<4x32xf32>
    %425 = arith.negf %424 : vector<4x32xf32>
    %426 = math.exp %425 : vector<4x32xf32>
    %cst_205 = arith.constant 1.000000e+00 : f32
    %427 = vector.broadcast %cst_205 : f32 to vector<4x32xf32>
    %428 = arith.addf %427, %426 : vector<4x32xf32>
    %429 = arith.divf %427, %428 : vector<4x32xf32>
    %430 = arith.index_cast %c0_i32_201 : i32 to index
    %c0_206 = arith.constant 0 : index
    %c0_207 = arith.constant 0 : index
    %431 = vector.load %arg19[%430, %c0_206, %c0_207] : memref<8x4x32xf32, #tpu.memory_space<vmem>>, vector<1x4x32xf32>
    %432 = vector.shape_cast %431 : vector<1x4x32xf32> to vector<4x32xf32>
    %cst_208 = arith.constant dense<0.000000e+00> : vector<4x32xf32>
    %433 = tpu.matmul %419, %414, %cst_208 {dimension_numbers = #tpu.dot_dimension_numbers<[1], [0], [0], [1], [0, 0, 1, 1], [], []>} : vector<4x32xf32>, vector<32x32xf32>, vector<4x32xf32> -> vector<4x32xf32>
    %434 = arith.addf %432, %433 : vector<4x32xf32>
    %435 = arith.negf %434 : vector<4x32xf32>
    %436 = math.exp %435 : vector<4x32xf32>
    %cst_209 = arith.constant 1.000000e+00 : f32
    %437 = vector.broadcast %cst_209 : f32 to vector<4x32xf32>
    %438 = arith.addf %437, %436 : vector<4x32xf32>
    %439 = arith.divf %437, %438 : vector<4x32xf32>
    %440 = arith.index_cast %c0_i32_201 : i32 to index
    %c0_210 = arith.constant 0 : index
    %c0_211 = arith.constant 0 : index
    %441 = vector.load %arg20[%440, %c0_210, %c0_211] : memref<8x4x32xf32, #tpu.memory_space<vmem>>, vector<1x4x32xf32>
    %442 = vector.shape_cast %441 : vector<1x4x32xf32> to vector<4x32xf32>
    %cst_212 = arith.constant dense<0.000000e+00> : vector<4x32xf32>
    %443 = tpu.matmul %419, %416, %cst_212 {dimension_numbers = #tpu.dot_dimension_numbers<[1], [0], [0], [1], [0, 0, 1, 1], [], []>} : vector<4x32xf32>, vector<32x32xf32>, vector<4x32xf32> -> vector<4x32xf32>
    %444 = arith.addf %442, %443 : vector<4x32xf32>
    %445 = math.tanh %444 : vector<4x32xf32>
    %446 = arith.index_cast %c0_i32_201 : i32 to index
    %c0_213 = arith.constant 0 : index
    %c0_214 = arith.constant 0 : index
    %447 = vector.load %arg21[%446, %c0_213, %c0_214] : memref<8x4x32xf32, #tpu.memory_space<vmem>>, vector<1x4x32xf32>
    %448 = vector.shape_cast %447 : vector<1x4x32xf32> to vector<4x32xf32>
    %cst_215 = arith.constant dense<0.000000e+00> : vector<4x32xf32>
    %449 = tpu.matmul %419, %418, %cst_215 {dimension_numbers = #tpu.dot_dimension_numbers<[1], [0], [0], [1], [0, 0, 1, 1], [], []>} : vector<4x32xf32>, vector<32x32xf32>, vector<4x32xf32> -> vector<4x32xf32>
    %450 = arith.addf %448, %449 : vector<4x32xf32>
    %451 = arith.negf %450 : vector<4x32xf32>
    %452 = math.exp %451 : vector<4x32xf32>
    %cst_216 = arith.constant 1.000000e+00 : f32
    %453 = vector.broadcast %cst_216 : f32 to vector<4x32xf32>
    %454 = arith.addf %453, %452 : vector<4x32xf32>
    %455 = arith.divf %453, %454 : vector<4x32xf32>
    %456 = arith.mulf %439, %419 : vector<4x32xf32>
    %457 = arith.mulf %429, %445 : vector<4x32xf32>
    %458 = arith.addf %456, %457 : vector<4x32xf32>
    %459 = math.tanh %458 : vector<4x32xf32>
    %460 = arith.mulf %455, %459 : vector<4x32xf32>
    %461 = arith.index_cast %c0_i32_201 : i32 to index
    %c0_217 = arith.constant 0 : index
    %c0_218 = arith.constant 0 : index
    %462 = vector.load %arg22[%461, %c0_217, %c0_218] : memref<8x4x32xf32, #tpu.memory_space<vmem>>, vector<1x4x32xf32>
    %463 = vector.shape_cast %462 : vector<1x4x32xf32> to vector<4x32xf32>
    %464 = vector.shape_cast %460 : vector<4x32xf32> to vector<1x4x32xf32>
    tpu.vector_store %arg22[%461, %c0_217, %c0_218], %464 {strides = array<i32>} : memref<8x4x32xf32, #tpu.memory_space<vmem>>, vector<1x4x32xf32>,
    %c1_i32_219 = arith.constant 1 : i32
    %465 = arith.index_cast %c1_i32_219 : i32 to index
    %c0_220 = arith.constant 0 : index
    %c0_221 = arith.constant 0 : index
    %466 = vector.load %arg18[%465, %c0_220, %c0_221] : memref<8x4x32xf32, #tpu.memory_space<vmem>>, vector<1x4x32xf32>
    %467 = vector.shape_cast %466 : vector<1x4x32xf32> to vector<4x32xf32>
    %cst_222 = arith.constant dense<0.000000e+00> : vector<4x32xf32>
    %468 = tpu.matmul %460, %412, %cst_222 {dimension_numbers = #tpu.dot_dimension_numbers<[1], [0], [0], [1], [0, 0, 1, 1], [], []>} : vector<4x32xf32>, vector<32x32xf32>, vector<4x32xf32> -> vector<4x32xf32>
    %469 = arith.addf %467, %468 : vector<4x32xf32>
    %470 = arith.negf %469 : vector<4x32xf32>
    %471 = math.exp %470 : vector<4x32xf32>
    %cst_223 = arith.constant 1.000000e+00 : f32
    %472 = vector.broadcast %cst_223 : f32 to vector<4x32xf32>
    %473 = arith.addf %472, %471 : vector<4x32xf32>
    %474 = arith.divf %472, %473 : vector<4x32xf32>
    %475 = arith.index_cast %c1_i32_219 : i32 to index
    %c0_224 = arith.constant 0 : index
    %c0_225 = arith.constant 0 : index
    %476 = vector.load %arg19[%475, %c0_224, %c0_225] : memref<8x4x32xf32, #tpu.memory_space<vmem>>, vector<1x4x32xf32>
    %477 = vector.shape_cast %476 : vector<1x4x32xf32> to vector<4x32xf32>
    %cst_226 = arith.constant dense<0.000000e+00> : vector<4x32xf32>
    %478 = tpu.matmul %460, %414, %cst_226 {dimension_numbers = #tpu.dot_dimension_numbers<[1], [0], [0], [1], [0, 0, 1, 1], [], []>} : vector<4x32xf32>, vector<32x32xf32>, vector<4x32xf32> -> vector<4x32xf32>
    %479 = arith.addf %477, %478 : vector<4x32xf32>
    %480 = arith.negf %479 : vector<4x32xf32>
    %481 = math.exp %480 : vector<4x32xf32>
    %cst_227 = arith.constant 1.000000e+00 : f32
    %482 = vector.broadcast %cst_227 : f32 to vector<4x32xf32>
    %483 = arith.addf %482, %481 : vector<4x32xf32>
    %484 = arith.divf %482, %483 : vector<4x32xf32>
    %485 = arith.index_cast %c1_i32_219 : i32 to index
    %c0_228 = arith.constant 0 : index
    %c0_229 = arith.constant 0 : index
    %486 = vector.load %arg20[%485, %c0_228, %c0_229] : memref<8x4x32xf32, #tpu.memory_space<vmem>>, vector<1x4x32xf32>
    %487 = vector.shape_cast %486 : vector<1x4x32xf32> to vector<4x32xf32>
    %cst_230 = arith.constant dense<0.000000e+00> : vector<4x32xf32>
    %488 = tpu.matmul %460, %416, %cst_230 {dimension_numbers = #tpu.dot_dimension_numbers<[1], [0], [0], [1], [0, 0, 1, 1], [], []>} : vector<4x32xf32>, vector<32x32xf32>, vector<4x32xf32> -> vector<4x32xf32>
    %489 = arith.addf %487, %488 : vector<4x32xf32>
    %490 = math.tanh %489 : vector<4x32xf32>
    %491 = arith.index_cast %c1_i32_219 : i32 to index
    %c0_231 = arith.constant 0 : index
    %c0_232 = arith.constant 0 : index
    %492 = vector.load %arg21[%491, %c0_231, %c0_232] : memref<8x4x32xf32, #tpu.memory_space<vmem>>, vector<1x4x32xf32>
    %493 = vector.shape_cast %492 : vector<1x4x32xf32> to vector<4x32xf32>
    %cst_233 = arith.constant dense<0.000000e+00> : vector<4x32xf32>
    %494 = tpu.matmul %460, %418, %cst_233 {dimension_numbers = #tpu.dot_dimension_numbers<[1], [0], [0], [1], [0, 0, 1, 1], [], []>} : vector<4x32xf32>, vector<32x32xf32>, vector<4x32xf32> -> vector<4x32xf32>
    %495 = arith.addf %493, %494 : vector<4x32xf32>
    %496 = arith.negf %495 : vector<4x32xf32>
    %497 = math.exp %496 : vector<4x32xf32>
    %cst_234 = arith.constant 1.000000e+00 : f32
    %498 = vector.broadcast %cst_234 : f32 to vector<4x32xf32>
    %499 = arith.addf %498, %497 : vector<4x32xf32>
    %500 = arith.divf %498, %499 : vector<4x32xf32>
    %501 = arith.mulf %484, %458 : vector<4x32xf32>
    %502 = arith.mulf %474, %490 : vector<4x32xf32>
    %503 = arith.addf %501, %502 : vector<4x32xf32>
    %504 = math.tanh %503 : vector<4x32xf32>
    %505 = arith.mulf %500, %504 : vector<4x32xf32>
    %506 = arith.index_cast %c1_i32_219 : i32 to index
    %c0_235 = arith.constant 0 : index
    %c0_236 = arith.constant 0 : index
    %507 = vector.load %arg22[%506, %c0_235, %c0_236] : memref<8x4x32xf32, #tpu.memory_space<vmem>>, vector<1x4x32xf32>
    %508 = vector.shape_cast %507 : vector<1x4x32xf32> to vector<4x32xf32>
    %509 = vector.shape_cast %505 : vector<4x32xf32> to vector<1x4x32xf32>
    tpu.vector_store %arg22[%506, %c0_235, %c0_236], %509 {strides = array<i32>} : memref<8x4x32xf32, #tpu.memory_space<vmem>>, vector<1x4x32xf32>,
    %c2_i32_237 = arith.constant 2 : i32
    %510 = arith.index_cast %c2_i32_237 : i32 to index
    %c0_238 = arith.constant 0 : index
    %c0_239 = arith.constant 0 : index
    %511 = vector.load %arg18[%510, %c0_238, %c0_239] : memref<8x4x32xf32, #tpu.memory_space<vmem>>, vector<1x4x32xf32>
    %512 = vector.shape_cast %511 : vector<1x4x32xf32> to vector<4x32xf32>
    %cst_240 = arith.constant dense<0.000000e+00> : vector<4x32xf32>
    %513 = tpu.matmul %505, %412, %cst_240 {dimension_numbers = #tpu.dot_dimension_numbers<[1], [0], [0], [1], [0, 0, 1, 1], [], []>} : vector<4x32xf32>, vector<32x32xf32>, vector<4x32xf32> -> vector<4x32xf32>
    %514 = arith.addf %512, %513 : vector<4x32xf32>
    %515 = arith.negf %514 : vector<4x32xf32>
    %516 = math.exp %515 : vector<4x32xf32>
    %cst_241 = arith.constant 1.000000e+00 : f32
    %517 = vector.broadcast %cst_241 : f32 to vector<4x32xf32>
    %518 = arith.addf %517, %516 : vector<4x32xf32>
    %519 = arith.divf %517, %518 : vector<4x32xf32>
    %520 = arith.index_cast %c2_i32_237 : i32 to index
    %c0_242 = arith.constant 0 : index
    %c0_243 = arith.constant 0 : index
    %521 = vector.load %arg19[%520, %c0_242, %c0_243] : memref<8x4x32xf32, #tpu.memory_space<vmem>>, vector<1x4x32xf32>
    %522 = vector.shape_cast %521 : vector<1x4x32xf32> to vector<4x32xf32>
    %cst_244 = arith.constant dense<0.000000e+00> : vector<4x32xf32>
    %523 = tpu.matmul %505, %414, %cst_244 {dimension_numbers = #tpu.dot_dimension_numbers<[1], [0], [0], [1], [0, 0, 1, 1], [], []>} : vector<4x32xf32>, vector<32x32xf32>, vector<4x32xf32> -> vector<4x32xf32>
    %524 = arith.addf %522, %523 : vector<4x32xf32>
    %525 = arith.negf %524 : vector<4x32xf32>
    %526 = math.exp %525 : vector<4x32xf32>
    %cst_245 = arith.constant 1.000000e+00 : f32
    %527 = vector.broadcast %cst_245 : f32 to vector<4x32xf32>
    %528 = arith.addf %527, %526 : vector<4x32xf32>
    %529 = arith.divf %527, %528 : vector<4x32xf32>
    %530 = arith.index_cast %c2_i32_237 : i32 to index
    %c0_246 = arith.constant 0 : index
    %c0_247 = arith.constant 0 : index
    %531 = vector.load %arg20[%530, %c0_246, %c0_247] : memref<8x4x32xf32, #tpu.memory_space<vmem>>, vector<1x4x32xf32>
    %532 = vector.shape_cast %531 : vector<1x4x32xf32> to vector<4x32xf32>
    %cst_248 = arith.constant dense<0.000000e+00> : vector<4x32xf32>
    %533 = tpu.matmul %505, %416, %cst_248 {dimension_numbers = #tpu.dot_dimension_numbers<[1], [0], [0], [1], [0, 0, 1, 1], [], []>} : vector<4x32xf32>, vector<32x32xf32>, vector<4x32xf32> -> vector<4x32xf32>
    %534 = arith.addf %532, %533 : vector<4x32xf32>
    %535 = math.tanh %534 : vector<4x32xf32>
    %536 = arith.index_cast %c2_i32_237 : i32 to index
    %c0_249 = arith.constant 0 : index
    %c0_250 = arith.constant 0 : index
    %537 = vector.load %arg21[%536, %c0_249, %c0_250] : memref<8x4x32xf32, #tpu.memory_space<vmem>>, vector<1x4x32xf32>
    %538 = vector.shape_cast %537 : vector<1x4x32xf32> to vector<4x32xf32>
    %cst_251 = arith.constant dense<0.000000e+00> : vector<4x32xf32>
    %539 = tpu.matmul %505, %418, %cst_251 {dimension_numbers = #tpu.dot_dimension_numbers<[1], [0], [0], [1], [0, 0, 1, 1], [], []>} : vector<4x32xf32>, vector<32x32xf32>, vector<4x32xf32> -> vector<4x32xf32>
    %540 = arith.addf %538, %539 : vector<4x32xf32>
    %541 = arith.negf %540 : vector<4x32xf32>
    %542 = math.exp %541 : vector<4x32xf32>
    %cst_252 = arith.constant 1.000000e+00 : f32
    %543 = vector.broadcast %cst_252 : f32 to vector<4x32xf32>
    %544 = arith.addf %543, %542 : vector<4x32xf32>
    %545 = arith.divf %543, %544 : vector<4x32xf32>
    %546 = arith.mulf %529, %503 : vector<4x32xf32>
    %547 = arith.mulf %519, %535 : vector<4x32xf32>
    %548 = arith.addf %546, %547 : vector<4x32xf32>
    %549 = math.tanh %548 : vector<4x32xf32>
    %550 = arith.mulf %545, %549 : vector<4x32xf32>
    %551 = arith.index_cast %c2_i32_237 : i32 to index
    %c0_253 = arith.constant 0 : index
    %c0_254 = arith.constant 0 : index
    %552 = vector.load %arg22[%551, %c0_253, %c0_254] : memref<8x4x32xf32, #tpu.memory_space<vmem>>, vector<1x4x32xf32>
    %553 = vector.shape_cast %552 : vector<1x4x32xf32> to vector<4x32xf32>
    %554 = vector.shape_cast %550 : vector<4x32xf32> to vector<1x4x32xf32>
    tpu.vector_store %arg22[%551, %c0_253, %c0_254], %554 {strides = array<i32>} : memref<8x4x32xf32, #tpu.memory_space<vmem>>, vector<1x4x32xf32>,
    %c3_i32_255 = arith.constant 3 : i32
    %555 = arith.index_cast %c3_i32_255 : i32 to index
    %c0_256 = arith.constant 0 : index
    %c0_257 = arith.constant 0 : index
    %556 = vector.load %arg18[%555, %c0_256, %c0_257] : memref<8x4x32xf32, #tpu.memory_space<vmem>>, vector<1x4x32xf32>
    %557 = vector.shape_cast %556 : vector<1x4x32xf32> to vector<4x32xf32>
    %cst_258 = arith.constant dense<0.000000e+00> : vector<4x32xf32>
    %558 = tpu.matmul %550, %412, %cst_258 {dimension_numbers = #tpu.dot_dimension_numbers<[1], [0], [0], [1], [0, 0, 1, 1], [], []>} : vector<4x32xf32>, vector<32x32xf32>, vector<4x32xf32> -> vector<4x32xf32>
    %559 = arith.addf %557, %558 : vector<4x32xf32>
    %560 = arith.negf %559 : vector<4x32xf32>
    %561 = math.exp %560 : vector<4x32xf32>
    %cst_259 = arith.constant 1.000000e+00 : f32
    %562 = vector.broadcast %cst_259 : f32 to vector<4x32xf32>
    %563 = arith.addf %562, %561 : vector<4x32xf32>
    %564 = arith.divf %562, %563 : vector<4x32xf32>
    %565 = arith.index_cast %c3_i32_255 : i32 to index
    %c0_260 = arith.constant 0 : index
    %c0_261 = arith.constant 0 : index
    %566 = vector.load %arg19[%565, %c0_260, %c0_261] : memref<8x4x32xf32, #tpu.memory_space<vmem>>, vector<1x4x32xf32>
    %567 = vector.shape_cast %566 : vector<1x4x32xf32> to vector<4x32xf32>
    %cst_262 = arith.constant dense<0.000000e+00> : vector<4x32xf32>
    %568 = tpu.matmul %550, %414, %cst_262 {dimension_numbers = #tpu.dot_dimension_numbers<[1], [0], [0], [1], [0, 0, 1, 1], [], []>} : vector<4x32xf32>, vector<32x32xf32>, vector<4x32xf32> -> vector<4x32xf32>
    %569 = arith.addf %567, %568 : vector<4x32xf32>
    %570 = arith.negf %569 : vector<4x32xf32>
    %571 = math.exp %570 : vector<4x32xf32>
    %cst_263 = arith.constant 1.000000e+00 : f32
    %572 = vector.broadcast %cst_263 : f32 to vector<4x32xf32>
    %573 = arith.addf %572, %571 : vector<4x32xf32>
    %574 = arith.divf %572, %573 : vector<4x32xf32>
    %575 = arith.index_cast %c3_i32_255 : i32 to index
    %c0_264 = arith.constant 0 : index
    %c0_265 = arith.constant 0 : index
    %576 = vector.load %arg20[%575, %c0_264, %c0_265] : memref<8x4x32xf32, #tpu.memory_space<vmem>>, vector<1x4x32xf32>
    %577 = vector.shape_cast %576 : vector<1x4x32xf32> to vector<4x32xf32>
    %cst_266 = arith.constant dense<0.000000e+00> : vector<4x32xf32>
    %578 = tpu.matmul %550, %416, %cst_266 {dimension_numbers = #tpu.dot_dimension_numbers<[1], [0], [0], [1], [0, 0, 1, 1], [], []>} : vector<4x32xf32>, vector<32x32xf32>, vector<4x32xf32> -> vector<4x32xf32>
    %579 = arith.addf %577, %578 : vector<4x32xf32>
    %580 = math.tanh %579 : vector<4x32xf32>
    %581 = arith.index_cast %c3_i32_255 : i32 to index
    %c0_267 = arith.constant 0 : index
    %c0_268 = arith.constant 0 : index
    %582 = vector.load %arg21[%581, %c0_267, %c0_268] : memref<8x4x32xf32, #tpu.memory_space<vmem>>, vector<1x4x32xf32>
    %583 = vector.shape_cast %582 : vector<1x4x32xf32> to vector<4x32xf32>
    %cst_269 = arith.constant dense<0.000000e+00> : vector<4x32xf32>
    %584 = tpu.matmul %550, %418, %cst_269 {dimension_numbers = #tpu.dot_dimension_numbers<[1], [0], [0], [1], [0, 0, 1, 1], [], []>} : vector<4x32xf32>, vector<32x32xf32>, vector<4x32xf32> -> vector<4x32xf32>
    %585 = arith.addf %583, %584 : vector<4x32xf32>
    %586 = arith.negf %585 : vector<4x32xf32>
    %587 = math.exp %586 : vector<4x32xf32>
    %cst_270 = arith.constant 1.000000e+00 : f32
    %588 = vector.broadcast %cst_270 : f32 to vector<4x32xf32>
    %589 = arith.addf %588, %587 : vector<4x32xf32>
    %590 = arith.divf %588, %589 : vector<4x32xf32>
    %591 = arith.mulf %574, %548 : vector<4x32xf32>
    %592 = arith.mulf %564, %580 : vector<4x32xf32>
    %593 = arith.addf %591, %592 : vector<4x32xf32>
    %594 = math.tanh %593 : vector<4x32xf32>
    %595 = arith.mulf %590, %594 : vector<4x32xf32>
    %596 = arith.index_cast %c3_i32_255 : i32 to index
    %c0_271 = arith.constant 0 : index
    %c0_272 = arith.constant 0 : index
    %597 = vector.load %arg22[%596, %c0_271, %c0_272] : memref<8x4x32xf32, #tpu.memory_space<vmem>>, vector<1x4x32xf32>
    %598 = vector.shape_cast %597 : vector<1x4x32xf32> to vector<4x32xf32>
    %599 = vector.shape_cast %595 : vector<4x32xf32> to vector<1x4x32xf32>
    tpu.vector_store %arg22[%596, %c0_271, %c0_272], %599 {strides = array<i32>} : memref<8x4x32xf32, #tpu.memory_space<vmem>>, vector<1x4x32xf32>,
    %c4_i32_273 = arith.constant 4 : i32
    %600 = arith.index_cast %c4_i32_273 : i32 to index
    %c0_274 = arith.constant 0 : index
    %c0_275 = arith.constant 0 : index
    %601 = vector.load %arg18[%600, %c0_274, %c0_275] : memref<8x4x32xf32, #tpu.memory_space<vmem>>, vector<1x4x32xf32>
    %602 = vector.shape_cast %601 : vector<1x4x32xf32> to vector<4x32xf32>
    %cst_276 = arith.constant dense<0.000000e+00> : vector<4x32xf32>
    %603 = tpu.matmul %595, %412, %cst_276 {dimension_numbers = #tpu.dot_dimension_numbers<[1], [0], [0], [1], [0, 0, 1, 1], [], []>} : vector<4x32xf32>, vector<32x32xf32>, vector<4x32xf32> -> vector<4x32xf32>
    %604 = arith.addf %602, %603 : vector<4x32xf32>
    %605 = arith.negf %604 : vector<4x32xf32>
    %606 = math.exp %605 : vector<4x32xf32>
    %cst_277 = arith.constant 1.000000e+00 : f32
    %607 = vector.broadcast %cst_277 : f32 to vector<4x32xf32>
    %608 = arith.addf %607, %606 : vector<4x32xf32>
    %609 = arith.divf %607, %608 : vector<4x32xf32>
    %610 = arith.index_cast %c4_i32_273 : i32 to index
    %c0_278 = arith.constant 0 : index
    %c0_279 = arith.constant 0 : index
    %611 = vector.load %arg19[%610, %c0_278, %c0_279] : memref<8x4x32xf32, #tpu.memory_space<vmem>>, vector<1x4x32xf32>
    %612 = vector.shape_cast %611 : vector<1x4x32xf32> to vector<4x32xf32>
    %cst_280 = arith.constant dense<0.000000e+00> : vector<4x32xf32>
    %613 = tpu.matmul %595, %414, %cst_280 {dimension_numbers = #tpu.dot_dimension_numbers<[1], [0], [0], [1], [0, 0, 1, 1], [], []>} : vector<4x32xf32>, vector<32x32xf32>, vector<4x32xf32> -> vector<4x32xf32>
    %614 = arith.addf %612, %613 : vector<4x32xf32>
    %615 = arith.negf %614 : vector<4x32xf32>
    %616 = math.exp %615 : vector<4x32xf32>
    %cst_281 = arith.constant 1.000000e+00 : f32
    %617 = vector.broadcast %cst_281 : f32 to vector<4x32xf32>
    %618 = arith.addf %617, %616 : vector<4x32xf32>
    %619 = arith.divf %617, %618 : vector<4x32xf32>
    %620 = arith.index_cast %c4_i32_273 : i32 to index
    %c0_282 = arith.constant 0 : index
    %c0_283 = arith.constant 0 : index
    %621 = vector.load %arg20[%620, %c0_282, %c0_283] : memref<8x4x32xf32, #tpu.memory_space<vmem>>, vector<1x4x32xf32>
    %622 = vector.shape_cast %621 : vector<1x4x32xf32> to vector<4x32xf32>
    %cst_284 = arith.constant dense<0.000000e+00> : vector<4x32xf32>
    %623 = tpu.matmul %595, %416, %cst_284 {dimension_numbers = #tpu.dot_dimension_numbers<[1], [0], [0], [1], [0, 0, 1, 1], [], []>} : vector<4x32xf32>, vector<32x32xf32>, vector<4x32xf32> -> vector<4x32xf32>
    %624 = arith.addf %622, %623 : vector<4x32xf32>
    %625 = math.tanh %624 : vector<4x32xf32>
    %626 = arith.index_cast %c4_i32_273 : i32 to index
    %c0_285 = arith.constant 0 : index
    %c0_286 = arith.constant 0 : index
    %627 = vector.load %arg21[%626, %c0_285, %c0_286] : memref<8x4x32xf32, #tpu.memory_space<vmem>>, vector<1x4x32xf32>
    %628 = vector.shape_cast %627 : vector<1x4x32xf32> to vector<4x32xf32>
    %cst_287 = arith.constant dense<0.000000e+00> : vector<4x32xf32>
    %629 = tpu.matmul %595, %418, %cst_287 {dimension_numbers = #tpu.dot_dimension_numbers<[1], [0], [0], [1], [0, 0, 1, 1], [], []>} : vector<4x32xf32>, vector<32x32xf32>, vector<4x32xf32> -> vector<4x32xf32>
    %630 = arith.addf %628, %629 : vector<4x32xf32>
    %631 = arith.negf %630 : vector<4x32xf32>
    %632 = math.exp %631 : vector<4x32xf32>
    %cst_288 = arith.constant 1.000000e+00 : f32
    %633 = vector.broadcast %cst_288 : f32 to vector<4x32xf32>
    %634 = arith.addf %633, %632 : vector<4x32xf32>
    %635 = arith.divf %633, %634 : vector<4x32xf32>
    %636 = arith.mulf %619, %593 : vector<4x32xf32>
    %637 = arith.mulf %609, %625 : vector<4x32xf32>
    %638 = arith.addf %636, %637 : vector<4x32xf32>
    %639 = math.tanh %638 : vector<4x32xf32>
    %640 = arith.mulf %635, %639 : vector<4x32xf32>
    %641 = arith.index_cast %c4_i32_273 : i32 to index
    %c0_289 = arith.constant 0 : index
    %c0_290 = arith.constant 0 : index
    %642 = vector.load %arg22[%641, %c0_289, %c0_290] : memref<8x4x32xf32, #tpu.memory_space<vmem>>, vector<1x4x32xf32>
    %643 = vector.shape_cast %642 : vector<1x4x32xf32> to vector<4x32xf32>
    %644 = vector.shape_cast %640 : vector<4x32xf32> to vector<1x4x32xf32>
    tpu.vector_store %arg22[%641, %c0_289, %c0_290], %644 {strides = array<i32>} : memref<8x4x32xf32, #tpu.memory_space<vmem>>, vector<1x4x32xf32>,
    %c5_i32_291 = arith.constant 5 : i32
    %645 = arith.index_cast %c5_i32_291 : i32 to index
    %c0_292 = arith.constant 0 : index
    %c0_293 = arith.constant 0 : index
    %646 = vector.load %arg18[%645, %c0_292, %c0_293] : memref<8x4x32xf32, #tpu.memory_space<vmem>>, vector<1x4x32xf32>
    %647 = vector.shape_cast %646 : vector<1x4x32xf32> to vector<4x32xf32>
    %cst_294 = arith.constant dense<0.000000e+00> : vector<4x32xf32>
    %648 = tpu.matmul %640, %412, %cst_294 {dimension_numbers = #tpu.dot_dimension_numbers<[1], [0], [0], [1], [0, 0, 1, 1], [], []>} : vector<4x32xf32>, vector<32x32xf32>, vector<4x32xf32> -> vector<4x32xf32>
    %649 = arith.addf %647, %648 : vector<4x32xf32>
    %650 = arith.negf %649 : vector<4x32xf32>
    %651 = math.exp %650 : vector<4x32xf32>
    %cst_295 = arith.constant 1.000000e+00 : f32
    %652 = vector.broadcast %cst_295 : f32 to vector<4x32xf32>
    %653 = arith.addf %652, %651 : vector<4x32xf32>
    %654 = arith.divf %652, %653 : vector<4x32xf32>
    %655 = arith.index_cast %c5_i32_291 : i32 to index
    %c0_296 = arith.constant 0 : index
    %c0_297 = arith.constant 0 : index
    %656 = vector.load %arg19[%655, %c0_296, %c0_297] : memref<8x4x32xf32, #tpu.memory_space<vmem>>, vector<1x4x32xf32>
    %657 = vector.shape_cast %656 : vector<1x4x32xf32> to vector<4x32xf32>
    %cst_298 = arith.constant dense<0.000000e+00> : vector<4x32xf32>
    %658 = tpu.matmul %640, %414, %cst_298 {dimension_numbers = #tpu.dot_dimension_numbers<[1], [0], [0], [1], [0, 0, 1, 1], [], []>} : vector<4x32xf32>, vector<32x32xf32>, vector<4x32xf32> -> vector<4x32xf32>
    %659 = arith.addf %657, %658 : vector<4x32xf32>
    %660 = arith.negf %659 : vector<4x32xf32>
    %661 = math.exp %660 : vector<4x32xf32>
    %cst_299 = arith.constant 1.000000e+00 : f32
    %662 = vector.broadcast %cst_299 : f32 to vector<4x32xf32>
    %663 = arith.addf %662, %661 : vector<4x32xf32>
    %664 = arith.divf %662, %663 : vector<4x32xf32>
    %665 = arith.index_cast %c5_i32_291 : i32 to index
    %c0_300 = arith.constant 0 : index
    %c0_301 = arith.constant 0 : index
    %666 = vector.load %arg20[%665, %c0_300, %c0_301] : memref<8x4x32xf32, #tpu.memory_space<vmem>>, vector<1x4x32xf32>
    %667 = vector.shape_cast %666 : vector<1x4x32xf32> to vector<4x32xf32>
    %cst_302 = arith.constant dense<0.000000e+00> : vector<4x32xf32>
    %668 = tpu.matmul %640, %416, %cst_302 {dimension_numbers = #tpu.dot_dimension_numbers<[1], [0], [0], [1], [0, 0, 1, 1], [], []>} : vector<4x32xf32>, vector<32x32xf32>, vector<4x32xf32> -> vector<4x32xf32>
    %669 = arith.addf %667, %668 : vector<4x32xf32>
    %670 = math.tanh %669 : vector<4x32xf32>
    %671 = arith.index_cast %c5_i32_291 : i32 to index
    %c0_303 = arith.constant 0 : index
    %c0_304 = arith.constant 0 : index
    %672 = vector.load %arg21[%671, %c0_303, %c0_304] : memref<8x4x32xf32, #tpu.memory_space<vmem>>, vector<1x4x32xf32>
    %673 = vector.shape_cast %672 : vector<1x4x32xf32> to vector<4x32xf32>
    %cst_305 = arith.constant dense<0.000000e+00> : vector<4x32xf32>
    %674 = tpu.matmul %640, %418, %cst_305 {dimension_numbers = #tpu.dot_dimension_numbers<[1], [0], [0], [1], [0, 0, 1, 1], [], []>} : vector<4x32xf32>, vector<32x32xf32>, vector<4x32xf32> -> vector<4x32xf32>
    %675 = arith.addf %673, %674 : vector<4x32xf32>
    %676 = arith.negf %675 : vector<4x32xf32>
    %677 = math.exp %676 : vector<4x32xf32>
    %cst_306 = arith.constant 1.000000e+00 : f32
    %678 = vector.broadcast %cst_306 : f32 to vector<4x32xf32>
    %679 = arith.addf %678, %677 : vector<4x32xf32>
    %680 = arith.divf %678, %679 : vector<4x32xf32>
    %681 = arith.mulf %664, %638 : vector<4x32xf32>
    %682 = arith.mulf %654, %670 : vector<4x32xf32>
    %683 = arith.addf %681, %682 : vector<4x32xf32>
    %684 = math.tanh %683 : vector<4x32xf32>
    %685 = arith.mulf %680, %684 : vector<4x32xf32>
    %686 = arith.index_cast %c5_i32_291 : i32 to index
    %c0_307 = arith.constant 0 : index
    %c0_308 = arith.constant 0 : index
    %687 = vector.load %arg22[%686, %c0_307, %c0_308] : memref<8x4x32xf32, #tpu.memory_space<vmem>>, vector<1x4x32xf32>
    %688 = vector.shape_cast %687 : vector<1x4x32xf32> to vector<4x32xf32>
    %689 = vector.shape_cast %685 : vector<4x32xf32> to vector<1x4x32xf32>
    tpu.vector_store %arg22[%686, %c0_307, %c0_308], %689 {strides = array<i32>} : memref<8x4x32xf32, #tpu.memory_space<vmem>>, vector<1x4x32xf32>,
    %c6_i32_309 = arith.constant 6 : i32
    %690 = arith.index_cast %c6_i32_309 : i32 to index
    %c0_310 = arith.constant 0 : index
    %c0_311 = arith.constant 0 : index
    %691 = vector.load %arg18[%690, %c0_310, %c0_311] : memref<8x4x32xf32, #tpu.memory_space<vmem>>, vector<1x4x32xf32>
    %692 = vector.shape_cast %691 : vector<1x4x32xf32> to vector<4x32xf32>
    %cst_312 = arith.constant dense<0.000000e+00> : vector<4x32xf32>
    %693 = tpu.matmul %685, %412, %cst_312 {dimension_numbers = #tpu.dot_dimension_numbers<[1], [0], [0], [1], [0, 0, 1, 1], [], []>} : vector<4x32xf32>, vector<32x32xf32>, vector<4x32xf32> -> vector<4x32xf32>
    %694 = arith.addf %692, %693 : vector<4x32xf32>
    %695 = arith.negf %694 : vector<4x32xf32>
    %696 = math.exp %695 : vector<4x32xf32>
    %cst_313 = arith.constant 1.000000e+00 : f32
    %697 = vector.broadcast %cst_313 : f32 to vector<4x32xf32>
    %698 = arith.addf %697, %696 : vector<4x32xf32>
    %699 = arith.divf %697, %698 : vector<4x32xf32>
    %700 = arith.index_cast %c6_i32_309 : i32 to index
    %c0_314 = arith.constant 0 : index
    %c0_315 = arith.constant 0 : index
    %701 = vector.load %arg19[%700, %c0_314, %c0_315] : memref<8x4x32xf32, #tpu.memory_space<vmem>>, vector<1x4x32xf32>
    %702 = vector.shape_cast %701 : vector<1x4x32xf32> to vector<4x32xf32>
    %cst_316 = arith.constant dense<0.000000e+00> : vector<4x32xf32>
    %703 = tpu.matmul %685, %414, %cst_316 {dimension_numbers = #tpu.dot_dimension_numbers<[1], [0], [0], [1], [0, 0, 1, 1], [], []>} : vector<4x32xf32>, vector<32x32xf32>, vector<4x32xf32> -> vector<4x32xf32>
    %704 = arith.addf %702, %703 : vector<4x32xf32>
    %705 = arith.negf %704 : vector<4x32xf32>
    %706 = math.exp %705 : vector<4x32xf32>
    %cst_317 = arith.constant 1.000000e+00 : f32
    %707 = vector.broadcast %cst_317 : f32 to vector<4x32xf32>
    %708 = arith.addf %707, %706 : vector<4x32xf32>
    %709 = arith.divf %707, %708 : vector<4x32xf32>
    %710 = arith.index_cast %c6_i32_309 : i32 to index
    %c0_318 = arith.constant 0 : index
    %c0_319 = arith.constant 0 : index
    %711 = vector.load %arg20[%710, %c0_318, %c0_319] : memref<8x4x32xf32, #tpu.memory_space<vmem>>, vector<1x4x32xf32>
    %712 = vector.shape_cast %711 : vector<1x4x32xf32> to vector<4x32xf32>
    %cst_320 = arith.constant dense<0.000000e+00> : vector<4x32xf32>
    %713 = tpu.matmul %685, %416, %cst_320 {dimension_numbers = #tpu.dot_dimension_numbers<[1], [0], [0], [1], [0, 0, 1, 1], [], []>} : vector<4x32xf32>, vector<32x32xf32>, vector<4x32xf32> -> vector<4x32xf32>
    %714 = arith.addf %712, %713 : vector<4x32xf32>
    %715 = math.tanh %714 : vector<4x32xf32>
    %716 = arith.index_cast %c6_i32_309 : i32 to index
    %c0_321 = arith.constant 0 : index
    %c0_322 = arith.constant 0 : index
    %717 = vector.load %arg21[%716, %c0_321, %c0_322] : memref<8x4x32xf32, #tpu.memory_space<vmem>>, vector<1x4x32xf32>
    %718 = vector.shape_cast %717 : vector<1x4x32xf32> to vector<4x32xf32>
    %cst_323 = arith.constant dense<0.000000e+00> : vector<4x32xf32>
    %719 = tpu.matmul %685, %418, %cst_323 {dimension_numbers = #tpu.dot_dimension_numbers<[1], [0], [0], [1], [0, 0, 1, 1], [], []>} : vector<4x32xf32>, vector<32x32xf32>, vector<4x32xf32> -> vector<4x32xf32>
    %720 = arith.addf %718, %719 : vector<4x32xf32>
    %721 = arith.negf %720 : vector<4x32xf32>
    %722 = math.exp %721 : vector<4x32xf32>
    %cst_324 = arith.constant 1.000000e+00 : f32
    %723 = vector.broadcast %cst_324 : f32 to vector<4x32xf32>
    %724 = arith.addf %723, %722 : vector<4x32xf32>
    %725 = arith.divf %723, %724 : vector<4x32xf32>
    %726 = arith.mulf %709, %683 : vector<4x32xf32>
    %727 = arith.mulf %699, %715 : vector<4x32xf32>
    %728 = arith.addf %726, %727 : vector<4x32xf32>
    %729 = math.tanh %728 : vector<4x32xf32>
    %730 = arith.mulf %725, %729 : vector<4x32xf32>
    %731 = arith.index_cast %c6_i32_309 : i32 to index
    %c0_325 = arith.constant 0 : index
    %c0_326 = arith.constant 0 : index
    %732 = vector.load %arg22[%731, %c0_325, %c0_326] : memref<8x4x32xf32, #tpu.memory_space<vmem>>, vector<1x4x32xf32>
    %733 = vector.shape_cast %732 : vector<1x4x32xf32> to vector<4x32xf32>
    %734 = vector.shape_cast %730 : vector<4x32xf32> to vector<1x4x32xf32>
    tpu.vector_store %arg22[%731, %c0_325, %c0_326], %734 {strides = array<i32>} : memref<8x4x32xf32, #tpu.memory_space<vmem>>, vector<1x4x32xf32>,
    %c7_i32_327 = arith.constant 7 : i32
    %735 = arith.index_cast %c7_i32_327 : i32 to index
    %c0_328 = arith.constant 0 : index
    %c0_329 = arith.constant 0 : index
    %736 = vector.load %arg18[%735, %c0_328, %c0_329] : memref<8x4x32xf32, #tpu.memory_space<vmem>>, vector<1x4x32xf32>
    %737 = vector.shape_cast %736 : vector<1x4x32xf32> to vector<4x32xf32>
    %cst_330 = arith.constant dense<0.000000e+00> : vector<4x32xf32>
    %738 = tpu.matmul %730, %412, %cst_330 {dimension_numbers = #tpu.dot_dimension_numbers<[1], [0], [0], [1], [0, 0, 1, 1], [], []>} : vector<4x32xf32>, vector<32x32xf32>, vector<4x32xf32> -> vector<4x32xf32>
    %739 = arith.addf %737, %738 : vector<4x32xf32>
    %740 = arith.negf %739 : vector<4x32xf32>
    %741 = math.exp %740 : vector<4x32xf32>
    %cst_331 = arith.constant 1.000000e+00 : f32
    %742 = vector.broadcast %cst_331 : f32 to vector<4x32xf32>
    %743 = arith.addf %742, %741 : vector<4x32xf32>
    %744 = arith.divf %742, %743 : vector<4x32xf32>
    %745 = arith.index_cast %c7_i32_327 : i32 to index
    %c0_332 = arith.constant 0 : index
    %c0_333 = arith.constant 0 : index
    %746 = vector.load %arg19[%745, %c0_332, %c0_333] : memref<8x4x32xf32, #tpu.memory_space<vmem>>, vector<1x4x32xf32>
    %747 = vector.shape_cast %746 : vector<1x4x32xf32> to vector<4x32xf32>
    %cst_334 = arith.constant dense<0.000000e+00> : vector<4x32xf32>
    %748 = tpu.matmul %730, %414, %cst_334 {dimension_numbers = #tpu.dot_dimension_numbers<[1], [0], [0], [1], [0, 0, 1, 1], [], []>} : vector<4x32xf32>, vector<32x32xf32>, vector<4x32xf32> -> vector<4x32xf32>
    %749 = arith.addf %747, %748 : vector<4x32xf32>
    %750 = arith.negf %749 : vector<4x32xf32>
    %751 = math.exp %750 : vector<4x32xf32>
    %cst_335 = arith.constant 1.000000e+00 : f32
    %752 = vector.broadcast %cst_335 : f32 to vector<4x32xf32>
    %753 = arith.addf %752, %751 : vector<4x32xf32>
    %754 = arith.divf %752, %753 : vector<4x32xf32>
    %755 = arith.index_cast %c7_i32_327 : i32 to index
    %c0_336 = arith.constant 0 : index
    %c0_337 = arith.constant 0 : index
    %756 = vector.load %arg20[%755, %c0_336, %c0_337] : memref<8x4x32xf32, #tpu.memory_space<vmem>>, vector<1x4x32xf32>
    %757 = vector.shape_cast %756 : vector<1x4x32xf32> to vector<4x32xf32>
    %cst_338 = arith.constant dense<0.000000e+00> : vector<4x32xf32>
    %758 = tpu.matmul %730, %416, %cst_338 {dimension_numbers = #tpu.dot_dimension_numbers<[1], [0], [0], [1], [0, 0, 1, 1], [], []>} : vector<4x32xf32>, vector<32x32xf32>, vector<4x32xf32> -> vector<4x32xf32>
    %759 = arith.addf %757, %758 : vector<4x32xf32>
    %760 = math.tanh %759 : vector<4x32xf32>
    %761 = arith.index_cast %c7_i32_327 : i32 to index
    %c0_339 = arith.constant 0 : index
    %c0_340 = arith.constant 0 : index
    %762 = vector.load %arg21[%761, %c0_339, %c0_340] : memref<8x4x32xf32, #tpu.memory_space<vmem>>, vector<1x4x32xf32>
    %763 = vector.shape_cast %762 : vector<1x4x32xf32> to vector<4x32xf32>
    %cst_341 = arith.constant dense<0.000000e+00> : vector<4x32xf32>
    %764 = tpu.matmul %730, %418, %cst_341 {dimension_numbers = #tpu.dot_dimension_numbers<[1], [0], [0], [1], [0, 0, 1, 1], [], []>} : vector<4x32xf32>, vector<32x32xf32>, vector<4x32xf32> -> vector<4x32xf32>
    %765 = arith.addf %763, %764 : vector<4x32xf32>
    %766 = arith.negf %765 : vector<4x32xf32>
    %767 = math.exp %766 : vector<4x32xf32>
    %cst_342 = arith.constant 1.000000e+00 : f32
    %768 = vector.broadcast %cst_342 : f32 to vector<4x32xf32>
    %769 = arith.addf %768, %767 : vector<4x32xf32>
    %770 = arith.divf %768, %769 : vector<4x32xf32>
    %771 = arith.mulf %754, %728 : vector<4x32xf32>
    %772 = arith.mulf %744, %760 : vector<4x32xf32>
    %773 = arith.addf %771, %772 : vector<4x32xf32>
    %774 = math.tanh %773 : vector<4x32xf32>
    %775 = arith.mulf %770, %774 : vector<4x32xf32>
    %776 = arith.index_cast %c7_i32_327 : i32 to index
    %c0_343 = arith.constant 0 : index
    %c0_344 = arith.constant 0 : index
    %777 = vector.load %arg22[%776, %c0_343, %c0_344] : memref<8x4x32xf32, #tpu.memory_space<vmem>>, vector<1x4x32xf32>
    %778 = vector.shape_cast %777 : vector<1x4x32xf32> to vector<4x32xf32>
    %779 = vector.shape_cast %775 : vector<4x32xf32> to vector<1x4x32xf32>
    tpu.vector_store %arg22[%776, %c0_343, %c0_344], %779 {strides = array<i32>} : memref<8x4x32xf32, #tpu.memory_space<vmem>>, vector<1x4x32xf32>,
    %c8_i32_345 = arith.constant 8 : i32
    %c0_346 = arith.constant 0 : index
    %c0_347 = arith.constant 0 : index
    %c0_348 = arith.constant 0 : index
    %780 = vector.load %arg22[%c0_346, %c0_347, %c0_348] : memref<8x4x32xf32, #tpu.memory_space<vmem>>, vector<8x4x32xf32>
    %781 = vector.shape_cast %780 : vector<8x4x32xf32> to vector<32x32xf32>
    %c0_349 = arith.constant 0 : index
    %c0_350 = arith.constant 0 : index
    %c0_351 = arith.constant 0 : index
    %782 = vector.load %arg22[%c0_349, %c0_350, %c0_351] : memref<8x4x32xf32, #tpu.memory_space<vmem>>, vector<8x4x32xf32>
    %c0_352 = arith.constant 0 : index
    %c0_353 = arith.constant 0 : index
    %783 = vector.load %arg10[%c0_352, %c0_353] : memref<32x16xf32, #tpu.memory_space<vmem>>, vector<32x16xf32>
    %cst_354 = arith.constant dense<0.000000e+00> : vector<32x16xf32>
    %784 = tpu.matmul %781, %783, %cst_354 {dimension_numbers = #tpu.dot_dimension_numbers<[1], [0], [0], [1], [0, 0, 1, 1], [], []>} : vector<32x32xf32>, vector<32x16xf32>, vector<32x16xf32> -> vector<32x16xf32>
    %c0_355 = arith.constant 0 : index
    %c0_356 = arith.constant 0 : index
    %785 = vector.load %arg11[%c0_355, %c0_356] : memref<1x16xf32, #tpu.memory_space<vmem>>, vector<1x16xf32>
    %786 = vector.broadcast %785 : vector<1x16xf32> to vector<32x16xf32>
    %787 = arith.addf %784, %786 : vector<32x16xf32>
    %788 = math.tanh %787 : vector<32x16xf32>
    %c0_357 = arith.constant 0 : index
    %c0_358 = arith.constant 0 : index
    %789 = vector.load %arg12[%c0_357, %c0_358] : memref<16x4xf32, #tpu.memory_space<vmem>>, vector<16x4xf32>
    %cst_359 = arith.constant dense<0.000000e+00> : vector<32x4xf32>
    %790 = tpu.matmul %788, %789, %cst_359 {dimension_numbers = #tpu.dot_dimension_numbers<[1], [0], [0], [1], [0, 0, 1, 1], [], []>} : vector<32x16xf32>, vector<16x4xf32>, vector<32x4xf32> -> vector<32x4xf32>
    %c0_360 = arith.constant 0 : index
    %c0_361 = arith.constant 0 : index
    %791 = vector.load %arg13[%c0_360, %c0_361] : memref<1x4xf32, #tpu.memory_space<vmem>>, vector<1x4xf32>
    %792 = vector.broadcast %791 : vector<1x4xf32> to vector<32x4xf32>
    %793 = arith.addf %790, %792 : vector<32x4xf32>
    %794 = vector.shape_cast %793 : vector<32x4xf32> to vector<8x4x4xf32>
    %cst_362 = arith.constant dense<0xFF800000> : vector<4x4xf32>
    %795 = vector.multi_reduction <maximumf>, %794, %cst_362 [0] : vector<8x4x4xf32> to vector<4x4xf32>
    %796 = vector.shape_cast %795 : vector<4x4xf32> to vector<1x4x4xf32>
    %797 = vector.broadcast %796 : vector<1x4x4xf32> to vector<8x4x4xf32>
    %798 = arith.subf %794, %797 : vector<8x4x4xf32>
    %799 = math.exp %798 : vector<8x4x4xf32>
    %cst_363 = arith.constant dense<0.000000e+00> : vector<4x4xf32>
    %800 = vector.multi_reduction <add>, %799, %cst_363 [0] : vector<8x4x4xf32> to vector<4x4xf32>
    %801 = vector.shape_cast %800 : vector<4x4xf32> to vector<1x4x4xf32>
    %802 = tpu.reciprocal %801 {approx = true} : vector<1x4x4xf32> -> vector<1x4x4xf32>
    %803 = vector.broadcast %802 : vector<1x4x4xf32> to vector<8x4x4xf32>
    %804 = arith.mulf %799, %803 : vector<8x4x4xf32>
    %cst_364 = arith.constant dense<0.000000e+00> : vector<8x4xf32>
    %805 = vector.multi_reduction <add>, %804, %cst_364 [2] : vector<8x4x4xf32> to vector<8x4xf32>
    %806 = vector.shape_cast %805 : vector<8x4xf32> to vector<8x4x1xf32>
    %807 = vector.broadcast %806 : vector<8x4x1xf32> to vector<8x4x32xf32>
    %808 = arith.mulf %807, %782 : vector<8x4x32xf32>
    %cst_365 = arith.constant dense<0.000000e+00> : vector<4x32xf32>
    %809 = vector.multi_reduction <add>, %808, %cst_365 [0] : vector<8x4x32xf32> to vector<4x32xf32>
    %c0_366 = arith.constant 0 : index
    %c0_367 = arith.constant 0 : index
    %810 = vector.load %arg14[%c0_366, %c0_367] : memref<32x5xf32, #tpu.memory_space<vmem>>, vector<32x5xf32>
    %cst_368 = arith.constant dense<0.000000e+00> : vector<4x5xf32>
    %811 = tpu.matmul %809, %810, %cst_368 {dimension_numbers = #tpu.dot_dimension_numbers<[1], [0], [0], [1], [0, 0, 1, 1], [], []>} : vector<4x32xf32>, vector<32x5xf32>, vector<4x5xf32> -> vector<4x5xf32>
    %c0_369 = arith.constant 0 : index
    %c0_370 = arith.constant 0 : index
    %812 = vector.load %arg15[%c0_369, %c0_370] : memref<1x5xf32, #tpu.memory_space<vmem>>, vector<1x5xf32>
    %813 = vector.broadcast %812 : vector<1x5xf32> to vector<4x5xf32>
    %814 = arith.addf %811, %813 : vector<4x5xf32>
    %c0_371 = arith.constant 0 : index
    %c0_372 = arith.constant 0 : index
    %815 = vector.load %arg17[%c0_371, %c0_372] : memref<4x5xf32, #tpu.memory_space<vmem>>, vector<4x5xf32>
    tpu.vector_store %arg17[%c0_371, %c0_372], %814 {strides = array<i32>} : memref<4x5xf32, #tpu.memory_space<vmem>>, vector<4x5xf32>,
    %c0_373 = arith.constant 0 : index
    %c0_374 = arith.constant 0 : index
    %c0_375 = arith.constant 0 : index
    %816 = vector.load %arg16[%c0_373, %c0_374, %c0_375] : memref<8x4x4xf32, #tpu.memory_space<vmem>>, vector<8x4x4xf32>
    tpu.vector_store %arg16[%c0_373, %c0_374, %c0_375], %804 {strides = array<i32>} : memref<8x4x4xf32, #tpu.memory_space<vmem>>, vector<8x4x4xf32>,
    return
  }
  func.func @transform_0(%arg0: i32) -> (i32, i32) {
    %c0_i32 = arith.constant 0 : i32
    %c0_i32_0 = arith.constant 0 : i32
    %c0_i32_1 = arith.constant 0 : i32
    return %c0_i32, %c0_i32_0 : i32, i32
  }
  func.func @transform_1(%arg0: i32) -> (i32, i32) {
    %c0_i32 = arith.constant 0 : i32
    %c0_i32_0 = arith.constant 0 : i32
    %c0_i32_1 = arith.constant 0 : i32
    return %c0_i32, %c0_i32_0 : i32, i32
  }
  func.func @transform_2(%arg0: i32) -> (i32, i32) {
    %c0_i32 = arith.constant 0 : i32
    %c0_i32_0 = arith.constant 0 : i32
    %c0_i32_1 = arith.constant 0 : i32
    return %c0_i32, %c0_i32_0 : i32, i32
  }
  func.func @transform_3(%arg0: i32) -> (i32, i32) {
    %c0_i32 = arith.constant 0 : i32
    %c0_i32_0 = arith.constant 0 : i32
    %c0_i32_1 = arith.constant 0 : i32
    return %c0_i32, %c0_i32_0 : i32, i32
  }
  func.func @transform_4(%arg0: i32) -> (i32, i32, i32) {
    %c0_i32 = arith.constant 0 : i32
    %c0_i32_0 = arith.constant 0 : i32
    %c0_i32_1 = arith.constant 0 : i32
    %c0_i32_2 = arith.constant 0 : i32
    return %c0_i32, %c0_i32_0, %c0_i32_1 : i32, i32, i32
  }
  func.func @transform_5(%arg0: i32) -> (i32, i32) {
    %c0_i32 = arith.constant 0 : i32
    %c0_i32_0 = arith.constant 0 : i32
    %c0_i32_1 = arith.constant 0 : i32
    return %c0_i32, %c0_i32_0 : i32, i32
  }
  func.func @transform_6(%arg0: i32) -> (i32, i32) {
    %c0_i32 = arith.constant 0 : i32
    %c0_i32_0 = arith.constant 0 : i32
    %c0_i32_1 = arith.constant 0 : i32
    return %c0_i32, %c0_i32_0 : i32, i32
  }
  func.func @transform_7(%arg0: i32) -> (i32, i32, i32) {
    %c0_i32 = arith.constant 0 : i32
    %c0_i32_0 = arith.constant 0 : i32
    %c0_i32_1 = arith.constant 0 : i32
    %c0_i32_2 = arith.constant 0 : i32
    return %c0_i32, %c0_i32_0, %c0_i32_1 : i32, i32, i32
  }
  func.func @transform_8(%arg0: i32) -> (i32, i32) {
    %c0_i32 = arith.constant 0 : i32
    %c0_i32_0 = arith.constant 0 : i32
    %c0_i32_1 = arith.constant 0 : i32
    return %c0_i32, %c0_i32_0 : i32, i32
  }
  func.func @transform_9(%arg0: i32) -> (i32, i32) {
    %c0_i32 = arith.constant 0 : i32
    %c0_i32_0 = arith.constant 0 : i32
    %c0_i32_1 = arith.constant 0 : i32
    return %c0_i32, %c0_i32_0 : i32, i32
  }
  func.func @transform_10(%arg0: i32) -> (i32, i32) {
    %c0_i32 = arith.constant 0 : i32
    %c0_i32_0 = arith.constant 0 : i32
    %c0_i32_1 = arith.constant 0 : i32
    return %c0_i32, %c0_i32_0 : i32, i32
  }
  func.func @transform_11(%arg0: i32) -> (i32, i32) {
    %c0_i32 = arith.constant 0 : i32
    %c0_i32_0 = arith.constant 0 : i32
    %c0_i32_1 = arith.constant 0 : i32
    return %c0_i32, %c0_i32_0 : i32, i32
  }
  func.func @transform_12(%arg0: i32) -> (i32, i32) {
    %c0_i32 = arith.constant 0 : i32
    %c0_i32_0 = arith.constant 0 : i32
    %c0_i32_1 = arith.constant 0 : i32
    return %c0_i32, %c0_i32_0 : i32, i32
  }
  func.func @transform_13(%arg0: i32) -> (i32, i32) {
    %c0_i32 = arith.constant 0 : i32
    %c0_i32_0 = arith.constant 0 : i32
    %c0_i32_1 = arith.constant 0 : i32
    return %c0_i32, %c0_i32_0 : i32, i32
  }
  func.func @transform_14(%arg0: i32) -> (i32, i32) {
    %c0_i32 = arith.constant 0 : i32
    %c0_i32_0 = arith.constant 0 : i32
    %c0_i32_1 = arith.constant 0 : i32
    return %c0_i32, %c0_i32_0 : i32, i32
  }
  func.func @transform_15(%arg0: i32) -> (i32, i32, i32) {
    %c0_i32 = arith.constant 0 : i32
    %c0_i32_0 = arith.constant 0 : i32
    %c0_i32_1 = arith.constant 0 : i32
    %c0_i32_2 = arith.constant 0 : i32
    return %c0_i32, %c0_i32_0, %c0_i32_1 : i32, i32, i32
  }
  func.func @transform_16(%arg0: i32) -> (i32, i32) {
    %c0_i32 = arith.constant 0 : i32
    %c0_i32_0 = arith.constant 0 : i32
    %c0_i32_1 = arith.constant 0 : i32
    return %c0_i32, %c0_i32_0 : i32, i32
  }
}

</mosaic_0001>

<bundles_post_ra>
// kernel: structured_self_attention_forward.1
= control target key start
LH: loop header
LB: loop body
LE: loop exit
PB: predicated region body
PF: predicated region fallthrough
CT: control target
= control target key end

     0   :  { %s9400_s0 = inlined_call_operand.vmem [shape: f32[32,12], index: 0, kind: input, shape index: {}]   ;;  %s9401_s1 = inlined_call_operand.vmem [shape: f32[12,32], index: 1, kind: input, shape index: {}]   ;;  %s9402_s2 = inlined_call_operand.vmem [shape: f32[1,32], index: 2, kind: input, shape index: {}]   ;;  %s9403_s3 = inlined_call_operand.vmem [shape: f32[32,128], index: 3, kind: input, shape index: {}]   ;;  %s9404_s4 = inlined_call_operand.vmem [shape: f32[4,32,32], index: 4, kind: input, shape index: {}]   ;;  %s9405_s5 = inlined_call_operand.vmem [shape: f32[1,128], index: 5, kind: input, shape index: {}]   ;;  %s9406_s6 = inlined_call_operand.vmem [shape: f32[32,128], index: 6, kind: input, shape index: {}]   ;;  %s9407_s7 = inlined_call_operand.vmem [shape: f32[4,32,32], index: 7, kind: input, shape index: {}]   ;;  %s9408_s8 = inlined_call_operand.vmem [shape: f32[1,128], index: 8, kind: input, shape index: {}]   ;;  %s9409_s9 = inlined_call_operand.vmem [shape: f32[32,16], index: 9, kind: input, shape index: {}]   ;;  %s9410_s10 = inlined_call_operand.vmem [shape: f32[1,16], index: 10, kind: input, shape index: {}]   ;;  %s9411_s11 = inlined_call_operand.vmem [shape: f32[16,4], index: 11, kind: input, shape index: {}]   ;;  %s9412_s12 = inlined_call_operand.vmem [shape: f32[1,4], index: 12, kind: input, shape index: {}]   ;;  %s9413_s13 = inlined_call_operand.vmem [shape: f32[32,5], index: 13, kind: input, shape index: {}]   ;;  %s9414_s14 = inlined_call_operand.vmem [shape: f32[1,5], index: 14, kind: input, shape index: {}]   ;;  %s9415_s15 = inlined_call_operand.vmem [shape: f32[8,4,4], index: 15, kind: output, shape index: {0}]   ;;  %s9416_s16 = inlined_call_operand.hbm [shape: f32[4,5], index: 16, kind: output, shape index: {1}]  }
   0x1   :  { %9418 = sst [smem:[#allocation10_spill]] %s9400_s0 }
   0x2   :  { %v58_v0 = vld [vmem:[%s9401_s1 + $0x8] sm:$0xf]  ;;  %vm79_vm0 = vcmask 1043456   ;;  %v57_v1 = vld [vmem:[%s9401_s1] sm:$0xff]  ;;  %s9419_s27 = sld [smem:[#allocation10_spill]]  ;;  %vm66_vm1 = vcmask 97280  }
   0x3   :  { %6747 = vmatprep.subr.msk.mxu0 %vm79_vm0, %v58_v0  ;;  %v171_v4 = vld [vmem:[%s9403_s3 + $0x18] sm:$0xff] }
   0x4   :  { %6748 = vmatpush3.msk.msra.mxu0 %vm79_vm0, %v58_v0 }
   0x8   :  { %v53_v2 = vld [vmem:[%s9419_s27] sm:$0xff]  ;;  %v54_v3 = vld [vmem:[%s9419_s27 + $0x8] sm:$0xff] }
   0x9   :  { %6751 = vmatprep.mubr.msk.f32.mxu0 %vm66_vm1, %v53_v2 }
   0xa   :  { %22 = vsyncpa [#allocation8], 0  ;;  %6749 = vmatprep.subr.mxu0 %v57_v1  ;;  %v55_v5 = vld [vmem:[%s9419_s27 + $0x10] sm:$0xff]  ;;  %6757 = vmatprep.subr.mxu1 %v171_v4  ;;  %v56_v6 = vld [vmem:[%s9419_s27 + $0x18] sm:$0xff]  ;;  %v7874_v11 = vmov 0.0   ;;  %vm7875_vm2 = vmmov 0  }
   0xb   :  { %6750 = vmatpush3.msra.mxu0 %v57_v1  ;;  %6758 = vmatpush3.msra.mxu1 %v171_v4  ;;  %v170_v7 = vld [vmem:[%s9403_s3 + $0x10] sm:$0xff]  ;;  %v169_v8 = vld [vmem:[%s9403_s3 + $0x8] sm:$0xff]  ;;  %v168_v9 = vld [vmem:[%s9403_s3] sm:$0xff]  ;;  %vm179_vm3 = vcmask 261120   ;;  %vm289_vm4 = vcmask 257024   ;;  %s7876_s27 = smov 32  }
   0xc   :  { %6752 = vmatmul.mubr.msk.f32.vlgmr.msra.gmra.mxu0 %vm66_vm1, %v54_v3  ;;  %6759 = vmatprep.subr.mxu1 %v170_v7  ;;  %v7998_v10 = vld [vmem:[%s9404_s4 + $0x18] sm:$0xff]  ;;  %v8004_v12 = vld [vmem:[%s9404_s4 + $0x10] sm:$0xff]  ;;  %v8014_v13 = vld [vmem:[%s9404_s4 + $0x8] sm:$0xff]  ;;  %s7877_s28 = smov 96   ;;  %vm5897_vm5 = vcmask 130048   ;;  %vm6007_vm6 = vcmask 27648  }
   0xd   :  { %6754 = vmatprep.mubr.msk.f32.mxu0 %vm66_vm1, %v55_v5  ;;  %6760 = vmatpush3.msra.mxu1 %v170_v7  ;;  %v8021_v14 = vld [vmem:[%s9404_s4] sm:$0xff]  ;;  %v8033_v15 = vld [vmem:[%s9404_s4 + $0x58] sm:$0xff]  ;;  %v8040_v16 = vld [vmem:[%s9404_s4 + $0x50] sm:$0xff]  ;;  %vm6202_vm7 = vcmask 35840  }
   0xe   :  { %6761 = vmatprep.subr.mxu1 %v169_v8  ;;  %6771 = vmatprep.subr.mxu0 %v7874_v11  ;;  %v8047_v17 = vld [vmem:[%s9404_s4 + $0x48] sm:$0xff]  ;;  %v8052_v18 = vld [vmem:[%s9404_s4 + $0x40] sm:$0xff]  ;;  %v8075_v25 = vld [vmem:[%s9404_s4 + $0x38] sm:$0xff] }
   0xf   :  { %6762 = vmatpush3.msra.mxu1 %v169_v8  ;;  %6772 = vmatpush3.msra.mxu0 %v7998_v10  ;;  %v6230_v20 = vld [vmem:[%s9402_s2] ss:$0 sm:$0xff]  ;;  %v8082_v28 = vld [vmem:[%s9404_s4 + $0x30] sm:$0xff]  ;;  %v8089_v30 = vld [vmem:[%s9404_s4 + $0x28] sm:$0xff]  ;;  %s7879_s2 = smov [#allocation7]  }
  0x10   :  { %6755 = vmatmul.mubr.msk.f32.gmra.mxu0 %vm66_vm1, %v56_v6  ;;  %6763 = vmatprep.subr.mxu1 %v168_v9  ;;  %v8098_v31 = vld [vmem:[%s9404_s4 + $0x20] sm:$0xff]  ;;  %v8107_v32 = vld [vmem:[%s9404_s4 + $0x78] sm:$0xff]  ;;  %v8115_v33 = vld [vmem:[%s9404_s4 + $0x70] sm:$0xff] }
  0x11   :  { %6764 = vmatpush3.msra.mxu1 %v168_v9  ;;  %6779 = vmatprep.mubr.msk.f32.mxu0 %vm7875_vm2, %v7874_v11  ;;  %v8124_v34 = vld [vmem:[%s9404_s4 + $0x68] sm:$0xff]  ;;  %v8131_v35 = vld [vmem:[%s9404_s4 + $0x60] sm:$0xff] }
  0x12   :  { %6782 = vmatprep.subr.mxu1 %v7874_v11  ;;  %6773 = vmatprep.subr.mxu0 %v7874_v11  ;;  %v6236_v38 = vld [vmem:[%s9405_s5] ss:$0 sm:$0xff]  ;;  %s7878_s5 = smov 64  }
  0x13   :  { %6774 = vmatpush3.msra.mxu0 %v8004_v12 }
  0x14   :  { %6775 = vmatprep.subr.mxu0 %v7874_v11 }
  0x15   :  { %6776 = vmatpush3.msra.mxu0 %v8014_v13 }
  0x16   :  { %6777 = vmatprep.subr.mxu0 %v7874_v11 }
  0x17   :  { %6778 = vmatpush3.msra.mxu0 %v8021_v14 }
  0x18   :  { %6780 = vmatmul.mubr.f32.vlgmr.msra.gmra.mxu0 %v7874_v11  ;;  %6793 = vmatprep.subr.mxu0 %v7874_v11 }
  0x19   :  { %6801 = vmatprep.mubr.msk.f32.mxu0 %vm7875_vm2, %v7874_v11  ;;  %6794 = vmatpush3.msra.mxu0 %v8033_v15 }
  0x1a   :  { %6795 = vmatprep.subr.mxu0 %v7874_v11 }
  0x1b   :  { %6796 = vmatpush3.msra.mxu0 %v8040_v16 }
  0x1c   :  { %6797 = vmatprep.subr.mxu0 %v7874_v11 }
  0x1d   :  { %6798 = vmatpush3.msra.mxu0 %v8047_v17 }
  0x1e   :  { %6799 = vmatprep.subr.mxu0 %v7874_v11 }
  0x1f   :  { %6800 = vmatpush3.msra.mxu0 %v8052_v18 }
  0x20   :  { %6802 = vmatmul.mubr.f32.vlgmr.msra.gmra.mxu0 %v7874_v11  ;;  %6815 = vmatprep.subr.mxu0 %v7874_v11 }
  0x21   :  { %6816 = vmatpush3.msra.mxu0 %v7998_v10  ;;  %6823 = vmatprep.mubr.msk.f32.mxu0 %vm7875_vm2, %v7874_v11 }
  0x22   :  { %6817 = vmatprep.subr.mxu0 %v7874_v11 }
  0x23   :  { %6818 = vmatpush3.msra.mxu0 %v8004_v12 }
  0x24   :  { %6819 = vmatprep.subr.mxu0 %v7874_v11 }
  0x25   :  { %6820 = vmatpush3.msra.mxu0 %v8014_v13 }
  0x26   :  { %6821 = vmatprep.subr.mxu0 %v7874_v11 }
  0x27   :  { %6822 = vmatpush3.msra.mxu0 %v8021_v14 }
  0x28   :  { %6837 = vmatprep.subr.mxu0 %v7874_v11 }
  0xcc   :  { %v6753_v19 = vpop.f32.mrf.mxu0 }
  0xcd   :  { %v155_v23 = vadd.f32 %v6753_v19, %v6230_v20 }
  0xce   :  { %v149_v21 = vpop.f32.mrf.mxu0 }
  0xcf   :  { %v150_v22 = vadd.f32 %v6230_v20, %v149_v21 }
  0xd0   :  { %v6756_v24 = vpop.f32.mrf.mxu0 }
  0xd1   :  { %6765 = vmatprep.mubr.msk.f32.mxu1 %vm179_vm3, %v150_v22  ;;  %v165_v26 = vadd.f32 %v6756_v24, %v6230_v20 }
  0xd2   :  { %6766 = vmatmul.mubr.msk.f32.vlgmr.msra.gmra.mxu1 %vm179_vm3, %v155_v23  ;;  %v159_v27 = vpop.f32.mrf.mxu0 }
  0xd3   :  { %v160_v29 = vadd.f32 %v6230_v20, %v159_v27  ;;  %6783 = vmatpush3.msra.mxu1 %v8075_v25 }
  0xd4   :  { %6784 = vmatprep.subr.mxu1 %v7874_v11 }
  0xd5   :  { %6768 = vmatprep.mubr.msk.f32.mxu1 %vm179_vm3, %v160_v29  ;;  %6785 = vmatpush3.msra.mxu1 %v8082_v28 }
  0xd6   :  { %6769 = vmatmul.mubr.msk.f32.gmra.mxu1 %vm179_vm3, %v165_v26  ;;  %6786 = vmatprep.subr.mxu1 %v7874_v11 }
  0xd7   :  { %6787 = vmatpush3.msra.mxu1 %v8089_v30  ;;  %6790 = vmatprep.mubr.msk.f32.mxu1 %vm7875_vm2, %v7874_v11 }
  0xd8   :  { %6788 = vmatprep.subr.mxu1 %v7874_v11  ;;  %v483_v36 = vpop.f32.mrf.mxu0 }
  0xd9   :  { %6789 = vmatpush3.msra.mxu1 %v8098_v31 }
  0xda   :  { %6804 = vmatprep.subr.mxu1 %v7874_v11  ;;  %6791 = vmatmul.mubr.f32.vlgmr.msra.gmra.mxu1 %v7874_v11  ;;  %v6781_v37 = vpop.f32.mrf.mxu0 }
  0xdb   :  { %6805 = vmatpush3.msra.mxu1 %v8107_v32  ;;  %6812 = vmatprep.mubr.msk.f32.mxu1 %vm7875_vm2, %v7874_v11 }
  0xdc   :  { %6806 = vmatprep.subr.mxu1 %v7874_v11 }
  0xdd   :  { %6807 = vmatpush3.msra.mxu1 %v8115_v33 }
  0xde   :  { %6808 = vmatprep.subr.mxu1 %v7874_v11 }
  0xdf   :  { %6809 = vmatpush3.msra.mxu1 %v8124_v34 }
  0xe0   :  { %6810 = vmatprep.subr.mxu1 %v7874_v11  ;;  %v8152_v45 = vpop.f32.mrf.mxu0 }
  0xe1   :  { %6811 = vmatpush3.msra.mxu1 %v8131_v35 }
  0xe2   :  { %6813 = vmatmul.mubr.f32.vlgmr.msra.gmra.mxu1 %v7874_v11  ;;  %6826 = vmatprep.subr.mxu1 %v7874_v11  ;;  %v6803_v49 = vpop.f32.mrf.mxu0 }
  0xe3   :  { %6827 = vmatpush3.msra.mxu1 %v8075_v25  ;;  %6834 = vmatprep.mubr.msk.f32.mxu1 %vm7875_vm2, %v7874_v11 }
  0xe4   :  { %6828 = vmatprep.subr.mxu1 %v7874_v11 }
  0xe5   :  { %6829 = vmatpush3.msra.mxu1 %v8082_v28 }
  0xe6   :  { %6830 = vmatprep.subr.mxu1 %v7874_v11 }
  0xe7   :  { %6831 = vmatpush3.msra.mxu1 %v8089_v30 }
  0xe8   :  { %6832 = vmatprep.subr.mxu1 %v7874_v11 }
  0xe9   :  { %6833 = vmatpush3.msra.mxu1 %v8098_v31 }
  0xea   :  { %6848 = vmatprep.subr.mxu1 %v7874_v11 }
 0x192   :  { %v6767_v39 = vpop.f32.mrf.mxu1 }
 0x193   :  { %v264_v40 = vadd.f32 %v6767_v39, %v6236_v38 }
 0x194   :  { %v258_v41 = vpop.f32.mrf.mxu1 }
 0x195   :  { %292 = vst.msk [vmem:[#allocation2 + $0x8] sm:$0xf] %vm289_vm4, %v264_v40  ;;  %v259_v42 = vadd.f32 %v6236_v38, %v258_v41  ;;  %v282_v43 = vcombine.high %v264_v40, %v264_v40 }
 0x196   :  { %v6770_v44 = vpop.f32.mrf.mxu1 }
 0x197   :  { %290 = vst.msk [vmem:[#allocation2] sm:$0xf] %vm289_vm4, %v259_v42  ;;  %362 = vrot.lane.b32.xlu1 %v259_v42, %s7876_s27  ;;  %298 = vrot.lane.b32.xlu0 %v259_v42, %s7877_s28  ;;  %v281_v46 = vcombine.high %v259_v42, %v259_v42  ;;  %293 = vst.msk [vmem:[#allocation2 + $0xc] sm:$0xf] %vm289_vm4, %v282_v43  ;;  %v274_v47 = vadd.f32 %v6770_v44, %v6236_v38 }
 0x198   :  { %v268_v48 = vpop.f32.mrf.mxu1 }
 0x199   :  { %291 = vst.msk [vmem:[#allocation2 + $0x4] sm:$0xf] %vm289_vm4, %v281_v46  ;;  %296 = vst.msk [vmem:[#allocation2 + $0x18] sm:$0xf] %vm289_vm4, %v274_v47  ;;  %v269_v50 = vadd.f32 %v6236_v38, %v268_v48  ;;  %v284_v51 = vcombine.high %v274_v47, %v274_v47 }
 0x19a   :  { %v561_v52 = vpop.f32.mrf.mxu1 }
 0x19b   :  { %330 = vrot.lane.b32.xlu0 %v259_v42, %s7878_s5  ;;  %300 = vrot.lane.b32.xlu1 %v281_v46, %s7877_s28  ;;  %294 = vst.msk [vmem:[#allocation2 + $0x10] sm:$0xf] %vm289_vm4, %v269_v50  ;;  %v283_v53 = vcombine.high %v269_v50, %v269_v50  ;;  %297 = vst.msk [vmem:[#allocation2 + $0x1c] sm:$0xf] %vm289_vm4, %v284_v51 }
 0x19c   :  { %v6792_v54 = vpop.f32.mrf.mxu1 }
 0x19d   :  { %295 = vst.msk [vmem:[#allocation2 + $0x14] sm:$0xf] %vm289_vm4, %v283_v53 }
 0x19e   :  { %v413_v57 = vld [vmem:[#allocation2] sm:$0xf] }
 0x19f   :  { %332 = vrot.lane.b32.xlu0 %v281_v46, %s7878_s5  ;;  %364 = vrot.lane.b32.xlu1 %v281_v46, %s7876_s27  ;;  %v487_v58 = vadd.f32 %v483_v36, %v413_v57 }
 0x1a1   :  { %v6253_v61 = vmul.f32 -1.442695, %v487_v58 }
 0x1a2   :  { %v712_v55 = vpop.f32.mrf.mxu1 }
 0x1a3   :  { %302 = vrot.lane.b32.xlu0 %v264_v40, %s7877_s28  ;;  %334 = vrot.lane.b32.xlu1 %v264_v40, %s7878_s5  ;;  %7538 = vpow2.f32 %v6253_v61 }
 0x1a4   :  { %v6814_v56 = vpop.f32.mrf.mxu1 }
 0x1a7   :  { %366 = vrot.lane.b32.xlu0 %v264_v40, %s7876_s27  ;;  %304 = vrot.lane.b32.xlu1 %v282_v43, %s7877_s28 }
 0x1ab   :  { %336 = vrot.lane.b32.xlu0 %v282_v43, %s7878_s5  ;;  %368 = vrot.lane.b32.xlu1 %v282_v43, %s7876_s27 }
 0x1af   :  { %306 = vrot.lane.b32.xlu0 %v269_v50, %s7877_s28  ;;  %338 = vrot.lane.b32.xlu1 %v269_v50, %s7878_s5 }
 0x1b0   :  { %v7539_v23 = vpop.eup %7538 }
 0x1b1   :  { %v491_v27 = vadd.f32 1.0, %v7539_v23 }
 0x1b3   :  { %370 = vrot.lane.b32.xlu0 %v269_v50, %s7876_s27  ;;  %308 = vrot.lane.b32.xlu1 %v283_v53, %s7877_s28 }
 0x1b7   :  { %340 = vrot.lane.b32.xlu0 %v283_v53, %s7878_s5  ;;  %372 = vrot.lane.b32.xlu1 %v283_v53, %s7876_s27 }
 0x1bb   :  { %310 = vrot.lane.b32.xlu0 %v274_v47, %s7877_s28  ;;  %342 = vrot.lane.b32.xlu1 %v274_v47, %s7878_s5 }
 0x1bf   :  { %374 = vrot.lane.b32.xlu0 %v274_v47, %s7876_s27  ;;  %312 = vrot.lane.b32.xlu1 %v284_v51, %s7877_s28 }
 0x1c3   :  { %344 = vrot.lane.b32.xlu0 %v284_v51, %s7878_s5  ;;  %376 = vrot.lane.b32.xlu1 %v284_v51, %s7876_s27 }
 0x209   :  { %v363_v59 = vpop.permute.xlu1 %362  ;;  %v299_v60 = vpop.permute.xlu0 %298 }
 0x20a   :  { %386 = vst.msk [vmem:[#allocation5] sm:$0xf] %vm289_vm4, %v363_v59  ;;  %322 = vst.msk [vmem:[#allocation3] sm:$0xf] %vm289_vm4, %v299_v60  ;;  %v730_v60 = vld [vmem:[#allocation2 + $0x4] sm:$0xf] }
 0x20d   :  { %v331_v62 = vpop.permute.xlu0 %330  ;;  %v301_v63 = vpop.permute.xlu1 %300 }
 0x20e   :  { %354 = vst.msk [vmem:[#allocation4] sm:$0xf] %vm289_vm4, %v331_v62  ;;  %323 = vst.msk [vmem:[#allocation3 + $0x4] sm:$0xf] %vm289_vm4, %v301_v63 }
 0x211   :  { %v494_v0 = vld [vmem:[#allocation3] sm:$0xf]  ;;  %v333_v1 = vpop.permute.xlu0 %332  ;;  %v365_v2 = vpop.permute.xlu1 %364 }
 0x212   :  { %v565_v3 = vadd.f32 %v561_v52, %v494_v0  ;;  %355 = vst.msk [vmem:[#allocation4 + $0x4] sm:$0xf] %vm289_vm4, %v333_v1  ;;  %387 = vst.msk [vmem:[#allocation5 + $0x4] sm:$0xf] %vm289_vm4, %v365_v2  ;;  %v645_v7 = vld [vmem:[#allocation5] sm:$0xf] }
 0x213   :  { %v716_v19 = vadd.f32 %v712_v55, %v645_v7 }
 0x214   :  { %v6254_v4 = vmul.f32 -1.442695, %v565_v3 }
 0x215   :  { %v303_v5 = vpop.permute.xlu0 %302  ;;  %v335_v6 = vpop.permute.xlu1 %334  ;;  %v572_v20 = vld [vmem:[#allocation4] sm:$0xf]  ;;  %v6255_v24 = vmul.f32 -1.442695, %v716_v19  ;;  %v812_v62 = vld [vmem:[#allocation3 + $0x4] sm:$0xf] }
 0x216   :  { %7540 = vpow2.f32 %v6254_v4  ;;  %324 = vst.msk [vmem:[#allocation3 + $0x8] sm:$0xf] %vm289_vm4, %v303_v5  ;;  %356 = vst.msk [vmem:[#allocation4 + $0x8] sm:$0xf] %vm289_vm4, %v335_v6  ;;  %v643_v26 = vadd.f32 %v8152_v45, %v572_v20 }
 0x217   :  { %7542 = vpow2.f32 %v6255_v24 }
 0x218   :  { %7544 = vtanh.f32 %v643_v26 }
 0x219   :  { %v367_v8 = vpop.permute.xlu0 %366  ;;  %v305_v9 = vpop.permute.xlu1 %304  ;;  %7546 = vrcp.f32 %v491_v27 }
 0x21a   :  { %388 = vst.msk [vmem:[#allocation5 + $0x8] sm:$0xf] %vm289_vm4, %v367_v8  ;;  %325 = vst.msk [vmem:[#allocation3 + $0xc] sm:$0xf] %vm289_vm4, %v305_v9  ;;  %v965_v8 = vld [vmem:[#allocation5 + $0x4] sm:$0xf] }
 0x21d   :  { %v337_v21 = vpop.permute.xlu0 %336  ;;  %v369_v22 = vpop.permute.xlu1 %368 }
 0x21e   :  { %357 = vst.msk [vmem:[#allocation4 + $0xc] sm:$0xf] %vm289_vm4, %v337_v21  ;;  %389 = vst.msk [vmem:[#allocation5 + $0xc] sm:$0xf] %vm289_vm4, %v369_v22  ;;  %v891_v21 = vld [vmem:[#allocation4 + $0x4] sm:$0xf] }
 0x221   :  { %v307_v29 = vpop.permute.xlu0 %306  ;;  %v339_v36 = vpop.permute.xlu1 %338 }
 0x222   :  { %326 = vst.msk [vmem:[#allocation3 + $0x10] sm:$0xf] %vm289_vm4, %v307_v29  ;;  %358 = vst.msk [vmem:[#allocation4 + $0x10] sm:$0xf] %vm289_vm4, %v339_v36 }
 0x223   :  { %v7541_v37 = vpop.eup %7540 }
 0x224   :  { %v569_v38 = vadd.f32 1.0, %v7541_v37  ;;  %v7543_v45 = vpop.eup %7542 }
 0x225   :  { %v371_v39 = vpop.permute.xlu0 %370  ;;  %v309_v40 = vpop.permute.xlu1 %308  ;;  %v720_v51 = vadd.f32 1.0, %v7543_v45 }
 0x226   :  { %7548 = vrcp.f32 %v569_v38  ;;  %390 = vst.msk [vmem:[#allocation5 + $0x10] sm:$0xf] %vm289_vm4, %v371_v39  ;;  %327 = vst.msk [vmem:[#allocation3 + $0x14] sm:$0xf] %vm289_vm4, %v309_v40  ;;  %v7545_v46 = vpop.eup %7544 }
 0x227   :  { %v7547_v49 = vpop.eup %7546  ;;  %7550 = vrcp.f32 %v720_v51 }
 0x228   :  { %v724_v53 = vmul.f32 %v7547_v49, %v7545_v46  ;;  %v1133_v49 = vld [vmem:[#allocation3 + $0x8] sm:$0xf] }
 0x229   :  { %v341_v41 = vpop.permute.xlu0 %340  ;;  %v373_v42 = vpop.permute.xlu1 %372 }
 0x22a   :  { %359 = vst.msk [vmem:[#allocation4 + $0x14] sm:$0xf] %vm289_vm4, %v341_v41  ;;  %391 = vst.msk [vmem:[#allocation5 + $0x14] sm:$0xf] %vm289_vm4, %v373_v42 }
 0x22d   :  { %v311_v43 = vpop.permute.xlu0 %310  ;;  %v343_v44 = vpop.permute.xlu1 %342 }
 0x22e   :  { %328 = vst.msk [vmem:[#allocation3 + $0x18] sm:$0xf] %vm289_vm4, %v311_v43  ;;  %360 = vst.msk [vmem:[#allocation4 + $0x18] sm:$0xf] %vm289_vm4, %v343_v44 }
 0x231   :  { %v375_v47 = vpop.permute.xlu0 %374  ;;  %v313_v48 = vpop.permute.xlu1 %312 }
 0x232   :  { %392 = vst.msk [vmem:[#allocation5 + $0x18] sm:$0xf] %vm289_vm4, %v375_v47  ;;  %329 = vst.msk [vmem:[#allocation3 + $0x1c] sm:$0xf] %vm289_vm4, %v313_v48  ;;  %v1051_v47 = vld [vmem:[#allocation2 + $0x8] sm:$0xf] }
 0x233   :  { %v7549_v50 = vpop.eup %7548 }
 0x234   :  { %v723_v52 = vmul.f32 0.0, %v7549_v50  ;;  %v7551_v57 = vpop.eup %7550 }
 0x235   :  { %v345_v54 = vpop.permute.xlu0 %344  ;;  %v377_v55 = vpop.permute.xlu1 %376 }
 0x236   :  { %v8208_v56 = vadd.f32 %v724_v53, %v723_v52  ;;  %361 = vst.msk [vmem:[#allocation4 + $0x1c] sm:$0xf] %vm289_vm4, %v345_v54  ;;  %393 = vst.msk [vmem:[#allocation5 + $0x1c] sm:$0xf] %vm289_vm4, %v377_v55 }
 0x238   :  { %7552 = vtanh.f32 %v8208_v56 }
 0x245   :  { %v7553_v58 = vpop.eup %7552 }
 0x246   :  { %v727_v59 = vmul.f32 %v7553_v58, %v7551_v57 }
 0x248   :  { %728 = vst.msk [vmem:[#allocation6] sm:$0xf] %vm289_vm4, %v727_v59  ;;  %6824 = vmatmul.mubr.msk.f32.vlgmr.msra.gmra.mxu0 %vm179_vm3, %v727_v59  ;;  %6835 = vmatmul.mubr.msk.f32.vlgmr.msra.gmra.mxu1 %vm179_vm3, %v727_v59 }
 0x249   :  { %6838 = vmatpush3.msra.mxu0 %v8033_v15  ;;  %6849 = vmatpush3.msra.mxu1 %v8107_v32 }
 0x24a   :  { %6839 = vmatprep.subr.mxu0 %v7874_v11  ;;  %6850 = vmatprep.subr.mxu1 %v7874_v11 }
 0x24b   :  { %6840 = vmatpush3.msra.mxu0 %v8040_v16  ;;  %6851 = vmatpush3.msra.mxu1 %v8115_v33 }
 0x24c   :  { %6841 = vmatprep.subr.mxu0 %v7874_v11  ;;  %6852 = vmatprep.subr.mxu1 %v7874_v11 }
 0x24d   :  { %6842 = vmatpush3.msra.mxu0 %v8047_v17  ;;  %6853 = vmatpush3.msra.mxu1 %v8124_v34 }
 0x24e   :  { %6843 = vmatprep.subr.mxu0 %v7874_v11  ;;  %6854 = vmatprep.subr.mxu1 %v7874_v11 }
 0x24f   :  { %6844 = vmatpush3.msra.mxu0 %v8052_v18  ;;  %6845 = vmatprep.mubr.msk.f32.mxu0 %vm7875_vm2, %v7874_v11 }
 0x250   :  { %6855 = vmatpush3.msra.mxu1 %v8131_v35  ;;  %6856 = vmatprep.mubr.msk.f32.mxu1 %vm7875_vm2, %v7874_v11 }
 0x251   :  { %6846 = vmatmul.mubr.msk.f32.vlgmr.msra.gmra.mxu0 %vm179_vm3, %v727_v59  ;;  %6857 = vmatmul.mubr.msk.f32.vlgmr.msra.gmra.mxu1 %vm179_vm3, %v727_v59  ;;  %v1286_v59 = vld [vmem:[#allocation5 + $0x8] sm:$0xf] }
 0x252   :  { %6859 = vmatprep.subr.mxu0 %v7874_v11  ;;  %6870 = vmatprep.subr.mxu1 %v7874_v11 }
 0x253   :  { %6860 = vmatpush3.msra.mxu0 %v7998_v10  ;;  %6871 = vmatpush3.msra.mxu1 %v8075_v25 }
 0x254   :  { %6861 = vmatprep.subr.mxu0 %v7874_v11  ;;  %6872 = vmatprep.subr.mxu1 %v7874_v11 }
 0x255   :  { %6862 = vmatpush3.msra.mxu0 %v8004_v12  ;;  %6873 = vmatpush3.msra.mxu1 %v8082_v28 }
 0x256   :  { %6863 = vmatprep.subr.mxu0 %v7874_v11  ;;  %6874 = vmatprep.subr.mxu1 %v7874_v11 }
 0x257   :  { %6864 = vmatpush3.msra.mxu0 %v8014_v13  ;;  %6875 = vmatpush3.msra.mxu1 %v8089_v30 }
 0x258   :  { %6865 = vmatprep.subr.mxu0 %v7874_v11  ;;  %6876 = vmatprep.subr.mxu1 %v7874_v11 }
 0x259   :  { %6866 = vmatpush3.msra.mxu0 %v8021_v14  ;;  %6877 = vmatpush3.msra.mxu1 %v8098_v31 }
 0x25a   :  { %6867 = vmatprep.mubr.msk.f32.mxu0 %vm7875_vm2, %v7874_v11  ;;  %6878 = vmatprep.mubr.msk.f32.mxu1 %vm7875_vm2, %v7874_v11 }
 0x25b   :  { %6881 = vmatprep.subr.mxu0 %v7874_v11  ;;  %6892 = vmatprep.subr.mxu1 %v7874_v11 }
 0x308   :  { %v800_v61 = vpop.f32.mrf.mxu0  ;;  %v879_v63 = vpop.f32.mrf.mxu1 }
 0x309   :  { %v804_v0 = vadd.f32 %v800_v61, %v730_v60  ;;  %v883_v1 = vadd.f32 %v879_v63, %v812_v62  ;;  %v1212_v63 = vld [vmem:[#allocation4 + $0x8] sm:$0xf] }
 0x30a   :  { %v6825_v2 = vpop.f32.mrf.mxu0  ;;  %v6836_v3 = vpop.f32.mrf.mxu1 }
 0x30b   :  { %v6257_v4 = vmul.f32 -1.442695, %v804_v0  ;;  %v6259_v5 = vmul.f32 -1.442695, %v883_v1 }
 0x30d   :  { %7554 = vpow2.f32 %v6257_v4 }
 0x30e   :  { %7556 = vpow2.f32 %v6259_v5 }
 0x311   :  { %v958_v6 = vpop.f32.mrf.mxu0  ;;  %v1032_v7 = vpop.f32.mrf.mxu1 }
 0x312   :  { %v1036_v9 = vadd.f32 %v1032_v7, %v965_v8  ;;  %v962_v23 = vadd.f32 %v958_v6, %v891_v21 }
 0x313   :  { %v6847_v19 = vpop.f32.mrf.mxu0  ;;  %v6858_v20 = vpop.f32.mrf.mxu1 }
 0x314   :  { %v6262_v22 = vmul.f32 -1.442695, %v1036_v9 }
 0x316   :  { %7558 = vpow2.f32 %v6262_v22 }
 0x317   :  { %7560 = vtanh.f32 %v962_v23 }
 0x31a   :  { %v7555_v24 = vpop.eup %7554 }
 0x31b   :  { %v7557_v26 = vpop.eup %7556  ;;  %v808_v27 = vadd.f32 1.0, %v7555_v24 }
 0x31c   :  { %v887_v29 = vadd.f32 1.0, %v7557_v26 }
 0x31d   :  { %7562 = vrcp.f32 %v808_v27  ;;  %v1372_v27 = vld [vmem:[#allocation2 + $0xc] sm:$0xf] }
 0x31e   :  { %7564 = vrcp.f32 %v887_v29 }
 0x323   :  { %v7559_v36 = vpop.eup %7558 }
 0x324   :  { %v7561_v37 = vpop.eup %7560  ;;  %v1040_v41 = vadd.f32 1.0, %v7559_v36  ;;  %v1454_v36 = vld [vmem:[#allocation3 + $0xc] sm:$0xf] }
 0x326   :  { %7566 = vrcp.f32 %v1040_v41 }
 0x32a   :  { %v7563_v38 = vpop.eup %7562 }
 0x32b   :  { %v7565_v39 = vpop.eup %7564  ;;  %v1044_v40 = vmul.f32 %v7563_v38, %v7561_v37 }
 0x32c   :  { %v1043_v42 = vmul.f32 %v7565_v39, %v8208_v56 }
 0x32e   :  { %v8259_v43 = vadd.f32 %v1044_v40, %v1043_v42 }
 0x330   :  { %7568 = vtanh.f32 %v8259_v43 }
 0x333   :  { %v7567_v44 = vpop.eup %7566 }
 0x33d   :  { %v7569_v45 = vpop.eup %7568 }
 0x33e   :  { %v1047_v46 = vmul.f32 %v7569_v45, %v7567_v44 }
 0x340   :  { %1049 = vst.msk [vmem:[#allocation6 + $0x4] sm:$0xf] %vm289_vm4, %v1047_v46  ;;  %6868 = vmatmul.mubr.msk.f32.vlgmr.msra.gmra.mxu0 %vm179_vm3, %v1047_v46  ;;  %6879 = vmatmul.mubr.msk.f32.vlgmr.msra.gmra.mxu1 %vm179_vm3, %v1047_v46 }
 0x341   :  { %6882 = vmatpush3.msra.mxu0 %v8033_v15  ;;  %6893 = vmatpush3.msra.mxu1 %v8107_v32 }
 0x342   :  { %6883 = vmatprep.subr.mxu0 %v7874_v11  ;;  %6894 = vmatprep.subr.mxu1 %v7874_v11 }
 0x343   :  { %6884 = vmatpush3.msra.mxu0 %v8040_v16  ;;  %6895 = vmatpush3.msra.mxu1 %v8115_v33 }
 0x344   :  { %6885 = vmatprep.subr.mxu0 %v7874_v11  ;;  %6896 = vmatprep.subr.mxu1 %v7874_v11 }
 0x345   :  { %6886 = vmatpush3.msra.mxu0 %v8047_v17  ;;  %6897 = vmatpush3.msra.mxu1 %v8124_v34 }
 0x346   :  { %6887 = vmatprep.subr.mxu0 %v7874_v11  ;;  %6898 = vmatprep.subr.mxu1 %v7874_v11 }
 0x347   :  { %6888 = vmatpush3.msra.mxu0 %v8052_v18  ;;  %6889 = vmatprep.mubr.msk.f32.mxu0 %vm7875_vm2, %v7874_v11 }
 0x348   :  { %6899 = vmatpush3.msra.mxu1 %v8131_v35  ;;  %6900 = vmatprep.mubr.msk.f32.mxu1 %vm7875_vm2, %v7874_v11 }
 0x349   :  { %6890 = vmatmul.mubr.msk.f32.vlgmr.msra.gmra.mxu0 %vm179_vm3, %v1047_v46  ;;  %6901 = vmatmul.mubr.msk.f32.vlgmr.msra.gmra.mxu1 %vm179_vm3, %v1047_v46  ;;  %v1607_v46 = vld [vmem:[#allocation5 + $0xc] sm:$0xf] }
 0x34a   :  { %6903 = vmatprep.subr.mxu0 %v7874_v11  ;;  %6914 = vmatprep.subr.mxu1 %v7874_v11 }
 0x34b   :  { %6904 = vmatpush3.msra.mxu0 %v7998_v10  ;;  %6915 = vmatpush3.msra.mxu1 %v8075_v25 }
 0x34c   :  { %6905 = vmatprep.subr.mxu0 %v7874_v11  ;;  %6916 = vmatprep.subr.mxu1 %v7874_v11 }
 0x34d   :  { %6906 = vmatpush3.msra.mxu0 %v8004_v12  ;;  %6917 = vmatpush3.msra.mxu1 %v8082_v28 }
 0x34e   :  { %6907 = vmatprep.subr.mxu0 %v7874_v11  ;;  %6918 = vmatprep.subr.mxu1 %v7874_v11 }
 0x34f   :  { %6908 = vmatpush3.msra.mxu0 %v8014_v13  ;;  %6919 = vmatpush3.msra.mxu1 %v8089_v30 }
 0x350   :  { %6909 = vmatprep.subr.mxu0 %v7874_v11  ;;  %6920 = vmatprep.subr.mxu1 %v7874_v11 }
 0x351   :  { %6910 = vmatpush3.msra.mxu0 %v8021_v14  ;;  %6921 = vmatpush3.msra.mxu1 %v8098_v31 }
 0x352   :  { %6911 = vmatprep.mubr.msk.f32.mxu0 %vm7875_vm2, %v7874_v11  ;;  %6922 = vmatprep.mubr.msk.f32.mxu1 %vm7875_vm2, %v7874_v11 }
 0x353   :  { %6925 = vmatprep.subr.mxu0 %v7874_v11  ;;  %6936 = vmatprep.subr.mxu1 %v7874_v11 }
 0x400   :  { %v1121_v48 = vpop.f32.mrf.mxu0  ;;  %v1200_v50 = vpop.f32.mrf.mxu1 }
 0x401   :  { %v1125_v51 = vadd.f32 %v1121_v48, %v1051_v47  ;;  %v1204_v52 = vadd.f32 %v1200_v50, %v1133_v49  ;;  %v1533_v50 = vld [vmem:[#allocation4 + $0xc] sm:$0xf] }
 0x402   :  { %v6869_v53 = vpop.f32.mrf.mxu0  ;;  %v6880_v54 = vpop.f32.mrf.mxu1 }
 0x403   :  { %v6264_v55 = vmul.f32 -1.442695, %v1125_v51  ;;  %v6266_v56 = vmul.f32 -1.442695, %v1204_v52 }
 0x405   :  { %7570 = vpow2.f32 %v6264_v55 }
 0x406   :  { %7572 = vpow2.f32 %v6266_v56 }
 0x409   :  { %v1279_v57 = vpop.f32.mrf.mxu0  ;;  %v1353_v58 = vpop.f32.mrf.mxu1 }
 0x40a   :  { %v1357_v60 = vadd.f32 %v1353_v58, %v1286_v59  ;;  %v1283_v1 = vadd.f32 %v1279_v57, %v1212_v63 }
 0x40b   :  { %v6891_v61 = vpop.f32.mrf.mxu0  ;;  %v6902_v62 = vpop.f32.mrf.mxu1 }
 0x40c   :  { %v6269_v0 = vmul.f32 -1.442695, %v1357_v60 }
 0x40e   :  { %7574 = vpow2.f32 %v6269_v0 }
 0x40f   :  { %7576 = vtanh.f32 %v1283_v1 }
 0x412   :  { %v7571_v2 = vpop.eup %7570 }
 0x413   :  { %v7573_v3 = vpop.eup %7572  ;;  %v1129_v4 = vadd.f32 1.0, %v7571_v2 }
 0x414   :  { %v1208_v5 = vadd.f32 1.0, %v7573_v3 }
 0x415   :  { %7578 = vrcp.f32 %v1129_v4  ;;  %v1928_v4 = vld [vmem:[#allocation5 + $0x10] sm:$0xf] }
 0x416   :  { %7580 = vrcp.f32 %v1208_v5 }
 0x41b   :  { %v7575_v6 = vpop.eup %7574 }
 0x41c   :  { %v7577_v7 = vpop.eup %7576  ;;  %v1361_v20 = vadd.f32 1.0, %v7575_v6 }
 0x41e   :  { %7582 = vrcp.f32 %v1361_v20 }
 0x422   :  { %v7579_v8 = vpop.eup %7578 }
 0x423   :  { %v7581_v9 = vpop.eup %7580  ;;  %v1365_v19 = vmul.f32 %v7579_v8, %v7577_v7  ;;  %v1854_v8 = vld [vmem:[#allocation4 + $0x10] sm:$0xf] }
 0x424   :  { %v1364_v21 = vmul.f32 %v7581_v9, %v8259_v43 }
 0x426   :  { %v8308_v22 = vadd.f32 %v1365_v19, %v1364_v21 }
 0x428   :  { %7584 = vtanh.f32 %v8308_v22 }
 0x42b   :  { %v7583_v23 = vpop.eup %7582 }
 0x435   :  { %v7585_v24 = vpop.eup %7584 }
 0x436   :  { %v1368_v26 = vmul.f32 %v7585_v24, %v7583_v23 }
 0x438   :  { %1370 = vst.msk [vmem:[#allocation6 + $0x8] sm:$0xf] %vm289_vm4, %v1368_v26  ;;  %6912 = vmatmul.mubr.msk.f32.vlgmr.msra.gmra.mxu0 %vm179_vm3, %v1368_v26  ;;  %6923 = vmatmul.mubr.msk.f32.vlgmr.msra.gmra.mxu1 %vm179_vm3, %v1368_v26 }
 0x439   :  { %6926 = vmatpush3.msra.mxu0 %v8033_v15  ;;  %6937 = vmatpush3.msra.mxu1 %v8107_v32 }
 0x43a   :  { %6927 = vmatprep.subr.mxu0 %v7874_v11  ;;  %6938 = vmatprep.subr.mxu1 %v7874_v11 }
 0x43b   :  { %6928 = vmatpush3.msra.mxu0 %v8040_v16  ;;  %6939 = vmatpush3.msra.mxu1 %v8115_v33 }
 0x43c   :  { %6929 = vmatprep.subr.mxu0 %v7874_v11  ;;  %6940 = vmatprep.subr.mxu1 %v7874_v11 }
 0x43d   :  { %6930 = vmatpush3.msra.mxu0 %v8047_v17  ;;  %6941 = vmatpush3.msra.mxu1 %v8124_v34 }
 0x43e   :  { %6931 = vmatprep.subr.mxu0 %v7874_v11  ;;  %6942 = vmatprep.subr.mxu1 %v7874_v11 }
 0x43f   :  { %6932 = vmatpush3.msra.mxu0 %v8052_v18  ;;  %6933 = vmatprep.mubr.msk.f32.mxu0 %vm7875_vm2, %v7874_v11 }
 0x440   :  { %6943 = vmatpush3.msra.mxu1 %v8131_v35  ;;  %6944 = vmatprep.mubr.msk.f32.mxu1 %vm7875_vm2, %v7874_v11 }
 0x441   :  { %6934 = vmatmul.mubr.msk.f32.vlgmr.msra.gmra.mxu0 %vm179_vm3, %v1368_v26  ;;  %6945 = vmatmul.mubr.msk.f32.vlgmr.msra.gmra.mxu1 %vm179_vm3, %v1368_v26 }
 0x442   :  { %6947 = vmatprep.subr.mxu0 %v7874_v11  ;;  %6958 = vmatprep.subr.mxu1 %v7874_v11 }
 0x443   :  { %6948 = vmatpush3.msra.mxu0 %v7998_v10  ;;  %6959 = vmatpush3.msra.mxu1 %v8075_v25 }
 0x444   :  { %6949 = vmatprep.subr.mxu0 %v7874_v11  ;;  %6960 = vmatprep.subr.mxu1 %v7874_v11 }
 0x445   :  { %6950 = vmatpush3.msra.mxu0 %v8004_v12  ;;  %6961 = vmatpush3.msra.mxu1 %v8082_v28 }
 0x446   :  { %6951 = vmatprep.subr.mxu0 %v7874_v11  ;;  %6962 = vmatprep.subr.mxu1 %v7874_v11 }
 0x447   :  { %6952 = vmatpush3.msra.mxu0 %v8014_v13  ;;  %6963 = vmatpush3.msra.mxu1 %v8089_v30 }
 0x448   :  { %6953 = vmatprep.subr.mxu0 %v7874_v11  ;;  %6964 = vmatprep.subr.mxu1 %v7874_v11 }
 0x449   :  { %6954 = vmatpush3.msra.mxu0 %v8021_v14  ;;  %6965 = vmatpush3.msra.mxu1 %v8098_v31 }
 0x44a   :  { %6955 = vmatprep.mubr.msk.f32.mxu0 %vm7875_vm2, %v7874_v11  ;;  %6966 = vmatprep.mubr.msk.f32.mxu1 %vm7875_vm2, %v7874_v11 }
 0x44b   :  { %6969 = vmatprep.subr.mxu0 %v7874_v11  ;;  %6980 = vmatprep.subr.mxu1 %v7874_v11 }
 0x4f8   :  { %v1442_v29 = vpop.f32.mrf.mxu0  ;;  %v1521_v37 = vpop.f32.mrf.mxu1 }
 0x4f9   :  { %v1446_v38 = vadd.f32 %v1442_v29, %v1372_v27  ;;  %v1525_v39 = vadd.f32 %v1521_v37, %v1454_v36 }
 0x4fa   :  { %v6913_v40 = vpop.f32.mrf.mxu0  ;;  %v6924_v41 = vpop.f32.mrf.mxu1 }
 0x4fb   :  { %v6271_v42 = vmul.f32 -1.442695, %v1446_v38  ;;  %v6273_v43 = vmul.f32 -1.442695, %v1525_v39 }
 0x4fd   :  { %7586 = vpow2.f32 %v6271_v42 }
 0x4fe   :  { %7588 = vpow2.f32 %v6273_v43  ;;  %v8415_v43 = vld [vmem:[%s9404_s4 + $0x58] sm:$0xff] }
 0x501   :  { %v1600_v44 = vpop.f32.mrf.mxu0  ;;  %v1674_v45 = vpop.f32.mrf.mxu1 }
 0x502   :  { %v1678_v47 = vadd.f32 %v1674_v45, %v1607_v46  ;;  %v1604_v52 = vadd.f32 %v1600_v44, %v1533_v50  ;;  %v8424_v44 = vld [vmem:[%s9404_s4 + $0x50] sm:$0xff]  ;;  %v8505_v50 = vld [vmem:[%s9404_s4 + $0x20] sm:$0xff] }
 0x503   :  { %v6935_v48 = vpop.f32.mrf.mxu0  ;;  %v6946_v49 = vpop.f32.mrf.mxu1  ;;  %v8471_v45 = vld [vmem:[%s9404_s4 + $0x10] sm:$0xff] }
 0x504   :  { %v6276_v51 = vmul.f32 -1.442695, %v1678_v47  ;;  %v8477_v46 = vld [vmem:[%s9404_s4 + $0x30] sm:$0xff]  ;;  %v8485_v47 = vld [vmem:[%s9404_s4 + $0x8] sm:$0xff]  ;;  %v8499_v49 = vld [vmem:[%s9404_s4] sm:$0xff] }
 0x505   :  { %v8491_v48 = vld [vmem:[%s9404_s4 + $0x28] sm:$0xff] }
 0x506   :  { %7590 = vpow2.f32 %v6276_v51  ;;  %v2014_v51 = vld [vmem:[#allocation2 + $0x14] sm:$0xf] }
 0x507   :  { %7592 = vtanh.f32 %v1604_v52 }
 0x50a   :  { %v7587_v53 = vpop.eup %7586 }
 0x50b   :  { %v7589_v54 = vpop.eup %7588  ;;  %v1450_v55 = vadd.f32 1.0, %v7587_v53  ;;  %v2096_v53 = vld [vmem:[#allocation3 + $0x14] sm:$0xf] }
 0x50c   :  { %v1529_v56 = vadd.f32 1.0, %v7589_v54 }
 0x50d   :  { %7594 = vrcp.f32 %v1450_v55 }
 0x50e   :  { %7596 = vrcp.f32 %v1529_v56 }
 0x513   :  { %v7591_v57 = vpop.eup %7590 }
 0x514   :  { %v7593_v58 = vpop.eup %7592  ;;  %v1682_v62 = vadd.f32 1.0, %v7591_v57 }
 0x516   :  { %7598 = vrcp.f32 %v1682_v62 }
 0x51a   :  { %v7595_v59 = vpop.eup %7594 }
 0x51b   :  { %v7597_v60 = vpop.eup %7596  ;;  %v1686_v61 = vmul.f32 %v7595_v59, %v7593_v58 }
 0x51c   :  { %v1685_v63 = vmul.f32 %v7597_v60, %v8308_v22 }
 0x51e   :  { %v8357_v0 = vadd.f32 %v1686_v61, %v1685_v63  ;;  %v2249_v63 = vld [vmem:[#allocation5 + $0x14] sm:$0xf] }
 0x520   :  { %7600 = vtanh.f32 %v8357_v0 }
 0x523   :  { %v7599_v1 = vpop.eup %7598 }
 0x52d   :  { %v7601_v2 = vpop.eup %7600 }
 0x52e   :  { %v1689_v3 = vmul.f32 %v7601_v2, %v7599_v1 }
 0x530   :  { %1691 = vst.msk [vmem:[#allocation6 + $0xc] sm:$0xf] %vm289_vm4, %v1689_v3  ;;  %6956 = vmatmul.mubr.msk.f32.vlgmr.msra.gmra.mxu0 %vm179_vm3, %v1689_v3  ;;  %6967 = vmatmul.mubr.msk.f32.vlgmr.msra.gmra.mxu1 %vm179_vm3, %v1689_v3 }
 0x531   :  { %6970 = vmatpush3.msra.mxu0 %v8033_v15  ;;  %6981 = vmatpush3.msra.mxu1 %v8107_v32 }
 0x532   :  { %6971 = vmatprep.subr.mxu0 %v7874_v11  ;;  %6982 = vmatprep.subr.mxu1 %v7874_v11 }
 0x533   :  { %6972 = vmatpush3.msra.mxu0 %v8040_v16  ;;  %6983 = vmatpush3.msra.mxu1 %v8115_v33 }
 0x534   :  { %6973 = vmatprep.subr.mxu0 %v7874_v11  ;;  %6984 = vmatprep.subr.mxu1 %v7874_v11 }
 0x535   :  { %6974 = vmatpush3.msra.mxu0 %v8047_v17  ;;  %6985 = vmatpush3.msra.mxu1 %v8124_v34 }
 0x536   :  { %6975 = vmatprep.subr.mxu0 %v7874_v11  ;;  %6986 = vmatprep.subr.mxu1 %v7874_v11 }
 0x537   :  { %6976 = vmatpush3.msra.mxu0 %v8052_v18  ;;  %6977 = vmatprep.mubr.msk.f32.mxu0 %vm7875_vm2, %v7874_v11 }
 0x538   :  { %6987 = vmatpush3.msra.mxu1 %v8131_v35  ;;  %6988 = vmatprep.mubr.msk.f32.mxu1 %vm7875_vm2, %v7874_v11 }
 0x539   :  { %6978 = vmatmul.mubr.msk.f32.vlgmr.msra.gmra.mxu0 %vm179_vm3, %v1689_v3  ;;  %6989 = vmatmul.mubr.msk.f32.vlgmr.msra.gmra.mxu1 %vm179_vm3, %v1689_v3  ;;  %v2175_v3 = vld [vmem:[#allocation4 + $0x14] sm:$0xf] }
 0x53a   :  { %6991 = vmatprep.subr.mxu0 %v7874_v11  ;;  %7002 = vmatprep.subr.mxu1 %v7874_v11 }
 0x53b   :  { %6992 = vmatpush3.msra.mxu0 %v7998_v10  ;;  %7003 = vmatpush3.msra.mxu1 %v8075_v25  ;;  %v1693_v10 = vld [vmem:[#allocation2 + $0x10] sm:$0xf] }
 0x53c   :  { %6993 = vmatprep.subr.mxu0 %v7874_v11  ;;  %7004 = vmatprep.subr.mxu1 %v7874_v11 }
 0x53d   :  { %6994 = vmatpush3.msra.mxu0 %v8004_v12  ;;  %7005 = vmatpush3.msra.mxu1 %v8082_v28 }
 0x53e   :  { %6995 = vmatprep.subr.mxu0 %v7874_v11  ;;  %7006 = vmatprep.subr.mxu1 %v7874_v11 }
 0x53f   :  { %6996 = vmatpush3.msra.mxu0 %v8014_v13  ;;  %7007 = vmatpush3.msra.mxu1 %v8089_v30  ;;  %v1775_v13 = vld [vmem:[#allocation3 + $0x10] sm:$0xf] }
 0x540   :  { %6997 = vmatprep.subr.mxu0 %v7874_v11  ;;  %7008 = vmatprep.subr.mxu1 %v7874_v11 }
 0x541   :  { %6998 = vmatpush3.msra.mxu0 %v8021_v14  ;;  %7009 = vmatpush3.msra.mxu1 %v8098_v31 }
 0x542   :  { %6999 = vmatprep.mubr.msk.f32.mxu0 %vm7875_vm2, %v7874_v11  ;;  %7010 = vmatprep.mubr.msk.f32.mxu1 %vm7875_vm2, %v7874_v11 }
 0x543   :  { %7013 = vmatprep.subr.mxu0 %v7874_v11  ;;  %7024 = vmatprep.subr.mxu1 %v7874_v11 }
 0x5f0   :  { %v1763_v12 = vpop.f32.mrf.mxu0  ;;  %v1842_v15 = vpop.f32.mrf.mxu1 }
 0x5f1   :  { %v1767_v16 = vadd.f32 %v1763_v12, %v1693_v10  ;;  %v1846_v17 = vadd.f32 %v1842_v15, %v1775_v13 }
 0x5f2   :  { %v6957_v18 = vpop.f32.mrf.mxu0  ;;  %v6968_v14 = vpop.f32.mrf.mxu1 }
 0x5f3   :  { %v6278_v25 = vmul.f32 -1.442695, %v1767_v16  ;;  %v6280_v28 = vmul.f32 -1.442695, %v1846_v17 }
 0x5f5   :  { %7602 = vpow2.f32 %v6278_v25 }
 0x5f6   :  { %7604 = vpow2.f32 %v6280_v28 }
 0x5f9   :  { %v1921_v30 = vpop.f32.mrf.mxu0  ;;  %v1995_v31 = vpop.f32.mrf.mxu1 }
 0x5fa   :  { %v1999_v5 = vadd.f32 %v1995_v31, %v1928_v4  ;;  %v1925_v19 = vadd.f32 %v1921_v30, %v1854_v8 }
 0x5fb   :  { %v6979_v6 = vpop.f32.mrf.mxu0  ;;  %v6990_v7 = vpop.f32.mrf.mxu1 }
 0x5fc   :  { %v6283_v9 = vmul.f32 -1.442695, %v1999_v5 }
 0x5fe   :  { %7606 = vpow2.f32 %v6283_v9  ;;  %v8525_v9 = vld [vmem:[%s9404_s4 + $0x78] sm:$0xff] }
 0x5ff   :  { %7608 = vtanh.f32 %v1925_v19  ;;  %v8534_v19 = vld [vmem:[%s9404_s4 + $0x70] sm:$0xff] }
 0x602   :  { %v7603_v20 = vpop.eup %7602 }
 0x603   :  { %v7605_v21 = vpop.eup %7604  ;;  %v1771_v22 = vadd.f32 1.0, %v7603_v20  ;;  %v8543_v20 = vld [vmem:[%s9404_s4 + $0x68] sm:$0xff] }
 0x604   :  { %v1850_v23 = vadd.f32 1.0, %v7605_v21  ;;  %v8554_v21 = vld [vmem:[%s9404_s4 + $0x60] sm:$0xff] }
 0x605   :  { %7610 = vrcp.f32 %v1771_v22  ;;  %v2335_v22 = vld [vmem:[#allocation2 + $0x18] sm:$0xf] }
 0x606   :  { %7612 = vrcp.f32 %v1850_v23 }
 0x60b   :  { %v7607_v24 = vpop.eup %7606 }
 0x60c   :  { %v7609_v26 = vpop.eup %7608  ;;  %v2003_v37 = vadd.f32 1.0, %v7607_v24  ;;  %v2417_v24 = vld [vmem:[#allocation3 + $0x18] sm:$0xf] }
 0x60e   :  { %7614 = vrcp.f32 %v2003_v37 }
 0x612   :  { %v7611_v27 = vpop.eup %7610 }
 0x613   :  { %v7613_v29 = vpop.eup %7612  ;;  %v2007_v36 = vmul.f32 %v7611_v27, %v7609_v26 }
 0x614   :  { %v2006_v38 = vmul.f32 %v7613_v29, %v8357_v0 }
 0x616   :  { %v8406_v39 = vadd.f32 %v2007_v36, %v2006_v38 }
 0x618   :  { %7616 = vtanh.f32 %v8406_v39 }
 0x61b   :  { %v7615_v40 = vpop.eup %7614 }
 0x625   :  { %v7617_v41 = vpop.eup %7616 }
 0x626   :  { %v2010_v42 = vmul.f32 %v7617_v41, %v7615_v40 }
 0x628   :  { %2012 = vst.msk [vmem:[#allocation6 + $0x10] sm:$0xf] %vm289_vm4, %v2010_v42  ;;  %7000 = vmatmul.mubr.msk.f32.vlgmr.msra.gmra.mxu0 %vm179_vm3, %v2010_v42  ;;  %7011 = vmatmul.mubr.msk.f32.vlgmr.msra.gmra.mxu1 %vm179_vm3, %v2010_v42 }
 0x629   :  { %7014 = vmatpush3.msra.mxu0 %v8415_v43  ;;  %7025 = vmatpush3.msra.mxu1 %v8107_v32  ;;  %v8433_v32 = vld [vmem:[%s9404_s4 + $0x48] sm:$0xff] }
 0x62a   :  { %7015 = vmatprep.subr.mxu0 %v7874_v11  ;;  %7026 = vmatprep.subr.mxu1 %v7874_v11 }
 0x62b   :  { %7016 = vmatpush3.msra.mxu0 %v8424_v44  ;;  %7027 = vmatpush3.msra.mxu1 %v8115_v33  ;;  %v8442_v33 = vld [vmem:[%s9404_s4 + $0x40] sm:$0xff] }
 0x62c   :  { %7017 = vmatprep.subr.mxu0 %v7874_v11  ;;  %7028 = vmatprep.subr.mxu1 %v7874_v11 }
 0x62d   :  { %7018 = vmatpush3.msra.mxu0 %v8433_v32  ;;  %7029 = vmatpush3.msra.mxu1 %v8124_v34  ;;  %v8457_v34 = vld [vmem:[%s9404_s4 + $0x18] sm:$0xff] }
 0x62e   :  { %7019 = vmatprep.subr.mxu0 %v7874_v11  ;;  %7030 = vmatprep.subr.mxu1 %v7874_v11 }
 0x62f   :  { %7020 = vmatpush3.msra.mxu0 %v8442_v33  ;;  %7021 = vmatprep.mubr.msk.f32.mxu0 %vm7875_vm2, %v7874_v11 }
 0x630   :  { %7031 = vmatpush3.msra.mxu1 %v8131_v35  ;;  %7032 = vmatprep.mubr.msk.f32.mxu1 %vm7875_vm2, %v7874_v11  ;;  %v8463_v35 = vld [vmem:[%s9404_s4 + $0x38] sm:$0xff] }
 0x631   :  { %7022 = vmatmul.mubr.msk.f32.vlgmr.msra.gmra.mxu0 %vm179_vm3, %v2010_v42  ;;  %7033 = vmatmul.mubr.msk.f32.vlgmr.msra.gmra.mxu1 %vm179_vm3, %v2010_v42  ;;  %v2570_v42 = vld [vmem:[#allocation5 + $0x18] sm:$0xf] }
 0x632   :  { %7035 = vmatprep.subr.mxu0 %v7874_v11  ;;  %7046 = vmatprep.subr.mxu1 %v7874_v11 }
 0x633   :  { %7036 = vmatpush3.msra.mxu0 %v8457_v34  ;;  %7047 = vmatpush3.msra.mxu1 %v8463_v35 }
 0x634   :  { %7037 = vmatprep.subr.mxu0 %v7874_v11  ;;  %7048 = vmatprep.subr.mxu1 %v7874_v11 }
 0x635   :  { %7038 = vmatpush3.msra.mxu0 %v8471_v45  ;;  %7049 = vmatpush3.msra.mxu1 %v8477_v46 }
 0x636   :  { %7039 = vmatprep.subr.mxu0 %v7874_v11  ;;  %7050 = vmatprep.subr.mxu1 %v7874_v11 }
 0x637   :  { %7040 = vmatpush3.msra.mxu0 %v8485_v47  ;;  %7051 = vmatpush3.msra.mxu1 %v8491_v48 }
 0x638   :  { %7041 = vmatprep.subr.mxu0 %v7874_v11  ;;  %7052 = vmatprep.subr.mxu1 %v7874_v11 }
 0x639   :  { %7042 = vmatpush3.msra.mxu0 %v8499_v49  ;;  %7053 = vmatpush3.msra.mxu1 %v8505_v50 }
 0x63a   :  { %7043 = vmatprep.mubr.msk.f32.mxu0 %vm7875_vm2, %v7874_v11  ;;  %7054 = vmatprep.mubr.msk.f32.mxu1 %vm7875_vm2, %v7874_v11 }
 0x63b   :  { %7057 = vmatprep.subr.mxu0 %v7874_v11  ;;  %7068 = vmatprep.subr.mxu1 %v7874_v11 }
 0x6e8   :  { %v2084_v52 = vpop.f32.mrf.mxu0  ;;  %v2163_v54 = vpop.f32.mrf.mxu1 }
 0x6e9   :  { %v2088_v55 = vadd.f32 %v2084_v52, %v2014_v51  ;;  %v2167_v56 = vadd.f32 %v2163_v54, %v2096_v53 }
 0x6ea   :  { %v7001_v57 = vpop.f32.mrf.mxu0  ;;  %v7012_v58 = vpop.f32.mrf.mxu1 }
 0x6eb   :  { %v6285_v59 = vmul.f32 -1.442695, %v2088_v55  ;;  %v6287_v60 = vmul.f32 -1.442695, %v2167_v56 }
 0x6ed   :  { %7618 = vpow2.f32 %v6285_v59 }
 0x6ee   :  { %7620 = vpow2.f32 %v6287_v60 }
 0x6f1   :  { %v2242_v61 = vpop.f32.mrf.mxu0  ;;  %v2316_v62 = vpop.f32.mrf.mxu1 }
 0x6f2   :  { %v2320_v0 = vadd.f32 %v2316_v62, %v2249_v63  ;;  %v2246_v12 = vadd.f32 %v2242_v61, %v2175_v3  ;;  %v8639_v3 = vld [vmem:[%s9407_s7 + $0x8] sm:$0xff] }
 0x6f3   :  { %v7023_v1 = vpop.f32.mrf.mxu0  ;;  %v7034_v2 = vpop.f32.mrf.mxu1 }
 0x6f4   :  { %v6290_v10 = vmul.f32 -1.442695, %v2320_v0  ;;  %v2985_v0 = vld [vmem:[%s9406_s6 + $0x8] sm:$0xff]  ;;  %v8629_v1 = vld [vmem:[%s9407_s7 + $0x10] sm:$0xff]  ;;  %v2984_v2 = vld [vmem:[%s9406_s6] sm:$0xff] }
 0x6f6   :  { %7622 = vpow2.f32 %v6290_v10  ;;  %v8646_v10 = vld [vmem:[%s9407_s7] sm:$0xff] }
 0x6f7   :  { %7624 = vtanh.f32 %v2246_v12  ;;  %v7531_v12 = vld [vmem:[#allocation6 + $0x8] sm:$0xff]  }
 0x6fa   :  { %v7619_v13 = vpop.eup %7618 }
 0x6fb   :  { %v7621_v15 = vpop.eup %7620  ;;  %v2092_v16 = vadd.f32 1.0, %v7619_v13 }
 0x6fc   :  { %v2171_v17 = vadd.f32 1.0, %v7621_v15  ;;  %v8655_v15 = vld [vmem:[%s9407_s7 + $0x58] sm:$0xff] }
 0x6fd   :  { %7626 = vrcp.f32 %v2092_v16  ;;  %v8665_v16 = vld [vmem:[%s9407_s7 + $0x50] sm:$0xff] }
 0x6fe   :  { %7628 = vrcp.f32 %v2171_v17  ;;  %v8674_v17 = vld [vmem:[%s9407_s7 + $0x48] sm:$0xff] }
 0x703   :  { %v7623_v18 = vpop.eup %7622 }
 0x704   :  { %v7625_v14 = vpop.eup %7624  ;;  %v2324_v31 = vadd.f32 1.0, %v7623_v18  ;;  %v8682_v18 = vld [vmem:[%s9407_s7 + $0x40] sm:$0xff] }
 0x706   :  { %7630 = vrcp.f32 %v2324_v31  ;;  %v2656_v31 = vld [vmem:[#allocation2 + $0x1c] sm:$0xf] }
 0x70a   :  { %v7627_v25 = vpop.eup %7626 }
 0x70b   :  { %v7629_v28 = vpop.eup %7628  ;;  %v2328_v30 = vmul.f32 %v7627_v25, %v7625_v14  ;;  %v8702_v14 = vld [vmem:[%s9407_s7 + $0x38] sm:$0xff]  ;;  %v8707_v25 = vld [vmem:[%s9407_s7 + $0x30] sm:$0xff] }
 0x70c   :  { %v2327_v4 = vmul.f32 %v7629_v28, %v8406_v39  ;;  %v8716_v28 = vld [vmem:[%s9407_s7 + $0x28] sm:$0xff] }
 0x70e   :  { %v8515_v5 = vadd.f32 %v2328_v30, %v2327_v4  ;;  %v8721_v30 = vld [vmem:[%s9407_s7 + $0x20] sm:$0xff] }
 0x710   :  { %7632 = vtanh.f32 %v8515_v5 }
 0x713   :  { %v7631_v6 = vpop.eup %7630 }
 0x71d   :  { %v7633_v7 = vpop.eup %7632 }
 0x71e   :  { %v2331_v8 = vmul.f32 %v7633_v7, %v7631_v6 }
 0x720   :  { %2333 = vst.msk [vmem:[#allocation6 + $0x14] sm:$0xf] %vm289_vm4, %v2331_v8  ;;  %7044 = vmatmul.mubr.msk.f32.vlgmr.msra.gmra.mxu0 %vm179_vm3, %v2331_v8  ;;  %7055 = vmatmul.mubr.msk.f32.vlgmr.msra.gmra.mxu1 %vm179_vm3, %v2331_v8 }
 0x721   :  { %7058 = vmatpush3.msra.mxu0 %v8415_v43  ;;  %7069 = vmatpush3.msra.mxu1 %v8525_v9 }
 0x722   :  { %7059 = vmatprep.subr.mxu0 %v7874_v11  ;;  %7070 = vmatprep.subr.mxu1 %v7874_v11 }
 0x723   :  { %7060 = vmatpush3.msra.mxu0 %v8424_v44  ;;  %7071 = vmatpush3.msra.mxu1 %v8534_v19 }
 0x724   :  { %7061 = vmatprep.subr.mxu0 %v7874_v11  ;;  %7072 = vmatprep.subr.mxu1 %v7874_v11 }
 0x725   :  { %7062 = vmatpush3.msra.mxu0 %v8433_v32  ;;  %7073 = vmatpush3.msra.mxu1 %v8543_v20 }
 0x726   :  { %7063 = vmatprep.subr.mxu0 %v7874_v11  ;;  %7074 = vmatprep.subr.mxu1 %v7874_v11 }
 0x727   :  { %7064 = vmatpush3.msra.mxu0 %v8442_v33  ;;  %7065 = vmatprep.mubr.msk.f32.mxu0 %vm7875_vm2, %v7874_v11  ;;  %v7532_v13 = vld [vmem:[#allocation6 + $0x10] sm:$0xff]  }
 0x728   :  { %7075 = vmatpush3.msra.mxu1 %v8554_v21  ;;  %7076 = vmatprep.mubr.msk.f32.mxu1 %vm7875_vm2, %v7874_v11 }
 0x729   :  { %7066 = vmatmul.mubr.msk.f32.vlgmr.msra.gmra.mxu0 %vm179_vm3, %v2331_v8  ;;  %7077 = vmatmul.mubr.msk.f32.vlgmr.msra.gmra.mxu1 %vm179_vm3, %v2331_v8 }
 0x72a   :  { %7079 = vmatprep.subr.mxu0 %v7874_v11  ;;  %7090 = vmatprep.subr.mxu1 %v7874_v11 }
 0x72b   :  { %7080 = vmatpush3.msra.mxu0 %v8457_v34  ;;  %7091 = vmatpush3.msra.mxu1 %v8463_v35 }
 0x72c   :  { %7081 = vmatprep.subr.mxu0 %v7874_v11  ;;  %7092 = vmatprep.subr.mxu1 %v7874_v11 }
 0x72d   :  { %7082 = vmatpush3.msra.mxu0 %v8471_v45  ;;  %7093 = vmatpush3.msra.mxu1 %v8477_v46  ;;  %v2496_v46 = vld [vmem:[#allocation4 + $0x18] sm:$0xf] }
 0x72e   :  { %7083 = vmatprep.subr.mxu0 %v7874_v11  ;;  %7094 = vmatprep.subr.mxu1 %v7874_v11 }
 0x72f   :  { %7084 = vmatpush3.msra.mxu0 %v8485_v47  ;;  %7095 = vmatpush3.msra.mxu1 %v8491_v48 }
 0x730   :  { %7085 = vmatprep.subr.mxu0 %v7874_v11  ;;  %7096 = vmatprep.subr.mxu1 %v7874_v11 }
 0x731   :  { %7086 = vmatpush3.msra.mxu0 %v8499_v49  ;;  %7097 = vmatpush3.msra.mxu1 %v8505_v50 }
 0x732   :  { %7087 = vmatprep.mubr.msk.f32.mxu0 %vm7875_vm2, %v7874_v11  ;;  %7098 = vmatprep.mubr.msk.f32.mxu1 %vm7875_vm2, %v7874_v11 }
 0x733   :  { %7101 = vmatprep.subr.mxu0 %v7874_v11  ;;  %7112 = vmatprep.subr.mxu1 %v7874_v11 }
 0x7e0   :  { %v2405_v23 = vpop.f32.mrf.mxu0  ;;  %v2484_v26 = vpop.f32.mrf.mxu1 }
 0x7e1   :  { %v2409_v27 = vadd.f32 %v2405_v23, %v2335_v22  ;;  %v2488_v29 = vadd.f32 %v2484_v26, %v2417_v24  ;;  %v2891_v24 = vld [vmem:[#allocation5 + $0x1c] sm:$0xf] }
 0x7e2   :  { %v7045_v36 = vpop.f32.mrf.mxu0  ;;  %v7056_v37 = vpop.f32.mrf.mxu1 }
 0x7e3   :  { %v6292_v38 = vmul.f32 -1.442695, %v2409_v27  ;;  %v6294_v39 = vmul.f32 -1.442695, %v2488_v29  ;;  %v2817_v36 = vld [vmem:[#allocation4 + $0x1c] sm:$0xf] }
 0x7e5   :  { %7634 = vpow2.f32 %v6292_v38 }
 0x7e6   :  { %7636 = vpow2.f32 %v6294_v39  ;;  %v8730_v39 = vld [vmem:[%s9408_s8] ss:$0 sm:$0xff] }
 0x7e9   :  { %v2563_v40 = vpop.f32.mrf.mxu0  ;;  %v2637_v41 = vpop.f32.mrf.mxu1 }
 0x7ea   :  { %v2641_v34 = vadd.f32 %v2637_v41, %v2570_v42  ;;  %v2567_v48 = vadd.f32 %v2563_v40, %v2496_v46 }
 0x7eb   :  { %v7067_v35 = vpop.f32.mrf.mxu0  ;;  %v7078_v45 = vpop.f32.mrf.mxu1 }
 0x7ec   :  { %v6297_v47 = vmul.f32 -1.442695, %v2641_v34 }
 0x7ee   :  { %7638 = vpow2.f32 %v6297_v47 }
 0x7ef   :  { %7640 = vtanh.f32 %v2567_v48 }
 0x7f2   :  { %v7635_v49 = vpop.eup %7634 }
 0x7f3   :  { %v7637_v50 = vpop.eup %7636  ;;  %v2413_v51 = vadd.f32 1.0, %v7635_v49 }
 0x7f4   :  { %v2492_v52 = vadd.f32 1.0, %v7637_v50 }
 0x7f5   :  { %7642 = vrcp.f32 %v2413_v51 }
 0x7f6   :  { %7644 = vrcp.f32 %v2492_v52 }
 0x7fb   :  { %v7639_v53 = vpop.eup %7638 }
 0x7fc   :  { %v7641_v54 = vpop.eup %7640  ;;  %v2645_v58 = vadd.f32 1.0, %v7639_v53 }
 0x7fe   :  { %7646 = vrcp.f32 %v2645_v58 }
 0x802   :  { %v7643_v55 = vpop.eup %7642 }
 0x803   :  { %v7645_v56 = vpop.eup %7644  ;;  %v2649_v57 = vmul.f32 %v7643_v55, %v7641_v54 }
 0x804   :  { %v2648_v59 = vmul.f32 %v7645_v56, %v8515_v5  ;;  %v2738_v5 = vld [vmem:[#allocation3 + $0x1c] sm:$0xf] }
 0x806   :  { %v8584_v60 = vadd.f32 %v2649_v57, %v2648_v59 }
 0x808   :  { %7648 = vtanh.f32 %v8584_v60 }
 0x80b   :  { %v7647_v61 = vpop.eup %7646 }
 0x815   :  { %v7649_v62 = vpop.eup %7648 }
 0x816   :  { %v2652_v63 = vmul.f32 %v7649_v62, %v7647_v61 }
 0x818   :  { %2654 = vst.msk [vmem:[#allocation6 + $0x18] sm:$0xf] %vm289_vm4, %v2652_v63  ;;  %7088 = vmatmul.mubr.msk.f32.vlgmr.msra.gmra.mxu0 %vm179_vm3, %v2652_v63  ;;  %7099 = vmatmul.mubr.msk.f32.vlgmr.msra.gmra.mxu1 %vm179_vm3, %v2652_v63 }
 0x819   :  { %7102 = vmatpush3.msra.mxu0 %v8415_v43  ;;  %7113 = vmatpush3.msra.mxu1 %v8525_v9  ;;  %v2987_v43 = vld [vmem:[%s9406_s6 + $0x18] sm:$0xff] }
 0x81a   :  { %7103 = vmatprep.subr.mxu0 %v7874_v11  ;;  %7114 = vmatprep.subr.mxu1 %v7874_v11 }
 0x81b   :  { %7104 = vmatpush3.msra.mxu0 %v8424_v44  ;;  %7115 = vmatpush3.msra.mxu1 %v8534_v19  ;;  %v7530_v44 = vld [vmem:[#allocation6] sm:$0xff]  }
 0x81c   :  { %7105 = vmatprep.subr.mxu0 %v7874_v11  ;;  %7116 = vmatprep.subr.mxu1 %v7874_v11 }
 0x81d   :  { %7106 = vmatpush3.msra.mxu0 %v8433_v32  ;;  %7117 = vmatpush3.msra.mxu1 %v8543_v20  ;;  %v2986_v32 = vld [vmem:[%s9406_s6 + $0x10] sm:$0xff] }
 0x81e   :  { %7107 = vmatprep.subr.mxu0 %v7874_v11  ;;  %7118 = vmatprep.subr.mxu1 %v7874_v11 }
 0x81f   :  { %7108 = vmatpush3.msra.mxu0 %v8442_v33  ;;  %7109 = vmatprep.mubr.msk.f32.mxu0 %vm7875_vm2, %v7874_v11  ;;  %v8619_v33 = vld [vmem:[%s9407_s7 + $0x18] sm:$0xff] }
 0x820   :  { %7119 = vmatpush3.msra.mxu1 %v8554_v21  ;;  %7120 = vmatprep.mubr.msk.f32.mxu1 %vm7875_vm2, %v7874_v11 }
 0x821   :  { %7110 = vmatmul.mubr.msk.f32.vlgmr.msra.gmra.mxu0 %vm179_vm3, %v2652_v63  ;;  %7121 = vmatmul.mubr.msk.f32.vlgmr.msra.gmra.mxu1 %vm179_vm3, %v2652_v63 }
 0x822   :  { %7123 = vmatprep.subr.mxu0 %v2987_v43  ;;  %7131 = vmatprep.mubr.msk.f32.mxu0 %vm179_vm3, %v7530_v44 }
 0x823   :  { %7124 = vmatpush3.msra.mxu0 %v2987_v43  ;;  %7137 = vmatprep.subr.mxu1 %v7874_v11 }
 0x824   :  { %7125 = vmatprep.subr.mxu0 %v2986_v32  ;;  %7138 = vmatpush3.msra.mxu1 %v8619_v33 }
 0x825   :  { %7126 = vmatpush3.msra.mxu0 %v2986_v32  ;;  %7139 = vmatprep.subr.mxu1 %v7874_v11 }
 0x826   :  { %7127 = vmatprep.subr.mxu0 %v2985_v0  ;;  %7140 = vmatpush3.msra.mxu1 %v8629_v1 }
 0x827   :  { %7128 = vmatpush3.msra.mxu0 %v2985_v0  ;;  %7141 = vmatprep.subr.mxu1 %v7874_v11  ;;  %v8768_v0 = vld [vmem:[%s9407_s7 + $0x70] sm:$0xff] }
 0x828   :  { %7129 = vmatprep.subr.mxu0 %v2984_v2  ;;  %7142 = vmatpush3.msra.mxu1 %v8639_v3 }
 0x829   :  { %7130 = vmatpush3.msra.mxu0 %v2984_v2  ;;  %7143 = vmatprep.subr.mxu1 %v7874_v11  ;;  %v8777_v2 = vld [vmem:[%s9407_s7 + $0x68] sm:$0xff] }
 0x82a   :  { %7132 = vmatmul.mubr.msk.f32.vlgmr.msra.gmra.mxu0 %vm179_vm3, %v7531_v12  ;;  %7144 = vmatpush3.msra.mxu1 %v8646_v10  ;;  %v8784_v12 = vld [vmem:[%s9407_s7 + $0x60] sm:$0xff] }
 0x82b   :  { %7134 = vmatprep.mubr.msk.f32.mxu0 %vm179_vm3, %v7532_v13  ;;  %7145 = vmatprep.mubr.msk.f32.mxu1 %vm7875_vm2, %v7874_v11 }
 0x82c   :  { %7146 = vmatmul.mubr.f32.vlgmr.msra.gmra.mxu1 %v7874_v11  ;;  %7159 = vmatprep.subr.mxu1 %v7874_v11 }
 0x82d   :  { %7160 = vmatpush3.msra.mxu1 %v8655_v15  ;;  %7167 = vmatprep.mubr.msk.f32.mxu1 %vm7875_vm2, %v7874_v11 }
 0x82e   :  { %7161 = vmatprep.subr.mxu1 %v7874_v11  ;;  %7148 = vmatprep.subr.mxu0 %v7874_v11 }
 0x82f   :  { %7162 = vmatpush3.msra.mxu1 %v8665_v16  ;;  %7149 = vmatpush3.msra.mxu0 %v8702_v14 }
 0x830   :  { %7163 = vmatprep.subr.mxu1 %v7874_v11  ;;  %7150 = vmatprep.subr.mxu0 %v7874_v11 }
 0x831   :  { %7164 = vmatpush3.msra.mxu1 %v8674_v17  ;;  %7151 = vmatpush3.msra.mxu0 %v8707_v25 }
 0x832   :  { %7165 = vmatprep.subr.mxu1 %v7874_v11  ;;  %7152 = vmatprep.subr.mxu0 %v7874_v11 }
 0x833   :  { %7166 = vmatpush3.msra.mxu1 %v8682_v18  ;;  %7153 = vmatpush3.msra.mxu0 %v8716_v28 }
 0x834   :  { %7168 = vmatmul.mubr.f32.vlgmr.msra.gmra.mxu1 %v7874_v11  ;;  %7181 = vmatprep.subr.mxu1 %v7874_v11 }
 0x835   :  { %7182 = vmatpush3.msra.mxu1 %v8619_v33  ;;  %7189 = vmatprep.mubr.msk.f32.mxu1 %vm7875_vm2, %v7874_v11 }
 0x836   :  { %7183 = vmatprep.subr.mxu1 %v7874_v11  ;;  %7154 = vmatprep.subr.mxu0 %v7874_v11 }
 0x837   :  { %7184 = vmatpush3.msra.mxu1 %v8629_v1  ;;  %7155 = vmatpush3.msra.mxu0 %v8721_v30 }
 0x838   :  { %7185 = vmatprep.subr.mxu1 %v7874_v11  ;;  %7170 = vmatprep.subr.mxu0 %v7874_v11 }
 0x839   :  { %7186 = vmatpush3.msra.mxu1 %v8639_v3 }
 0x83a   :  { %7187 = vmatprep.subr.mxu1 %v7874_v11 }
 0x83b   :  { %7188 = vmatpush3.msra.mxu1 %v8646_v10 }
 0x83c   :  { %7203 = vmatprep.subr.mxu1 %v7874_v11 }
 0x8d8   :  { %v2726_v4 = vpop.f32.mrf.mxu0  ;;  %v2805_v6 = vpop.f32.mrf.mxu1 }
 0x8d9   :  { %v2730_v7 = vadd.f32 %v2726_v4, %v2656_v31  ;;  %v2809_v8 = vadd.f32 %v2805_v6, %v2738_v5 }
 0x8da   :  { %v7089_v9 = vpop.f32.mrf.mxu0  ;;  %v7100_v19 = vpop.f32.mrf.mxu1 }
 0x8db   :  { %v6299_v20 = vmul.f32 -1.442695, %v2730_v7  ;;  %v6301_v21 = vmul.f32 -1.442695, %v2809_v8 }
 0x8dd   :  { %7650 = vpow2.f32 %v6299_v20 }
 0x8de   :  { %7652 = vpow2.f32 %v6301_v21 }
 0x8e1   :  { %v2884_v22 = vpop.f32.mrf.mxu0  ;;  %v2958_v23 = vpop.f32.mrf.mxu1 }
 0x8e2   :  { %v2962_v26 = vadd.f32 %v2958_v23, %v2891_v24  ;;  %v2888_v38 = vadd.f32 %v2884_v22, %v2817_v36 }
 0x8e3   :  { %v7111_v27 = vpop.f32.mrf.mxu0  ;;  %v7122_v29 = vpop.f32.mrf.mxu1 }
 0x8e4   :  { %v6304_v37 = vmul.f32 -1.442695, %v2962_v26 }
 0x8e6   :  { %7654 = vpow2.f32 %v6304_v37 }
 0x8e7   :  { %7656 = vtanh.f32 %v2888_v38 }
 0x8ea   :  { %v7651_v40 = vpop.eup %7650  ;;  %v7133_v41 = vpop.f32.mrf.mxu0 }
 0x8eb   :  { %v7653_v42 = vpop.eup %7652  ;;  %v2734_v34 = vadd.f32 1.0, %v7651_v40  ;;  %v3087_v35 = vadd.f32 %v7133_v41, %v8730_v39 }
 0x8ec   :  { %v2813_v45 = vadd.f32 1.0, %v7653_v42  ;;  %v3081_v46 = vpop.f32.mrf.mxu0  ;;  %v8733_v47 = vpop.f32.mrf.mxu1 }
 0x8ed   :  { %7658 = vrcp.f32 %v2734_v34  ;;  %3114 = vst.msk [vmem:[#allocation2 + $0x8] sm:$0xf] %vm289_vm4, %v3087_v35  ;;  %v3082_v48 = vadd.f32 %v8730_v39, %v3081_v46  ;;  %v3105_v49 = vcombine.high %v3087_v35, %v3087_v35 }
 0x8ee   :  { %7660 = vrcp.f32 %v2813_v45  ;;  %v7147_v50 = vpop.f32.mrf.mxu1 }
 0x8ef   :  { %3112 = vst.msk [vmem:[#allocation2] sm:$0xf] %vm289_vm4, %v3082_v48  ;;  %3152 = vrot.lane.b32.xlu1 %v3082_v48, %s7878_s5  ;;  %3120 = vrot.lane.b32.xlu0 %v3082_v48, %s7877_s28  ;;  %v3104_v51 = vcombine.high %v3082_v48, %v3082_v48  ;;  %3115 = vst.msk [vmem:[#allocation2 + $0xc] sm:$0xf] %vm289_vm4, %v3105_v49 }
 0x8f1   :  { %3113 = vst.msk [vmem:[#allocation2 + $0x4] sm:$0xf] %vm289_vm4, %v3104_v51 }
 0x8f3   :  { %3184 = vrot.lane.b32.xlu0 %v3082_v48, %s7876_s27  ;;  %3122 = vrot.lane.b32.xlu1 %v3104_v51, %s7877_s28  ;;  %v7655_v54 = vpop.eup %7654 }
 0x8f4   :  { %v8744_v52 = vpop.f32.mrf.mxu1  ;;  %v7657_v55 = vpop.eup %7656  ;;  %v2966_v59 = vadd.f32 1.0, %v7655_v54 }
 0x8f6   :  { %v7169_v53 = vpop.f32.mrf.mxu1  ;;  %7662 = vrcp.f32 %v2966_v59  ;;  %v3235_v23 = vld [vmem:[#allocation2] sm:$0xf] }
 0x8f7   :  { %3154 = vrot.lane.b32.xlu0 %v3104_v51, %s7878_s5  ;;  %3186 = vrot.lane.b32.xlu1 %v3104_v51, %s7876_s27  ;;  %v3306_v24 = vadd.f32 %v8733_v47, %v3235_v23 }
 0x8f9   :  { %v6322_v26 = vmul.f32 -1.442695, %v3306_v24  ;;  %v3548_v24 = vld [vmem:[#allocation2 + $0x4] sm:$0xf] }
 0x8fa   :  { %v7659_v56 = vpop.eup %7658 }
 0x8fb   :  { %v7661_v57 = vpop.eup %7660  ;;  %v2970_v58 = vmul.f32 %v7659_v56, %v7657_v55  ;;  %3124 = vrot.lane.b32.xlu0 %v3087_v35, %s7877_s28  ;;  %3156 = vrot.lane.b32.xlu1 %v3087_v35, %s7878_s5 }
 0x8fc   :  { %v2969_v61 = vmul.f32 %v7661_v57, %v8584_v60  ;;  %v8762_v60 = vld [vmem:[%s9407_s7 + $0x78] sm:$0xff] }
 0x8fe   :  { %v2971_v62 = vadd.f32 %v2970_v58, %v2969_v61 }
 0x8ff   :  { %3188 = vrot.lane.b32.xlu0 %v3087_v35, %s7876_s27  ;;  %3126 = vrot.lane.b32.xlu1 %v3105_v49, %s7877_s28 }
 0x900   :  { %7664 = vtanh.f32 %v2971_v62 }
 0x901   :  { %7666 = vpow2.f32 %v6322_v26 }
 0x903   :  { %3158 = vrot.lane.b32.xlu0 %v3105_v49, %s7878_s5  ;;  %3190 = vrot.lane.b32.xlu1 %v3105_v49, %s7876_s27  ;;  %v7663_v63 = vpop.eup %7662 }
 0x90d   :  { %v7665_v43 = vpop.eup %7664 }
 0x90e   :  { %v2973_v44 = vmul.f32 %v7665_v43, %v7663_v63  ;;  %v7667_v50 = vpop.eup %7666 }
 0x90f   :  { %v3310_v54 = vadd.f32 1.0, %v7667_v50 }
 0x910   :  { %2975 = vst.msk [vmem:[#allocation6 + $0x1c] sm:$0xf] %vm289_vm4, %v2973_v44 }
 0x917   :  { %v7533_v32 = vld [vmem:[#allocation6 + $0x18] sm:$0xff]  }
 0x918   :  { %7135 = vmatmul.mubr.msk.f32.gmra.mxu0 %vm179_vm3, %v7533_v32 }
 0x919   :  { %7156 = vmatprep.mubr.msk.f32.mxu0 %vm7875_vm2, %v7874_v11 }
 0x91c   :  { %7157 = vmatmul.mubr.f32.vlgmr.msra.gmra.mxu0 %v7874_v11 }
 0x91d   :  { %7171 = vmatpush3.msra.mxu0 %v8762_v60  ;;  %7178 = vmatprep.mubr.msk.f32.mxu0 %vm7875_vm2, %v7874_v11 }
 0x91e   :  { %7172 = vmatprep.subr.mxu0 %v7874_v11 }
 0x91f   :  { %7173 = vmatpush3.msra.mxu0 %v8768_v0 }
 0x920   :  { %7174 = vmatprep.subr.mxu0 %v7874_v11 }
 0x921   :  { %7175 = vmatpush3.msra.mxu0 %v8777_v2 }
 0x922   :  { %7176 = vmatprep.subr.mxu0 %v7874_v11 }
 0x923   :  { %7177 = vmatpush3.msra.mxu0 %v8784_v12 }
 0x924   :  { %7179 = vmatmul.mubr.f32.vlgmr.msra.gmra.mxu0 %v7874_v11  ;;  %7192 = vmatprep.subr.mxu0 %v7874_v11 }
 0x925   :  { %7193 = vmatpush3.msra.mxu0 %v8702_v14  ;;  %7200 = vmatprep.mubr.msk.f32.mxu0 %vm7875_vm2, %v7874_v11 }
 0x926   :  { %7194 = vmatprep.subr.mxu0 %v7874_v11 }
 0x927   :  { %7195 = vmatpush3.msra.mxu0 %v8707_v25 }
 0x928   :  { %7196 = vmatprep.subr.mxu0 %v7874_v11 }
 0x929   :  { %7197 = vmatpush3.msra.mxu0 %v8716_v28 }
 0x92a   :  { %7198 = vmatprep.subr.mxu0 %v7874_v11 }
 0x92b   :  { %7199 = vmatpush3.msra.mxu0 %v8721_v30 }
 0x92c   :  { %7214 = vmatprep.subr.mxu0 %v7874_v11 }
 0x961   :  { %v3153_v13 = vpop.permute.xlu1 %3152  ;;  %v3121_v31 = vpop.permute.xlu0 %3120 }
 0x962   :  { %3176 = vst.msk [vmem:[#allocation4] sm:$0xf] %vm289_vm4, %v3153_v13  ;;  %3144 = vst.msk [vmem:[#allocation3] sm:$0xf] %vm289_vm4, %v3121_v31 }
 0x965   :  { %v3185_v4 = vpop.permute.xlu0 %3184  ;;  %v3123_v5 = vpop.permute.xlu1 %3122 }
 0x966   :  { %3208 = vst.msk [vmem:[#allocation5] sm:$0xf] %vm289_vm4, %v3185_v4  ;;  %3145 = vst.msk [vmem:[#allocation3 + $0x4] sm:$0xf] %vm289_vm4, %v3123_v5 }
 0x969   :  { %v3155_v6 = vpop.permute.xlu0 %3154  ;;  %v3187_v7 = vpop.permute.xlu1 %3186  ;;  %v3313_v40 = vld [vmem:[#allocation3] sm:$0xf] }
 0x96a   :  { %3177 = vst.msk [vmem:[#allocation4 + $0x4] sm:$0xf] %vm289_vm4, %v3155_v6  ;;  %3209 = vst.msk [vmem:[#allocation5 + $0x4] sm:$0xf] %vm289_vm4, %v3187_v7  ;;  %v3391_v49 = vld [vmem:[#allocation4] sm:$0xf] }
 0x96b   :  { %v3462_v53 = vadd.f32 %v8744_v52, %v3391_v49 }
 0x96d   :  { %v3125_v8 = vpop.permute.xlu0 %3124  ;;  %v3157_v9 = vpop.permute.xlu1 %3156  ;;  %v3464_v46 = vld [vmem:[#allocation5] sm:$0xf] }
 0x96e   :  { %3146 = vst.msk [vmem:[#allocation3 + $0x8] sm:$0xf] %vm289_vm4, %v3125_v8  ;;  %3178 = vst.msk [vmem:[#allocation4 + $0x8] sm:$0xf] %vm289_vm4, %v3157_v9 }
 0x971   :  { %v3189_v19 = vpop.permute.xlu0 %3188  ;;  %v3127_v20 = vpop.permute.xlu1 %3126 }
 0x972   :  { %3210 = vst.msk [vmem:[#allocation5 + $0x8] sm:$0xf] %vm289_vm4, %v3189_v19  ;;  %3147 = vst.msk [vmem:[#allocation3 + $0xc] sm:$0xf] %vm289_vm4, %v3127_v20 }
 0x975   :  { %v3159_v21 = vpop.permute.xlu0 %3158  ;;  %v3191_v22 = vpop.permute.xlu1 %3190 }
 0x976   :  { %3179 = vst.msk [vmem:[#allocation4 + $0xc] sm:$0xf] %vm289_vm4, %v3159_v21  ;;  %3211 = vst.msk [vmem:[#allocation5 + $0xc] sm:$0xf] %vm289_vm4, %v3191_v22 }
 0x9d8   :  { %v7136_v27 = vpop.f32.mrf.mxu0 }
 0x9d9   :  { %v3097_v29 = vadd.f32 %v7136_v27, %v8730_v39  ;;  %v3629_v27 = vld [vmem:[#allocation3 + $0x4] sm:$0xf] }
 0x9da   :  { %v3091_v36 = vpop.f32.mrf.mxu0 }
 0x9db   :  { %3118 = vst.msk [vmem:[#allocation2 + $0x18] sm:$0xf] %vm289_vm4, %v3097_v29  ;;  %v3092_v37 = vadd.f32 %v8730_v39, %v3091_v36  ;;  %v3107_v38 = vcombine.high %v3097_v29, %v3097_v29 }
 0x9dc   :  { %v3380_v41 = vpop.f32.mrf.mxu0 }
 0x9dd   :  { %3116 = vst.msk [vmem:[#allocation2 + $0x10] sm:$0xf] %vm289_vm4, %v3092_v37  ;;  %v3384_v42 = vadd.f32 %v3380_v41, %v3313_v40  ;;  %3128 = vrot.lane.b32.xlu0 %v3092_v37, %s7877_s28  ;;  %3160 = vrot.lane.b32.xlu1 %v3092_v37, %s7878_s5  ;;  %v3106_v34 = vcombine.high %v3092_v37, %v3092_v37  ;;  %3119 = vst.msk [vmem:[#allocation2 + $0x1c] sm:$0xf] %vm289_vm4, %v3107_v38 }
 0x9de   :  { %v7158_v35 = vpop.f32.mrf.mxu0 }
 0x9df   :  { %v6323_v45 = vmul.f32 -1.442695, %v3384_v42  ;;  %3117 = vst.msk [vmem:[#allocation2 + $0x14] sm:$0xf] %vm289_vm4, %v3106_v34 }
 0x9e1   :  { %7668 = vpow2.f32 %v6323_v45  ;;  %3192 = vrot.lane.b32.xlu0 %v3092_v37, %s7876_s27  ;;  %3130 = vrot.lane.b32.xlu1 %v3106_v34, %s7877_s28  ;;  %v3780_v45 = vld [vmem:[#allocation5 + $0x4] sm:$0xf] }
 0x9e4   :  { %v3531_v39 = vpop.f32.mrf.mxu0 }
 0x9e5   :  { %3162 = vrot.lane.b32.xlu0 %v3106_v34, %s7878_s5  ;;  %3194 = vrot.lane.b32.xlu1 %v3106_v34, %s7876_s27  ;;  %v3535_v47 = vadd.f32 %v3531_v39, %v3464_v46 }
 0x9e6   :  { %v7180_v48 = vpop.f32.mrf.mxu0 }
 0x9e7   :  { %v6324_v51 = vmul.f32 -1.442695, %v3535_v47  ;;  %v3707_v48 = vld [vmem:[#allocation4 + $0x4] sm:$0xf] }
 0x9e9   :  { %3132 = vrot.lane.b32.xlu0 %v3097_v29, %s7877_s28  ;;  %3164 = vrot.lane.b32.xlu1 %v3097_v29, %s7878_s5  ;;  %7670 = vpow2.f32 %v6324_v51 }
 0x9ea   :  { %7672 = vtanh.f32 %v3462_v53 }
 0x9eb   :  { %7674 = vrcp.f32 %v3310_v54 }
 0x9ed   :  { %3196 = vrot.lane.b32.xlu0 %v3097_v29, %s7876_s27  ;;  %3134 = vrot.lane.b32.xlu1 %v3107_v38, %s7877_s28 }
 0x9ee   :  { %v7669_v55 = vpop.eup %7668 }
 0x9ef   :  { %v3388_v56 = vadd.f32 1.0, %v7669_v55 }
 0x9f1   :  { %7676 = vrcp.f32 %v3388_v56  ;;  %3166 = vrot.lane.b32.xlu0 %v3107_v38, %s7878_s5  ;;  %3198 = vrot.lane.b32.xlu1 %v3107_v38, %s7876_s27 }
 0x9f6   :  { %v7671_v57 = vpop.eup %7670 }
 0x9f7   :  { %v7673_v58 = vpop.eup %7672  ;;  %v3539_v52 = vadd.f32 1.0, %v7671_v57 }
 0x9f8   :  { %v7675_v59 = vpop.eup %7674 }
 0x9f9   :  { %v3543_v63 = vmul.f32 %v7675_v59, %v7673_v58  ;;  %7678 = vrcp.f32 %v3539_v52 }
 0x9fe   :  { %v7677_v61 = vpop.eup %7676 }
 0x9ff   :  { %v3542_v62 = vmul.f32 0.0, %v7677_v61 }
 0xa01   :  { %v8833_v43 = vadd.f32 %v3543_v63, %v3542_v62 }
 0xa03   :  { %7680 = vtanh.f32 %v8833_v43 }
 0xa06   :  { %v7679_v44 = vpop.eup %7678 }
 0xa10   :  { %v7681_v32 = vpop.eup %7680 }
 0xa11   :  { %v3546_v13 = vmul.f32 %v7681_v32, %v7679_v44 }
 0xa13   :  { %3547 = vst.msk [vmem:[#allocation6] sm:$0xf] %vm289_vm4, %v3546_v13  ;;  %7190 = vmatmul.mubr.msk.f32.vlgmr.msra.gmra.mxu1 %vm179_vm3, %v3546_v13  ;;  %7201 = vmatmul.mubr.msk.f32.vlgmr.msra.gmra.mxu0 %vm179_vm3, %v3546_v13 }
 0xa14   :  { %7204 = vmatpush3.msra.mxu1 %v8655_v15  ;;  %7215 = vmatpush3.msra.mxu0 %v8762_v60 }
 0xa15   :  { %7205 = vmatprep.subr.mxu1 %v7874_v11  ;;  %7216 = vmatprep.subr.mxu0 %v7874_v11 }
 0xa16   :  { %7206 = vmatpush3.msra.mxu1 %v8665_v16  ;;  %7217 = vmatpush3.msra.mxu0 %v8768_v0 }
 0xa17   :  { %7207 = vmatprep.subr.mxu1 %v7874_v11  ;;  %7218 = vmatprep.subr.mxu0 %v7874_v11 }
 0xa18   :  { %7208 = vmatpush3.msra.mxu1 %v8674_v17  ;;  %7219 = vmatpush3.msra.mxu0 %v8777_v2 }
 0xa19   :  { %7209 = vmatprep.subr.mxu1 %v7874_v11  ;;  %7220 = vmatprep.subr.mxu0 %v7874_v11 }
 0xa1a   :  { %7210 = vmatpush3.msra.mxu1 %v8682_v18  ;;  %7211 = vmatprep.mubr.msk.f32.mxu1 %vm7875_vm2, %v7874_v11 }
 0xa1b   :  { %7221 = vmatpush3.msra.mxu0 %v8784_v12  ;;  %7222 = vmatprep.mubr.msk.f32.mxu0 %vm7875_vm2, %v7874_v11 }
 0xa1c   :  { %7212 = vmatmul.mubr.msk.f32.vlgmr.msra.gmra.mxu1 %vm179_vm3, %v3546_v13  ;;  %7223 = vmatmul.mubr.msk.f32.vlgmr.msra.gmra.mxu0 %vm179_vm3, %v3546_v13 }
 0xa1d   :  { %7225 = vmatprep.subr.mxu1 %v7874_v11  ;;  %7236 = vmatprep.subr.mxu0 %v7874_v11 }
 0xa1e   :  { %7226 = vmatpush3.msra.mxu1 %v8619_v33  ;;  %7237 = vmatpush3.msra.mxu0 %v8702_v14 }
 0xa1f   :  { %7227 = vmatprep.subr.mxu1 %v7874_v11  ;;  %7238 = vmatprep.subr.mxu0 %v7874_v11 }
 0xa20   :  { %7228 = vmatpush3.msra.mxu1 %v8629_v1  ;;  %7239 = vmatpush3.msra.mxu0 %v8707_v25 }
 0xa21   :  { %7229 = vmatprep.subr.mxu1 %v7874_v11  ;;  %7240 = vmatprep.subr.mxu0 %v7874_v11 }
 0xa22   :  { %7230 = vmatpush3.msra.mxu1 %v8639_v3  ;;  %7241 = vmatpush3.msra.mxu0 %v8716_v28 }
 0xa23   :  { %7231 = vmatprep.subr.mxu1 %v7874_v11  ;;  %7242 = vmatprep.subr.mxu0 %v7874_v11 }
 0xa24   :  { %7232 = vmatpush3.msra.mxu1 %v8646_v10  ;;  %7243 = vmatpush3.msra.mxu0 %v8721_v30 }
 0xa25   :  { %7233 = vmatprep.mubr.msk.f32.mxu1 %vm7875_vm2, %v7874_v11  ;;  %7244 = vmatprep.mubr.msk.f32.mxu0 %vm7875_vm2, %v7874_v11 }
 0xa26   :  { %7247 = vmatprep.subr.mxu1 %v7874_v11  ;;  %7258 = vmatprep.subr.mxu0 %v7874_v11 }
 0xa4f   :  { %v3129_v31 = vpop.permute.xlu0 %3128  ;;  %v3161_v4 = vpop.permute.xlu1 %3160 }
 0xa50   :  { %3148 = vst.msk [vmem:[#allocation3 + $0x10] sm:$0xf] %vm289_vm4, %v3129_v31  ;;  %3180 = vst.msk [vmem:[#allocation4 + $0x10] sm:$0xf] %vm289_vm4, %v3161_v4  ;;  %v3945_v4 = vld [vmem:[#allocation3 + $0x8] sm:$0xf] }
 0xa53   :  { %v3193_v5 = vpop.permute.xlu0 %3192  ;;  %v3131_v6 = vpop.permute.xlu1 %3130 }
 0xa54   :  { %3212 = vst.msk [vmem:[#allocation5 + $0x10] sm:$0xf] %vm289_vm4, %v3193_v5  ;;  %3149 = vst.msk [vmem:[#allocation3 + $0x14] sm:$0xf] %vm289_vm4, %v3131_v6 }
 0xa57   :  { %v3163_v7 = vpop.permute.xlu0 %3162  ;;  %v3195_v8 = vpop.permute.xlu1 %3194 }
 0xa58   :  { %3181 = vst.msk [vmem:[#allocation4 + $0x14] sm:$0xf] %vm289_vm4, %v3163_v7  ;;  %3213 = vst.msk [vmem:[#allocation5 + $0x14] sm:$0xf] %vm289_vm4, %v3195_v8 }
 0xa5b   :  { %v3133_v9 = vpop.permute.xlu0 %3132  ;;  %v3165_v19 = vpop.permute.xlu1 %3164 }
 0xa5c   :  { %3150 = vst.msk [vmem:[#allocation3 + $0x18] sm:$0xf] %vm289_vm4, %v3133_v9  ;;  %3182 = vst.msk [vmem:[#allocation4 + $0x18] sm:$0xf] %vm289_vm4, %v3165_v19 }
 0xa5f   :  { %v3197_v20 = vpop.permute.xlu0 %3196  ;;  %v3135_v21 = vpop.permute.xlu1 %3134 }
 0xa60   :  { %3214 = vst.msk [vmem:[#allocation5 + $0x18] sm:$0xf] %vm289_vm4, %v3197_v20  ;;  %3151 = vst.msk [vmem:[#allocation3 + $0x1c] sm:$0xf] %vm289_vm4, %v3135_v21 }
 0xa63   :  { %v3167_v22 = vpop.permute.xlu0 %3166  ;;  %v3199_v23 = vpop.permute.xlu1 %3198 }
 0xa64   :  { %3183 = vst.msk [vmem:[#allocation4 + $0x1c] sm:$0xf] %vm289_vm4, %v3167_v22  ;;  %3215 = vst.msk [vmem:[#allocation5 + $0x1c] sm:$0xf] %vm289_vm4, %v3199_v23  ;;  %v4096_v23 = vld [vmem:[#allocation5 + $0x8] sm:$0xf] }
 0xad3   :  { %v3618_v26 = vpop.f32.mrf.mxu1  ;;  %v3696_v29 = vpop.f32.mrf.mxu0 }
 0xad4   :  { %v3622_v36 = vadd.f32 %v3618_v26, %v3548_v24  ;;  %v3700_v37 = vadd.f32 %v3696_v29, %v3629_v27  ;;  %v4023_v29 = vld [vmem:[#allocation4 + $0x8] sm:$0xf] }
 0xad5   :  { %v7191_v38 = vpop.f32.mrf.mxu1  ;;  %v7202_v40 = vpop.f32.mrf.mxu0 }
 0xad6   :  { %v6326_v41 = vmul.f32 -1.442695, %v3622_v36  ;;  %v6328_v42 = vmul.f32 -1.442695, %v3700_v37 }
 0xad8   :  { %7682 = vpow2.f32 %v6326_v41 }
 0xad9   :  { %7684 = vpow2.f32 %v6328_v42 }
 0xadc   :  { %v3774_v34 = vpop.f32.mrf.mxu1  ;;  %v3847_v35 = vpop.f32.mrf.mxu0 }
 0xadd   :  { %v3851_v39 = vadd.f32 %v3847_v35, %v3780_v45  ;;  %v3778_v50 = vadd.f32 %v3774_v34, %v3707_v48 }
 0xade   :  { %v7213_v46 = vpop.f32.mrf.mxu1  ;;  %v7224_v47 = vpop.f32.mrf.mxu0 }
 0xadf   :  { %v6331_v49 = vmul.f32 -1.442695, %v3851_v39 }
 0xae1   :  { %7686 = vpow2.f32 %v6331_v49 }
 0xae2   :  { %7688 = vtanh.f32 %v3778_v50 }
 0xae5   :  { %v7683_v51 = vpop.eup %7682 }
 0xae6   :  { %v7685_v53 = vpop.eup %7684  ;;  %v3626_v54 = vadd.f32 1.0, %v7683_v51 }
 0xae7   :  { %v3704_v55 = vadd.f32 1.0, %v7685_v53 }
 0xae8   :  { %7690 = vrcp.f32 %v3626_v54 }
 0xae9   :  { %7692 = vrcp.f32 %v3704_v55 }
 0xaee   :  { %v7687_v56 = vpop.eup %7686 }
 0xaef   :  { %v7689_v57 = vpop.eup %7688  ;;  %v3855_v52 = vadd.f32 1.0, %v7687_v56 }
 0xaf1   :  { %7694 = vrcp.f32 %v3855_v52 }
 0xaf5   :  { %v7691_v58 = vpop.eup %7690 }
 0xaf6   :  { %v7693_v59 = vpop.eup %7692  ;;  %v3859_v61 = vmul.f32 %v7691_v58, %v7689_v57 }
 0xaf7   :  { %v3858_v62 = vmul.f32 %v7693_v59, %v8833_v43  ;;  %v3864_v43 = vld [vmem:[#allocation2 + $0x8] sm:$0xf] }
 0xaf9   :  { %v8894_v63 = vadd.f32 %v3859_v61, %v3858_v62  ;;  %v4412_v62 = vld [vmem:[#allocation5 + $0xc] sm:$0xf] }
 0xafb   :  { %7696 = vtanh.f32 %v8894_v63 }
 0xafe   :  { %v7695_v44 = vpop.eup %7694 }
 0xb08   :  { %v7697_v32 = vpop.eup %7696 }
 0xb09   :  { %v3862_v13 = vmul.f32 %v7697_v32, %v7695_v44 }
 0xb0b   :  { %3863 = vst.msk [vmem:[#allocation6 + $0x4] sm:$0xf] %vm289_vm4, %v3862_v13  ;;  %7234 = vmatmul.mubr.msk.f32.vlgmr.msra.gmra.mxu1 %vm179_vm3, %v3862_v13  ;;  %7245 = vmatmul.mubr.msk.f32.vlgmr.msra.gmra.mxu0 %vm179_vm3, %v3862_v13 }
 0xb0c   :  { %7248 = vmatpush3.msra.mxu1 %v8655_v15  ;;  %7259 = vmatpush3.msra.mxu0 %v8762_v60 }
 0xb0d   :  { %7249 = vmatprep.subr.mxu1 %v7874_v11  ;;  %7260 = vmatprep.subr.mxu0 %v7874_v11 }
 0xb0e   :  { %7250 = vmatpush3.msra.mxu1 %v8665_v16  ;;  %7261 = vmatpush3.msra.mxu0 %v8768_v0 }
 0xb0f   :  { %7251 = vmatprep.subr.mxu1 %v7874_v11  ;;  %7262 = vmatprep.subr.mxu0 %v7874_v11 }
 0xb10   :  { %7252 = vmatpush3.msra.mxu1 %v8674_v17  ;;  %7263 = vmatpush3.msra.mxu0 %v8777_v2 }
 0xb11   :  { %7253 = vmatprep.subr.mxu1 %v7874_v11  ;;  %7264 = vmatprep.subr.mxu0 %v7874_v11 }
 0xb12   :  { %7254 = vmatpush3.msra.mxu1 %v8682_v18  ;;  %7255 = vmatprep.mubr.msk.f32.mxu1 %vm7875_vm2, %v7874_v11 }
 0xb13   :  { %7265 = vmatpush3.msra.mxu0 %v8784_v12  ;;  %7266 = vmatprep.mubr.msk.f32.mxu0 %vm7875_vm2, %v7874_v11 }
 0xb14   :  { %7256 = vmatmul.mubr.msk.f32.vlgmr.msra.gmra.mxu1 %vm179_vm3, %v3862_v13  ;;  %7267 = vmatmul.mubr.msk.f32.vlgmr.msra.gmra.mxu0 %vm179_vm3, %v3862_v13  ;;  %v4339_v13 = vld [vmem:[#allocation4 + $0xc] sm:$0xf] }
 0xb15   :  { %7269 = vmatprep.subr.mxu1 %v7874_v11  ;;  %7280 = vmatprep.subr.mxu0 %v7874_v11 }
 0xb16   :  { %7270 = vmatpush3.msra.mxu1 %v8619_v33  ;;  %7281 = vmatpush3.msra.mxu0 %v8702_v14 }
 0xb17   :  { %7271 = vmatprep.subr.mxu1 %v7874_v11  ;;  %7282 = vmatprep.subr.mxu0 %v7874_v11 }
 0xb18   :  { %7272 = vmatpush3.msra.mxu1 %v8629_v1  ;;  %7283 = vmatpush3.msra.mxu0 %v8707_v25 }
 0xb19   :  { %7273 = vmatprep.subr.mxu1 %v7874_v11  ;;  %7284 = vmatprep.subr.mxu0 %v7874_v11 }
 0xb1a   :  { %7274 = vmatpush3.msra.mxu1 %v8639_v3  ;;  %7285 = vmatpush3.msra.mxu0 %v8716_v28 }
 0xb1b   :  { %7275 = vmatprep.subr.mxu1 %v7874_v11  ;;  %7286 = vmatprep.subr.mxu0 %v7874_v11 }
 0xb1c   :  { %7276 = vmatpush3.msra.mxu1 %v8646_v10  ;;  %7287 = vmatpush3.msra.mxu0 %v8721_v30 }
 0xb1d   :  { %7277 = vmatprep.mubr.msk.f32.mxu1 %vm7875_vm2, %v7874_v11  ;;  %7288 = vmatprep.mubr.msk.f32.mxu0 %vm7875_vm2, %v7874_v11 }
 0xb1e   :  { %7291 = vmatprep.subr.mxu1 %v7874_v11  ;;  %7302 = vmatprep.subr.mxu0 %v7874_v11 }
 0xbcb   :  { %v3934_v31 = vpop.f32.mrf.mxu1  ;;  %v4012_v5 = vpop.f32.mrf.mxu0 }
 0xbcc   :  { %v3938_v6 = vadd.f32 %v3934_v31, %v3864_v43  ;;  %v4016_v7 = vadd.f32 %v4012_v5, %v3945_v4 }
 0xbcd   :  { %v7235_v8 = vpop.f32.mrf.mxu1  ;;  %v7246_v9 = vpop.f32.mrf.mxu0 }
 0xbce   :  { %v6333_v19 = vmul.f32 -1.442695, %v3938_v6  ;;  %v6335_v20 = vmul.f32 -1.442695, %v4016_v7 }
 0xbd0   :  { %7698 = vpow2.f32 %v6333_v19 }
 0xbd1   :  { %7700 = vpow2.f32 %v6335_v20 }
 0xbd4   :  { %v4090_v21 = vpop.f32.mrf.mxu1  ;;  %v4163_v22 = vpop.f32.mrf.mxu0 }
 0xbd5   :  { %v4167_v24 = vadd.f32 %v4163_v22, %v4096_v23  ;;  %v4094_v37 = vadd.f32 %v4090_v21, %v4023_v29 }
 0xbd6   :  { %v7257_v26 = vpop.f32.mrf.mxu1  ;;  %v7268_v27 = vpop.f32.mrf.mxu0 }
 0xbd7   :  { %v6338_v36 = vmul.f32 -1.442695, %v4167_v24 }
 0xbd9   :  { %7702 = vpow2.f32 %v6338_v36 }
 0xbda   :  { %7704 = vtanh.f32 %v4094_v37 }
 0xbdd   :  { %v7699_v38 = vpop.eup %7698 }
 0xbde   :  { %v7701_v40 = vpop.eup %7700  ;;  %v3942_v41 = vadd.f32 1.0, %v7699_v38 }
 0xbdf   :  { %v4020_v42 = vadd.f32 1.0, %v7701_v40 }
 0xbe0   :  { %7706 = vrcp.f32 %v3942_v41 }
 0xbe1   :  { %7708 = vrcp.f32 %v4020_v42 }
 0xbe6   :  { %v7703_v34 = vpop.eup %7702 }
 0xbe7   :  { %v7705_v35 = vpop.eup %7704  ;;  %v4171_v47 = vadd.f32 1.0, %v7703_v34 }
 0xbe9   :  { %7710 = vrcp.f32 %v4171_v47 }
 0xbed   :  { %v7707_v45 = vpop.eup %7706 }
 0xbee   :  { %v7709_v39 = vpop.eup %7708  ;;  %v4175_v46 = vmul.f32 %v7707_v45, %v7705_v35  ;;  %v4728_v45 = vld [vmem:[#allocation5 + $0x10] sm:$0xf] }
 0xbef   :  { %v4174_v48 = vmul.f32 %v7709_v39, %v8894_v63 }
 0xbf1   :  { %v8943_v49 = vadd.f32 %v4175_v46, %v4174_v48  ;;  %v4655_v48 = vld [vmem:[#allocation4 + $0x10] sm:$0xf] }
 0xbf3   :  { %7712 = vtanh.f32 %v8943_v49 }
 0xbf6   :  { %v7711_v50 = vpop.eup %7710 }
 0xc00   :  { %v7713_v51 = vpop.eup %7712 }
 0xc01   :  { %v4178_v53 = vmul.f32 %v7713_v51, %v7711_v50 }
 0xc03   :  { %4179 = vst.msk [vmem:[#allocation6 + $0x8] sm:$0xf] %vm289_vm4, %v4178_v53  ;;  %7278 = vmatmul.mubr.msk.f32.vlgmr.msra.gmra.mxu1 %vm179_vm3, %v4178_v53  ;;  %7289 = vmatmul.mubr.msk.f32.vlgmr.msra.gmra.mxu0 %vm179_vm3, %v4178_v53 }
 0xc04   :  { %7292 = vmatpush3.msra.mxu1 %v8655_v15  ;;  %7303 = vmatpush3.msra.mxu0 %v8762_v60 }
 0xc05   :  { %7293 = vmatprep.subr.mxu1 %v7874_v11  ;;  %7304 = vmatprep.subr.mxu0 %v7874_v11 }
 0xc06   :  { %7294 = vmatpush3.msra.mxu1 %v8665_v16  ;;  %7305 = vmatpush3.msra.mxu0 %v8768_v0 }
 0xc07   :  { %7295 = vmatprep.subr.mxu1 %v7874_v11  ;;  %7306 = vmatprep.subr.mxu0 %v7874_v11 }
 0xc08   :  { %7296 = vmatpush3.msra.mxu1 %v8674_v17  ;;  %7307 = vmatpush3.msra.mxu0 %v8777_v2 }
 0xc09   :  { %7297 = vmatprep.subr.mxu1 %v7874_v11  ;;  %7308 = vmatprep.subr.mxu0 %v7874_v11 }
 0xc0a   :  { %7298 = vmatpush3.msra.mxu1 %v8682_v18  ;;  %7299 = vmatprep.mubr.msk.f32.mxu1 %vm7875_vm2, %v7874_v11 }
 0xc0b   :  { %7309 = vmatpush3.msra.mxu0 %v8784_v12  ;;  %7310 = vmatprep.mubr.msk.f32.mxu0 %vm7875_vm2, %v7874_v11 }
 0xc0c   :  { %7300 = vmatmul.mubr.msk.f32.vlgmr.msra.gmra.mxu1 %vm179_vm3, %v4178_v53  ;;  %7311 = vmatmul.mubr.msk.f32.vlgmr.msra.gmra.mxu0 %vm179_vm3, %v4178_v53 }
 0xc0d   :  { %7313 = vmatprep.subr.mxu1 %v7874_v11  ;;  %7324 = vmatprep.subr.mxu0 %v7874_v11 }
 0xc0e   :  { %7314 = vmatpush3.msra.mxu1 %v8619_v33  ;;  %7325 = vmatpush3.msra.mxu0 %v8702_v14  ;;  %v4180_v33 = vld [vmem:[#allocation2 + $0xc] sm:$0xf] }
 0xc0f   :  { %7315 = vmatprep.subr.mxu1 %v7874_v11  ;;  %7326 = vmatprep.subr.mxu0 %v7874_v11 }
 0xc10   :  { %7316 = vmatpush3.msra.mxu1 %v8629_v1  ;;  %7327 = vmatpush3.msra.mxu0 %v8707_v25 }
 0xc11   :  { %7317 = vmatprep.subr.mxu1 %v7874_v11  ;;  %7328 = vmatprep.subr.mxu0 %v7874_v11 }
 0xc12   :  { %7318 = vmatpush3.msra.mxu1 %v8639_v3  ;;  %7329 = vmatpush3.msra.mxu0 %v8716_v28  ;;  %v4261_v3 = vld [vmem:[#allocation3 + $0xc] sm:$0xf] }
 0xc13   :  { %7319 = vmatprep.subr.mxu1 %v7874_v11  ;;  %7330 = vmatprep.subr.mxu0 %v7874_v11 }
 0xc14   :  { %7320 = vmatpush3.msra.mxu1 %v8646_v10  ;;  %7331 = vmatpush3.msra.mxu0 %v8721_v30 }
 0xc15   :  { %7321 = vmatprep.mubr.msk.f32.mxu1 %vm7875_vm2, %v7874_v11  ;;  %7332 = vmatprep.mubr.msk.f32.mxu0 %vm7875_vm2, %v7874_v11 }
 0xc16   :  { %7335 = vmatprep.subr.mxu1 %v7874_v11  ;;  %7346 = vmatprep.subr.mxu0 %v7874_v11 }
 0xcc3   :  { %v4250_v1 = vpop.f32.mrf.mxu1  ;;  %v4328_v54 = vpop.f32.mrf.mxu0 }
 0xcc4   :  { %v4254_v55 = vadd.f32 %v4250_v1, %v4180_v33  ;;  %v4332_v56 = vadd.f32 %v4328_v54, %v4261_v3 }
 0xcc5   :  { %v7279_v57 = vpop.f32.mrf.mxu1  ;;  %v7290_v10 = vpop.f32.mrf.mxu0 }
 0xcc6   :  { %v6340_v58 = vmul.f32 -1.442695, %v4254_v55  ;;  %v6342_v59 = vmul.f32 -1.442695, %v4332_v56 }
 0xcc8   :  { %7714 = vpow2.f32 %v6340_v58 }
 0xcc9   :  { %7716 = vpow2.f32 %v6342_v59 }
 0xccc   :  { %v4406_v61 = vpop.f32.mrf.mxu1  ;;  %v4479_v52 = vpop.f32.mrf.mxu0 }
 0xccd   :  { %v4483_v63 = vadd.f32 %v4479_v52, %v4412_v62  ;;  %v4410_v31 = vadd.f32 %v4406_v61, %v4339_v13  ;;  %v9140_v13 = vld [vmem:[%s9407_s7 + $0x20] sm:$0xff] }
 0xcce   :  { %v7301_v44 = vpop.f32.mrf.mxu1  ;;  %v7312_v32 = vpop.f32.mrf.mxu0 }
 0xccf   :  { %v6345_v43 = vmul.f32 -1.442695, %v4483_v63  ;;  %v9070_v63 = vld [vmem:[%s9407_s7 + $0x58] sm:$0xff]  ;;  %v9079_v44 = vld [vmem:[%s9407_s7 + $0x50] sm:$0xff]  ;;  %v9131_v32 = vld [vmem:[%s9407_s7 + $0x28] sm:$0xff] }
 0xcd1   :  { %7718 = vpow2.f32 %v6345_v43  ;;  %v4812_v43 = vld [vmem:[#allocation2 + $0x14] sm:$0xf] }
 0xcd2   :  { %7720 = vtanh.f32 %v4410_v31 }
 0xcd5   :  { %v7715_v4 = vpop.eup %7714 }
 0xcd6   :  { %v7717_v5 = vpop.eup %7716  ;;  %v4258_v6 = vadd.f32 1.0, %v7715_v4  ;;  %v4893_v4 = vld [vmem:[#allocation3 + $0x14] sm:$0xf] }
 0xcd7   :  { %v4336_v7 = vadd.f32 1.0, %v7717_v5 }
 0xcd8   :  { %7722 = vrcp.f32 %v4258_v6 }
 0xcd9   :  { %7724 = vrcp.f32 %v4336_v7 }
 0xcde   :  { %v7719_v8 = vpop.eup %7718 }
 0xcdf   :  { %v7721_v9 = vpop.eup %7720  ;;  %v4487_v22 = vadd.f32 1.0, %v7719_v8 }
 0xce1   :  { %7726 = vrcp.f32 %v4487_v22 }
 0xce5   :  { %v7723_v19 = vpop.eup %7722 }
 0xce6   :  { %v7725_v20 = vpop.eup %7724  ;;  %v4491_v21 = vmul.f32 %v7723_v19, %v7721_v9 }
 0xce7   :  { %v4490_v23 = vmul.f32 %v7725_v20, %v8943_v49 }
 0xce9   :  { %v8992_v24 = vadd.f32 %v4491_v21, %v4490_v23  ;;  %v5044_v23 = vld [vmem:[#allocation5 + $0x14] sm:$0xf] }
 0xceb   :  { %7728 = vtanh.f32 %v8992_v24 }
 0xcee   :  { %v7727_v26 = vpop.eup %7726 }
 0xcf8   :  { %v7729_v27 = vpop.eup %7728 }
 0xcf9   :  { %v4494_v29 = vmul.f32 %v7729_v27, %v7727_v26 }
 0xcfb   :  { %4495 = vst.msk [vmem:[#allocation6 + $0xc] sm:$0xf] %vm289_vm4, %v4494_v29  ;;  %7322 = vmatmul.mubr.msk.f32.vlgmr.msra.gmra.mxu1 %vm179_vm3, %v4494_v29  ;;  %7333 = vmatmul.mubr.msk.f32.vlgmr.msra.gmra.mxu0 %vm179_vm3, %v4494_v29 }
 0xcfc   :  { %7336 = vmatpush3.msra.mxu1 %v8655_v15  ;;  %7347 = vmatpush3.msra.mxu0 %v8762_v60  ;;  %v9023_v15 = vld [vmem:[%s9407_s7 + $0x18] sm:$0xff] }
 0xcfd   :  { %7337 = vmatprep.subr.mxu1 %v7874_v11  ;;  %7348 = vmatprep.subr.mxu0 %v7874_v11 }
 0xcfe   :  { %7338 = vmatpush3.msra.mxu1 %v8665_v16  ;;  %7349 = vmatpush3.msra.mxu0 %v8768_v0  ;;  %v9032_v16 = vld [vmem:[%s9407_s7 + $0x10] sm:$0xff] }
 0xcff   :  { %7339 = vmatprep.subr.mxu1 %v7874_v11  ;;  %7350 = vmatprep.subr.mxu0 %v7874_v11 }
 0xd00   :  { %7340 = vmatpush3.msra.mxu1 %v8674_v17  ;;  %7351 = vmatpush3.msra.mxu0 %v8777_v2  ;;  %v9041_v17 = vld [vmem:[%s9407_s7 + $0x8] sm:$0xff] }
 0xd01   :  { %7341 = vmatprep.subr.mxu1 %v7874_v11  ;;  %7352 = vmatprep.subr.mxu0 %v7874_v11 }
 0xd02   :  { %7342 = vmatpush3.msra.mxu1 %v8682_v18  ;;  %7343 = vmatprep.mubr.msk.f32.mxu1 %vm7875_vm2, %v7874_v11  ;;  %v9050_v18 = vld [vmem:[%s9407_s7] sm:$0xff] }
 0xd03   :  { %7353 = vmatpush3.msra.mxu0 %v8784_v12  ;;  %7354 = vmatprep.mubr.msk.f32.mxu0 %vm7875_vm2, %v7874_v11 }
 0xd04   :  { %7344 = vmatmul.mubr.msk.f32.vlgmr.msra.gmra.mxu1 %vm179_vm3, %v4494_v29  ;;  %7355 = vmatmul.mubr.msk.f32.vlgmr.msra.gmra.mxu0 %vm179_vm3, %v4494_v29  ;;  %v4971_v29 = vld [vmem:[#allocation4 + $0x14] sm:$0xf] }
 0xd05   :  { %7357 = vmatprep.subr.mxu1 %v7874_v11  ;;  %7368 = vmatprep.subr.mxu0 %v7874_v11 }
 0xd06   :  { %7358 = vmatpush3.msra.mxu1 %v9023_v15  ;;  %7369 = vmatpush3.msra.mxu0 %v8702_v14  ;;  %v4496_v14 = vld [vmem:[#allocation2 + $0x10] sm:$0xf] }
 0xd07   :  { %7359 = vmatprep.subr.mxu1 %v7874_v11  ;;  %7370 = vmatprep.subr.mxu0 %v7874_v11 }
 0xd08   :  { %7360 = vmatpush3.msra.mxu1 %v9032_v16  ;;  %7371 = vmatpush3.msra.mxu0 %v8707_v25 }
 0xd09   :  { %7361 = vmatprep.subr.mxu1 %v7874_v11  ;;  %7372 = vmatprep.subr.mxu0 %v7874_v11 }
 0xd0a   :  { %7362 = vmatpush3.msra.mxu1 %v9041_v17  ;;  %7373 = vmatpush3.msra.mxu0 %v8716_v28  ;;  %v4577_v28 = vld [vmem:[#allocation3 + $0x10] sm:$0xf] }
 0xd0b   :  { %7363 = vmatprep.subr.mxu1 %v7874_v11  ;;  %7374 = vmatprep.subr.mxu0 %v7874_v11 }
 0xd0c   :  { %7364 = vmatpush3.msra.mxu1 %v9050_v18  ;;  %7375 = vmatpush3.msra.mxu0 %v8721_v30 }
 0xd0d   :  { %7365 = vmatprep.mubr.msk.f32.mxu1 %vm7875_vm2, %v7874_v11  ;;  %7376 = vmatprep.mubr.msk.f32.mxu0 %vm7875_vm2, %v7874_v11 }
 0xd0e   :  { %7379 = vmatprep.subr.mxu1 %v7874_v11  ;;  %7390 = vmatprep.subr.mxu0 %v7874_v11 }
 0xdbb   :  { %v4566_v25 = vpop.f32.mrf.mxu1  ;;  %v4644_v36 = vpop.f32.mrf.mxu0 }
 0xdbc   :  { %v4570_v37 = vadd.f32 %v4566_v25, %v4496_v14  ;;  %v4648_v38 = vadd.f32 %v4644_v36, %v4577_v28 }
 0xdbd   :  { %v7323_v40 = vpop.f32.mrf.mxu1  ;;  %v7334_v41 = vpop.f32.mrf.mxu0 }
 0xdbe   :  { %v6347_v42 = vmul.f32 -1.442695, %v4570_v37  ;;  %v6349_v30 = vmul.f32 -1.442695, %v4648_v38 }
 0xdc0   :  { %7730 = vpow2.f32 %v6347_v42 }
 0xdc1   :  { %7732 = vpow2.f32 %v6349_v30 }
 0xdc4   :  { %v4722_v34 = vpop.f32.mrf.mxu1  ;;  %v4795_v35 = vpop.f32.mrf.mxu0 }
 0xdc5   :  { %v4799_v39 = vadd.f32 %v4795_v35, %v4728_v45  ;;  %v4726_v50 = vadd.f32 %v4722_v34, %v4655_v48 }
 0xdc6   :  { %v7345_v46 = vpop.f32.mrf.mxu1  ;;  %v7356_v47 = vpop.f32.mrf.mxu0 }
 0xdc7   :  { %v6352_v49 = vmul.f32 -1.442695, %v4799_v39 }
 0xdc9   :  { %7734 = vpow2.f32 %v6352_v49  ;;  %v9160_v49 = vld [vmem:[%s9407_s7 + $0x78] sm:$0xff] }
 0xdca   :  { %7736 = vtanh.f32 %v4726_v50  ;;  %v9169_v50 = vld [vmem:[%s9407_s7 + $0x70] sm:$0xff] }
 0xdcd   :  { %v7731_v51 = vpop.eup %7730 }
 0xdce   :  { %v7733_v53 = vpop.eup %7732  ;;  %v4574_v33 = vadd.f32 1.0, %v7731_v51  ;;  %v9178_v51 = vld [vmem:[%s9407_s7 + $0x68] sm:$0xff] }
 0xdcf   :  { %v4652_v1 = vadd.f32 1.0, %v7733_v53  ;;  %v9189_v53 = vld [vmem:[%s9407_s7 + $0x60] sm:$0xff] }
 0xdd0   :  { %7738 = vrcp.f32 %v4574_v33 }
 0xdd1   :  { %7740 = vrcp.f32 %v4652_v1 }
 0xdd6   :  { %v7735_v3 = vpop.eup %7734 }
 0xdd7   :  { %v7737_v54 = vpop.eup %7736  ;;  %v4803_v10 = vadd.f32 1.0, %v7735_v3 }
 0xdd9   :  { %7742 = vrcp.f32 %v4803_v10 }
 0xddd   :  { %v7739_v55 = vpop.eup %7738 }
 0xdde   :  { %v7741_v56 = vpop.eup %7740  ;;  %v4807_v57 = vmul.f32 %v7739_v55, %v7737_v54 }
 0xddf   :  { %v4806_v58 = vmul.f32 %v7741_v56, %v8992_v24 }
 0xde1   :  { %v9061_v59 = vadd.f32 %v4807_v57, %v4806_v58  ;;  %v5360_v58 = vld [vmem:[#allocation5 + $0x18] sm:$0xf] }
 0xde3   :  { %7744 = vtanh.f32 %v9061_v59 }
 0xde6   :  { %v7743_v61 = vpop.eup %7742 }
 0xdf0   :  { %v7745_v52 = vpop.eup %7744 }
 0xdf1   :  { %v4810_v62 = vmul.f32 %v7745_v52, %v7743_v61 }
 0xdf3   :  { %4811 = vst.msk [vmem:[#allocation6 + $0x10] sm:$0xf] %vm289_vm4, %v4810_v62  ;;  %7366 = vmatmul.mubr.msk.f32.vlgmr.msra.gmra.mxu1 %vm179_vm3, %v4810_v62  ;;  %7377 = vmatmul.mubr.msk.f32.vlgmr.msra.gmra.mxu0 %vm179_vm3, %v4810_v62 }
 0xdf4   :  { %7380 = vmatpush3.msra.mxu1 %v9070_v63  ;;  %7391 = vmatpush3.msra.mxu0 %v8762_v60  ;;  %v9088_v60 = vld [vmem:[%s9407_s7 + $0x48] sm:$0xff] }
 0xdf5   :  { %7381 = vmatprep.subr.mxu1 %v7874_v11  ;;  %7392 = vmatprep.subr.mxu0 %v7874_v11 }
 0xdf6   :  { %7382 = vmatpush3.msra.mxu1 %v9079_v44  ;;  %7393 = vmatpush3.msra.mxu0 %v8768_v0  ;;  %v9097_v0 = vld [vmem:[%s9407_s7 + $0x40] sm:$0xff] }
 0xdf7   :  { %7383 = vmatprep.subr.mxu1 %v7874_v11  ;;  %7394 = vmatprep.subr.mxu0 %v7874_v11 }
 0xdf8   :  { %7384 = vmatpush3.msra.mxu1 %v9088_v60  ;;  %7395 = vmatpush3.msra.mxu0 %v8777_v2  ;;  %v9113_v2 = vld [vmem:[%s9407_s7 + $0x38] sm:$0xff] }
 0xdf9   :  { %7385 = vmatprep.subr.mxu1 %v7874_v11  ;;  %7396 = vmatprep.subr.mxu0 %v7874_v11 }
 0xdfa   :  { %7386 = vmatpush3.msra.mxu1 %v9097_v0  ;;  %7387 = vmatprep.mubr.msk.f32.mxu1 %vm7875_vm2, %v7874_v11 }
 0xdfb   :  { %7397 = vmatpush3.msra.mxu0 %v8784_v12  ;;  %7398 = vmatprep.mubr.msk.f32.mxu0 %vm7875_vm2, %v7874_v11  ;;  %v9122_v12 = vld [vmem:[%s9407_s7 + $0x30] sm:$0xff] }
 0xdfc   :  { %7388 = vmatmul.mubr.msk.f32.vlgmr.msra.gmra.mxu1 %vm179_vm3, %v4810_v62  ;;  %7399 = vmatmul.mubr.msk.f32.vlgmr.msra.gmra.mxu0 %vm179_vm3, %v4810_v62  ;;  %v5287_v62 = vld [vmem:[#allocation4 + $0x18] sm:$0xf] }
 0xdfd   :  { %7401 = vmatprep.subr.mxu1 %v7874_v11  ;;  %7412 = vmatprep.subr.mxu0 %v7874_v11 }
 0xdfe   :  { %7402 = vmatpush3.msra.mxu1 %v9023_v15  ;;  %7413 = vmatpush3.msra.mxu0 %v9113_v2 }
 0xdff   :  { %7403 = vmatprep.subr.mxu1 %v7874_v11  ;;  %7414 = vmatprep.subr.mxu0 %v7874_v11 }
 0xe00   :  { %7404 = vmatpush3.msra.mxu1 %v9032_v16  ;;  %7415 = vmatpush3.msra.mxu0 %v9122_v12 }
 0xe01   :  { %7405 = vmatprep.subr.mxu1 %v7874_v11  ;;  %7416 = vmatprep.subr.mxu0 %v7874_v11 }
 0xe02   :  { %7406 = vmatpush3.msra.mxu1 %v9041_v17  ;;  %7417 = vmatpush3.msra.mxu0 %v9131_v32 }
 0xe03   :  { %7407 = vmatprep.subr.mxu1 %v7874_v11  ;;  %7418 = vmatprep.subr.mxu0 %v7874_v11 }
 0xe04   :  { %7408 = vmatpush3.msra.mxu1 %v9050_v18  ;;  %7419 = vmatpush3.msra.mxu0 %v9140_v13 }
 0xe05   :  { %7409 = vmatprep.mubr.msk.f32.mxu1 %vm7875_vm2, %v7874_v11  ;;  %7420 = vmatprep.mubr.msk.f32.mxu0 %vm7875_vm2, %v7874_v11 }
 0xe06   :  { %7423 = vmatprep.subr.mxu1 %v7874_v11  ;;  %7434 = vmatprep.subr.mxu0 %v7874_v11 }
 0xeb3   :  { %v4882_v31 = vpop.f32.mrf.mxu1  ;;  %v4960_v5 = vpop.f32.mrf.mxu0 }
 0xeb4   :  { %v4886_v6 = vadd.f32 %v4882_v31, %v4812_v43  ;;  %v4964_v7 = vadd.f32 %v4960_v5, %v4893_v4 }
 0xeb5   :  { %v7367_v8 = vpop.f32.mrf.mxu1  ;;  %v7378_v9 = vpop.f32.mrf.mxu0 }
 0xeb6   :  { %v6354_v19 = vmul.f32 -1.442695, %v4886_v6  ;;  %v6356_v20 = vmul.f32 -1.442695, %v4964_v7 }
 0xeb8   :  { %7746 = vpow2.f32 %v6354_v19 }
 0xeb9   :  { %7748 = vpow2.f32 %v6356_v20 }
 0xebc   :  { %v5038_v21 = vpop.f32.mrf.mxu1  ;;  %v5111_v22 = vpop.f32.mrf.mxu0 }
 0xebd   :  { %v5115_v24 = vadd.f32 %v5111_v22, %v5044_v23  ;;  %v5042_v25 = vadd.f32 %v5038_v21, %v4971_v29  ;;  %v9264_v29 = vld [vmem:[#allocation6 + $0xc] sm:$0xf] }
 0xebe   :  { %v7389_v26 = vpop.f32.mrf.mxu1  ;;  %v7400_v27 = vpop.f32.mrf.mxu0 }
 0xebf   :  { %v6359_v14 = vmul.f32 -1.442695, %v5115_v24  ;;  %v9235_v24 = vld [vmem:[#allocation6 + $0x4] sm:$0xf]  ;;  %v5769_v26 = vld [vmem:[%s9409_s9 + $0x8] sm:$0xff] }
 0xec0   :  { %v5768_v27 = vld [vmem:[%s9409_s9] sm:$0xff] }
 0xec1   :  { %7750 = vpow2.f32 %v6359_v14 }
 0xec2   :  { %7752 = vtanh.f32 %v5042_v25  ;;  %v9268_v25 = vld [vmem:[#allocation6 + $0x8] sm:$0xf] }
 0xec5   :  { %v7747_v28 = vpop.eup %7746 }
 0xec6   :  { %v7749_v36 = vpop.eup %7748  ;;  %v4890_v37 = vadd.f32 1.0, %v7747_v28  ;;  %v5788_v28 = vcombine.low %v9268_v25, %v9264_v29 }
 0xec7   :  { %v4968_v38 = vadd.f32 1.0, %v7749_v36  ;;  %v9272_v36 = vld [vmem:[#allocation6 + $0x10] sm:$0xf] }
 0xec8   :  { %7754 = vrcp.f32 %v4890_v37 }
 0xec9   :  { %7756 = vrcp.f32 %v4968_v38  ;;  %v5889_v38 = vld [vmem:[%s9411_s11 + $0x8] sm:$0xff] }
 0xece   :  { %v7751_v40 = vpop.eup %7750 }
 0xecf   :  { %v7753_v41 = vpop.eup %7752  ;;  %v5119_v35 = vadd.f32 1.0, %v7751_v40  ;;  %v5888_v40 = vld [vmem:[%s9411_s11] sm:$0xff] }
 0xed1   :  { %7758 = vrcp.f32 %v5119_v35 }
 0xed5   :  { %v7755_v42 = vpop.eup %7754 }
 0xed6   :  { %v7757_v30 = vpop.eup %7756  ;;  %v5123_v34 = vmul.f32 %v7755_v42, %v7753_v41  ;;  %v5444_v41 = vld [vmem:[#allocation2 + $0x1c] sm:$0xf] }
 0xed7   :  { %v5122_v45 = vmul.f32 %v7757_v30, %v9061_v59  ;;  %v5525_v30 = vld [vmem:[#allocation3 + $0x1c] sm:$0xf] }
 0xed9   :  { %v9150_v39 = vadd.f32 %v5123_v34, %v5122_v45 }
 0xedb   :  { %7760 = vtanh.f32 %v9150_v39 }
 0xede   :  { %v7759_v46 = vpop.eup %7758 }
 0xee8   :  { %v7761_v47 = vpop.eup %7760 }
 0xee9   :  { %v5126_v48 = vmul.f32 %v7761_v47, %v7759_v46 }
 0xeeb   :  { %5127 = vst.msk [vmem:[#allocation6 + $0x14] sm:$0xf] %vm289_vm4, %v5126_v48  ;;  %7410 = vmatmul.mubr.msk.f32.vlgmr.msra.gmra.mxu1 %vm179_vm3, %v5126_v48  ;;  %7421 = vmatmul.mubr.msk.f32.vlgmr.msra.gmra.mxu0 %vm179_vm3, %v5126_v48 }
 0xeec   :  { %7424 = vmatpush3.msra.mxu1 %v9070_v63  ;;  %7435 = vmatpush3.msra.mxu0 %v9160_v49 }
 0xeed   :  { %7425 = vmatprep.subr.mxu1 %v7874_v11  ;;  %7436 = vmatprep.subr.mxu0 %v7874_v11 }
 0xeee   :  { %7426 = vmatpush3.msra.mxu1 %v9079_v44  ;;  %7437 = vmatpush3.msra.mxu0 %v9169_v50 }
 0xeef   :  { %7427 = vmatprep.subr.mxu1 %v7874_v11  ;;  %7438 = vmatprep.subr.mxu0 %v7874_v11 }
 0xef0   :  { %7428 = vmatpush3.msra.mxu1 %v9088_v60  ;;  %7439 = vmatpush3.msra.mxu0 %v9178_v51 }
 0xef1   :  { %7429 = vmatprep.subr.mxu1 %v7874_v11  ;;  %7440 = vmatprep.subr.mxu0 %v7874_v11 }
 0xef2   :  { %7430 = vmatpush3.msra.mxu1 %v9097_v0  ;;  %7431 = vmatprep.mubr.msk.f32.mxu1 %vm7875_vm2, %v7874_v11  ;;  %v9266_v14 = vld [vmem:[#allocation6 + $0x14] sm:$0xf] }
 0xef3   :  { %7441 = vmatpush3.msra.mxu0 %v9189_v53  ;;  %7442 = vmatprep.mubr.msk.f32.mxu0 %vm7875_vm2, %v7874_v11  ;;  %v5789_v37 = vcombine.low %v9272_v36, %v9266_v14 }
 0xef4   :  { %7432 = vmatmul.mubr.msk.f32.vlgmr.msra.gmra.mxu1 %vm179_vm3, %v5126_v48  ;;  %7443 = vmatmul.mubr.msk.f32.vlgmr.msra.gmra.mxu0 %vm179_vm3, %v5126_v48 }
 0xef5   :  { %7445 = vmatprep.subr.mxu1 %v7874_v11  ;;  %7456 = vmatprep.subr.mxu0 %v7874_v11 }
 0xef6   :  { %7446 = vmatpush3.msra.mxu1 %v9023_v15  ;;  %7457 = vmatpush3.msra.mxu0 %v9113_v2  ;;  %v5128_v15 = vld [vmem:[#allocation2 + $0x18] sm:$0xf] }
 0xef7   :  { %7447 = vmatprep.subr.mxu1 %v7874_v11  ;;  %7458 = vmatprep.subr.mxu0 %v7874_v11 }
 0xef8   :  { %7448 = vmatpush3.msra.mxu1 %v9032_v16  ;;  %7459 = vmatpush3.msra.mxu0 %v9122_v12 }
 0xef9   :  { %7449 = vmatprep.subr.mxu1 %v7874_v11  ;;  %7460 = vmatprep.subr.mxu0 %v7874_v11 }
 0xefa   :  { %7450 = vmatpush3.msra.mxu1 %v9041_v17  ;;  %7461 = vmatpush3.msra.mxu0 %v9131_v32  ;;  %v5209_v17 = vld [vmem:[#allocation3 + $0x18] sm:$0xf] }
 0xefb   :  { %7451 = vmatprep.subr.mxu1 %v7874_v11  ;;  %7462 = vmatprep.subr.mxu0 %v7874_v11 }
 0xefc   :  { %7452 = vmatpush3.msra.mxu1 %v9050_v18  ;;  %7463 = vmatpush3.msra.mxu0 %v9140_v13 }
 0xefd   :  { %7453 = vmatprep.mubr.msk.f32.mxu1 %vm7875_vm2, %v7874_v11  ;;  %7464 = vmatprep.mubr.msk.f32.mxu0 %vm7875_vm2, %v7874_v11 }
 0xefe   :  { %7467 = vmatprep.subr.mxu1 %v7874_v11  ;;  %7478 = vmatprep.subr.mxu0 %v7874_v11 }
 0xfab   :  { %v5198_v16 = vpop.f32.mrf.mxu1  ;;  %v5276_v33 = vpop.f32.mrf.mxu0 }
 0xfac   :  { %v5202_v1 = vadd.f32 %v5198_v16, %v5128_v15  ;;  %v5280_v3 = vadd.f32 %v5276_v33, %v5209_v17  ;;  %v5603_v17 = vld [vmem:[#allocation4 + $0x1c] sm:$0xf] }
 0xfad   :  { %v7411_v54 = vpop.f32.mrf.mxu1  ;;  %v7422_v18 = vpop.f32.mrf.mxu0 }
 0xfae   :  { %v6361_v55 = vmul.f32 -1.442695, %v5202_v1  ;;  %v6363_v56 = vmul.f32 -1.442695, %v5280_v3  ;;  %v6374_v18 = vld [vmem:[%s9410_s10] ss:$0 sm:$0xff] }
 0xfaf   :  { %s6220_s10 = sshll.u32 %s7879_s2, 4  ;;  %s6221_s10 = int_to_ptr.vmem [resolvable:$true] %s6220_s10 }
 0xfb0   :  { %7762 = vpow2.f32 %v6361_v55  ;;  %s7852_s30 = scalar_lea.vmem %s6221_s10, 64  ;;  %p7857_p1 = scmp.lt.s32.totalorder %s6221_s10, %s6221_s10 }
 0xfb1   :  { %7764 = vpow2.f32 %v6363_v56  ;;  %p7853_p0 = scmp.ne.s32.totalorder %s6221_s10, %s7852_s30  ;;  %p7858_p2 = scmp.lt.s32.totalorder %s7852_s30, %s7852_s30 }
 0xfb3   :  { %p7859_p3 = por %p7858_p2, %p7857_p1 }
 0xfb4   :  { %v5354_v57 = vpop.f32.mrf.mxu1  ;;  %v5427_v10 = vpop.f32.mrf.mxu0 }
 0xfb5   :  { %v5431_v59 = vadd.f32 %v5427_v10, %v5360_v58  ;;  %v5358_v12 = vadd.f32 %v5354_v57, %v5287_v62  ;;  %p7860_p4 = pnand %p7859_p3, %p7853_p0 }
 0xfb6   :  { %v7433_v61 = vpop.f32.mrf.mxu1  ;;  %v7444_v52 = vpop.f32.mrf.mxu0 }
 0xfb7   :  { %v6366_v2 = vmul.f32 -1.442695, %v5431_v59 }
 0xfb9   :  { %7766 = vpow2.f32 %v6366_v2 }
 0xfba   :  { %7768 = vtanh.f32 %v5358_v12 }
 0xfbd   :  { %v7763_v32 = vpop.eup %7762 }
 0xfbe   :  { %v7765_v13 = vpop.eup %7764  ;;  %v5206_v43 = vadd.f32 1.0, %v7763_v32 }
 0xfbf   :  { %v5284_v31 = vadd.f32 1.0, %v7765_v13 }
 0xfc0   :  { %7770 = vrcp.f32 %v5206_v43 }
 0xfc1   :  { %7772 = vrcp.f32 %v5284_v31 }
 0xfc6   :  { %v7767_v4 = vpop.eup %7766 }
 0xfc7   :  { %v7769_v5 = vpop.eup %7768  ;;  %v5435_v9 = vadd.f32 1.0, %v7767_v4 }
 0xfc9   :  { %7774 = vrcp.f32 %v5435_v9 }
 0xfcd   :  { %v7771_v6 = vpop.eup %7770 }
 0xfce   :  { %v7773_v7 = vpop.eup %7772  ;;  %v5439_v8 = vmul.f32 %v7771_v6, %v7769_v5 }
 0xfcf   :  { %v5438_v19 = vmul.f32 %v7773_v7, %v9150_v39 }
 0xfd1   :  { %v9219_v20 = vadd.f32 %v5439_v8, %v5438_v19 }
 0xfd3   :  { %7776 = vtanh.f32 %v9219_v20 }
 0xfd6   :  { %v7775_v21 = vpop.eup %7774 }
 0xfe0   :  { %v7777_v22 = vpop.eup %7776 }
 0xfe1   :  { %v5442_v23 = vmul.f32 %v7777_v22, %v7775_v21 }
 0xfe3   :  { %5443 = vst.msk [vmem:[#allocation6 + $0x18] sm:$0xf] %vm289_vm4, %v5442_v23  ;;  %7454 = vmatmul.mubr.msk.f32.vlgmr.msra.gmra.mxu1 %vm179_vm3, %v5442_v23  ;;  %7465 = vmatmul.mubr.msk.f32.vlgmr.msra.gmra.mxu0 %vm179_vm3, %v5442_v23 }
 0xfe4   :  { %7468 = vmatpush3.msra.mxu1 %v9070_v63  ;;  %7479 = vmatpush3.msra.mxu0 %v9160_v49  ;;  %v5771_v63 = vld [vmem:[%s9409_s9 + $0x18] sm:$0xff] }
 0xfe5   :  { %7469 = vmatprep.subr.mxu1 %v7874_v11  ;;  %7480 = vmatprep.subr.mxu0 %v7874_v11 }
 0xfe6   :  { %7470 = vmatpush3.msra.mxu1 %v9079_v44  ;;  %7481 = vmatpush3.msra.mxu0 %v9169_v50  ;;  %v9245_v44 = vld [vmem:[#allocation6] sm:$0xf] }
 0xfe7   :  { %7471 = vmatprep.subr.mxu1 %v7874_v11  ;;  %7482 = vmatprep.subr.mxu0 %v7874_v11 }
 0xfe8   :  { %7472 = vmatpush3.msra.mxu1 %v9088_v60  ;;  %7483 = vmatpush3.msra.mxu0 %v9178_v51  ;;  %v5787_v60 = vcombine.low %v9245_v44, %v9235_v24  ;;  %v5676_v51 = vld [vmem:[#allocation5 + $0x1c] sm:$0xf] }
 0xfe9   :  { %7473 = vmatprep.subr.mxu1 %v7874_v11  ;;  %7484 = vmatprep.subr.mxu0 %v7874_v11 }
 0xfea   :  { %7474 = vmatpush3.msra.mxu1 %v9097_v0  ;;  %7475 = vmatprep.mubr.msk.f32.mxu1 %vm7875_vm2, %v7874_v11  ;;  %v5770_v0 = vld [vmem:[%s9409_s9 + $0x10] sm:$0xff]  ;;  %v9292_v8 = vld [vmem:[#allocation6 + $0x18] sm:$0xf] }
 0xfeb   :  { %7485 = vmatpush3.msra.mxu0 %v9189_v53  ;;  %7486 = vmatprep.mubr.msk.f32.mxu0 %vm7875_vm2, %v7874_v11 }
 0xfec   :  { %7476 = vmatmul.mubr.msk.f32.vlgmr.msra.gmra.mxu1 %vm179_vm3, %v5442_v23  ;;  %7487 = vmatmul.mubr.msk.f32.vlgmr.msra.gmra.mxu0 %vm179_vm3, %v5442_v23 }
 0xfed   :  { %7489 = vmatprep.subr.mxu1 %v5771_v63  ;;  %7497 = vmatprep.mubr.msk.f32.mxu1 %vm179_vm3, %v5787_v60 }
 0xfee   :  { %7490 = vmatpush3.msra.mxu1 %v5771_v63  ;;  %7503 = vmatprep.subr.mxu0 %v5889_v38 }
 0xfef   :  { %7491 = vmatprep.subr.mxu1 %v5770_v0  ;;  %7504 = vmatpush3.msra.mxu0 %v5889_v38 }
 0xff0   :  { %7492 = vmatpush3.msra.mxu1 %v5770_v0  ;;  %7505 = vmatprep.subr.mxu0 %v5888_v40 }
 0xff1   :  { %7493 = vmatprep.subr.mxu1 %v5769_v26  ;;  %7506 = vmatpush3.msra.mxu0 %v5888_v40 }
 0xff2   :  { %7494 = vmatpush3.msra.mxu1 %v5769_v26  ;;  %7513 = vmatprep.subr.mxu0 %v7874_v11  ;;  %v6379_v26 = vld [vmem:[%s9412_s12] ss:$0 sm:$0xff] }
 0xff3   :  { %7495 = vmatprep.subr.mxu1 %v5768_v27 }
 0xff4   :  { %7496 = vmatpush3.msra.mxu1 %v5768_v27 }
 0xff5   :  { %7498 = vmatmul.mubr.msk.f32.vlgmr.msra.gmra.mxu1 %vm179_vm3, %v5788_v28 }
 0xff6   :  { %7500 = vmatprep.mubr.msk.f32.mxu1 %vm179_vm3, %v5789_v37 }
0x10a3   :  { %v5514_v42 = vpop.f32.mrf.mxu1  ;;  %v5592_v34 = vpop.f32.mrf.mxu0 }
0x10a4   :  { %v5518_v35 = vadd.f32 %v5514_v42, %v5444_v41  ;;  %v5596_v45 = vadd.f32 %v5592_v34, %v5525_v30 }
0x10a5   :  { %v7455_v39 = vpop.f32.mrf.mxu1  ;;  %v7466_v46 = vpop.f32.mrf.mxu0 }
0x10a6   :  { %v6368_v47 = vmul.f32 -1.442695, %v5518_v35  ;;  %v6370_v48 = vmul.f32 -1.442695, %v5596_v45 }
0x10a8   :  { %7778 = vpow2.f32 %v6368_v47 }
0x10a9   :  { %7780 = vpow2.f32 %v6370_v48 }
0x10ac   :  { %v5670_v49 = vpop.f32.mrf.mxu1  ;;  %v5743_v50 = vpop.f32.mrf.mxu0 }
0x10ad   :  { %v5747_v53 = vadd.f32 %v5743_v50, %v5676_v51  ;;  %v5674_v1 = vadd.f32 %v5670_v49, %v5603_v17 }
0x10ae   :  { %v7477_v15 = vpop.f32.mrf.mxu1  ;;  %v7488_v16 = vpop.f32.mrf.mxu0 }
0x10af   :  { %v6373_v33 = vmul.f32 -1.442695, %v5747_v53 }
0x10b1   :  { %7782 = vpow2.f32 %v6373_v33 }
0x10b2   :  { %7784 = vtanh.f32 %v5674_v1 }
0x10b5   :  { %v7779_v3 = vpop.eup %7778  ;;  %v7499_v54 = vpop.f32.mrf.mxu1 }
0x10b6   :  { %v7781_v55 = vpop.eup %7780  ;;  %v5522_v56 = vadd.f32 1.0, %v7779_v3  ;;  %v5871_v58 = vadd.f32 %v7499_v54, %v6374_v18 }
0x10b7   :  { %v5600_v57 = vadd.f32 1.0, %v7781_v55  ;;  %v5865_v10 = vpop.f32.mrf.mxu1 }
0x10b8   :  { %7786 = vrcp.f32 %v5522_v56  ;;  %v5866_v59 = vadd.f32 %v6374_v18, %v5865_v10 }
0x10b9   :  { %7788 = vrcp.f32 %v5600_v57 }
0x10ba   :  { %7790 = vtanh.f32 %v5866_v59 }
0x10bb   :  { %7792 = vtanh.f32 %v5871_v58 }
0x10be   :  { %v7783_v61 = vpop.eup %7782 }
0x10bf   :  { %v7785_v52 = vpop.eup %7784  ;;  %v5751_v32 = vadd.f32 1.0, %v7783_v61 }
0x10c1   :  { %7794 = vrcp.f32 %v5751_v32 }
0x10c5   :  { %v7787_v62 = vpop.eup %7786 }
0x10c6   :  { %v7789_v2 = vpop.eup %7788  ;;  %v5755_v12 = vmul.f32 %v7787_v62, %v7785_v52 }
0x10c7   :  { %v5754_v13 = vmul.f32 %v7789_v2, %v9219_v20  ;;  %v7791_v43 = vpop.eup %7790 }
0x10c8   :  { %v7793_v31 = vpop.eup %7792  ;;  %7507 = vmatprep.mubr.msk.f32.mxu0 %vm5897_vm5, %v7791_v43 }
0x10c9   :  { %v5756_v4 = vadd.f32 %v5755_v12, %v5754_v13  ;;  %7508 = vmatmul.mubr.msk.f32.vlgmr.msra.gmra.mxu0 %vm5897_vm5, %v7793_v31 }
0x10cb   :  { %7796 = vtanh.f32 %v5756_v4 }
0x10ce   :  { %v7795_v5 = vpop.eup %7794 }
0x10d8   :  { %v7797_v6 = vpop.eup %7796 }
0x10d9   :  { %v5758_v7 = vmul.f32 %v7797_v6, %v7795_v5 }
0x10db   :  { %5759 = vst.msk [vmem:[#allocation6 + $0x1c] sm:$0xf] %vm289_vm4, %v5758_v7 }
0x10e2   :  { %v9294_v9 = vld [vmem:[#allocation6 + $0x1c] sm:$0xf] }
0x10e3   :  { %v5790_v19 = vcombine.low %v9292_v8, %v9294_v9 }
0x10e5   :  { %7501 = vmatmul.mubr.msk.f32.gmra.mxu1 %vm179_vm3, %v5790_v19 }
0x1189   :  { %v7509_v0 = vpop.f32.mrf.mxu0 }
0x118a   :  { %v5982_v27 = vadd.f32 %v7509_v0, %v6379_v26 }
0x118b   :  { %v5976_v28 = vpop.f32.mrf.mxu0 }
0x118c   :  { %v5977_v37 = vadd.f32 %v6379_v26, %v5976_v28  ;;  %v6000_v38 = vcombine.high %v5982_v27, %v5982_v27  ;;  %v6010_v50 = vsel %vm6007_vm6, %v5982_v27, -inf }
0x118e   :  { %v5999_v30 = vcombine.high %v5977_v37, %v5977_v37  ;;  %v6011_v45 = vsel %vm6007_vm6, %v6000_v38, -inf  ;;  %v6008_v51 = vsel %vm6007_vm6, %v5977_v37, -inf }
0x1190   :  { %v6009_v53 = vsel %vm6007_vm6, %v5999_v30, -inf }
0x11a5   :  { %v7502_v20 = vpop.f32.mrf.mxu1 }
0x11a6   :  { %v5881_v21 = vadd.f32 %v7502_v20, %v6374_v18 }
0x11a7   :  { %v5875_v22 = vpop.f32.mrf.mxu1 }
0x11a8   :  { %v5876_v23 = vadd.f32 %v6374_v18, %v5875_v22 }
0x11aa   :  { %7798 = vtanh.f32 %v5876_v23 }
0x11ab   :  { %7800 = vtanh.f32 %v5881_v21 }
0x11b7   :  { %v7799_v63 = vpop.eup %7798 }
0x11b8   :  { %v7801_v60 = vpop.eup %7800  ;;  %7510 = vmatprep.mubr.msk.f32.mxu0 %vm5897_vm5, %v7799_v63 }
0x11b9   :  { %7511 = vmatmul.mubr.msk.f32.gmra.mxu0 %vm5897_vm5, %v7801_v60 }
0x11ba   :  { %7521 = vmatprep.mubr.msk.f32.mxu0 %vm7875_vm2, %v7874_v11 }
0x1279   :  { %v7512_v40 = vpop.f32.mrf.mxu0 }
0x127a   :  { %v5992_v41 = vadd.f32 %v7512_v40, %v6379_v26 }
0x127b   :  { %v5986_v42 = vpop.f32.mrf.mxu0 }
0x127c   :  { %v6002_v34 = vcombine.high %v5992_v41, %v5992_v41  ;;  %v5987_v35 = vadd.f32 %v6379_v26, %v5986_v42  ;;  %v6016_v39 = vsel %vm6007_vm6, %v5992_v41, -inf }
0x127d   :  { %v6017_v16 = vmax.f32 %v6010_v50, %v6016_v39 }
0x127e   :  { %v6018_v46 = vsel %vm6007_vm6, %v6002_v34, -inf  ;;  %v6001_v47 = vcombine.high %v5987_v35, %v5987_v35  ;;  %v6012_v48 = vsel %vm6007_vm6, %v5987_v35, -inf }
0x127f   :  { %v6019_v49 = vmax.f32 %v6011_v45, %v6018_v46  ;;  %v6013_v17 = vmax.f32 %v6008_v51, %v6012_v48 }
0x1280   :  { %v6014_v15 = vsel %vm6007_vm6, %v6001_v47, -inf }
0x1281   :  { %v6015_v33 = vmax.f32 %v6009_v53, %v6014_v15  ;;  %v6021_v1 = vmax.f32 %v6017_v16, %v6019_v49 }
0x1283   :  { %v6020_v3 = vmax.f32 %v6013_v17, %v6015_v33 }
0x1285   :  { %v6022_v54 = vmax.f32 %v6020_v3, %v6021_v1 }
0x1287   :  { %v6023_v18 = vsub.f32 %v5977_v37, %v6022_v54  ;;  %v6025_v55 = vsub.f32 %v5982_v27, %v6022_v54  ;;  %v6024_v57 = vsub.f32 %v5999_v30, %v6022_v54  ;;  %v6026_v10 = vsub.f32 %v6000_v38, %v6022_v54 }
0x1288   :  { %v6027_v59 = vsub.f32 %v5987_v35, %v6022_v54  ;;  %v6028_v52 = vsub.f32 %v6001_v47, %v6022_v54  ;;  %v6029_v2 = vsub.f32 %v5992_v41, %v6022_v54  ;;  %v6030_v32 = vsub.f32 %v6002_v34, %v6022_v54 }
0x1289   :  { %v6031_v56 = vmul.f32 1.442695, %v6023_v18  ;;  %v6035_v58 = vmul.f32 1.442695, %v6025_v55  ;;  %v6033_v61 = vmul.f32 1.442695, %v6024_v57 }
0x128a   :  { %v6037_v62 = vmul.f32 1.442695, %v6026_v10  ;;  %v6039_v12 = vmul.f32 1.442695, %v6027_v59  ;;  %v6041_v13 = vmul.f32 1.442695, %v6028_v52 }
0x128b   :  { %7802 = vpow2.f32 %v6031_v56  ;;  %v6043_v43 = vmul.f32 1.442695, %v6029_v2  ;;  %v6045_v31 = vmul.f32 1.442695, %v6030_v32  ;;  %v6121_v55 = vld [vmem:[%s9413_s13 + $0x18] sm:$0xff]  ;;  %v6120_v56 = vld [vmem:[%s9413_s13 + $0x10] sm:$0xff] }
0x128c   :  { %7804 = vpow2.f32 %v6035_v58  ;;  %7514 = vmatpush3.msra.mxu0 %v6121_v55  ;;  %v6119_v57 = vld [vmem:[%s9413_s13 + $0x8] sm:$0xff]  ;;  %v6118_v10 = vld [vmem:[%s9413_s13] sm:$0xff] }
0x128d   :  { %7806 = vpow2.f32 %v6033_v61  ;;  %7515 = vmatprep.subr.mxu0 %v7874_v11 }
0x128e   :  { %7808 = vpow2.f32 %v6037_v62  ;;  %7516 = vmatpush3.msra.mxu0 %v6120_v56 }
0x128f   :  { %7810 = vpow2.f32 %v6039_v12  ;;  %7517 = vmatprep.subr.mxu0 %v7874_v11 }
0x1290   :  { %7812 = vpow2.f32 %v6041_v13  ;;  %7518 = vmatpush3.msra.mxu0 %v6119_v57 }
0x1291   :  { %7814 = vpow2.f32 %v6043_v43  ;;  %7519 = vmatprep.subr.mxu0 %v7874_v11 }
0x1292   :  { %7816 = vpow2.f32 %v6045_v31  ;;  %7520 = vmatpush3.msra.mxu0 %v6118_v10 }
0x1298   :  { %v7803_v4 = vpop.eup %7802 }
0x1299   :  { %v7805_v5 = vpop.eup %7804  ;;  %v6047_v6 = vsel %vm6007_vm6, %v7803_v4, 0.0 }
0x129a   :  { %v7807_v7 = vpop.eup %7806  ;;  %v6050_v22 = vsel %vm6007_vm6, %v7805_v5, 0.0 }
0x129b   :  { %v6048_v19 = vsel %vm6007_vm6, %v7807_v7, 0.0  ;;  %v7809_v20 = vpop.eup %7808 }
0x129c   :  { %v6049_v21 = vadd.f32 %v6048_v19, %v6047_v6  ;;  %v7811_v23 = vpop.eup %7810  ;;  %v6052_v60 = vsel %vm6007_vm6, %v7809_v20, 0.0 }
0x129d   :  { %v7813_v0 = vpop.eup %7812  ;;  %v6054_v27 = vsel %vm6007_vm6, %v7811_v23, 0.0 }
0x129e   :  { %v6051_v63 = vadd.f32 %v6050_v22, %v6049_v21  ;;  %v7815_v28 = vpop.eup %7814  ;;  %v6056_v38 = vsel %vm6007_vm6, %v7813_v0, 0.0 }
0x129f   :  { %v7817_v40 = vpop.eup %7816  ;;  %v6058_v42 = vsel %vm6007_vm6, %v7815_v28, 0.0 }
0x12a0   :  { %v6053_v26 = vadd.f32 %v6052_v60, %v6051_v63  ;;  %v6060_v34 = vsel %vm6007_vm6, %v7817_v40, 0.0 }
0x12a2   :  { %v6055_v37 = vadd.f32 %v6054_v27, %v6053_v26 }
0x12a4   :  { %v6057_v41 = vadd.f32 %v6056_v38, %v6055_v37 }
0x12a6   :  { %v6059_v30 = vadd.f32 %v6058_v42, %v6057_v41 }
0x12a8   :  { %v6061_v35 = vadd.f32 %v6060_v34, %v6059_v30 }
0x12aa   :  { %7818 = vrcp.f32 %v6061_v35 }
0x12b7   :  { %v7819_v45 = vpop.eup %7818 }
0x12b8   :  { %v6064_v39 = vmul.f32 %v7819_v45, %v7807_v7  ;;  %v6063_v46 = vmul.f32 %v7819_v45, %v7803_v4  ;;  %v6067_v47 = vmul.f32 %v7819_v45, %v7811_v23  ;;  %v6065_v48 = vmul.f32 %v7819_v45, %v7805_v5 }
0x12b9   :  { %v6069_v49 = vmul.f32 %v7819_v45, %v7815_v28  ;;  %v6066_v50 = vmul.f32 %v7819_v45, %v7809_v20  ;;  %v6068_v51 = vmul.f32 %v7819_v45, %v7813_v0  ;;  %v6070_v53 = vmul.f32 %v7819_v45, %v7817_v40 }
0x12ba   :  { %v6074_v15 = vsel %vm6007_vm6, %v6064_v39, 0.0  ;;  %6205 = vst.msk [vmem:[%s9415_s15 + $0x4] sm:$0xf] %vm6007_vm6, %v6064_v39  ;;  %v6071_v16 = vsel %vm6007_vm6, %v6063_v46, 0.0  ;;  %6204 = vst.msk [vmem:[%s9415_s15] sm:$0xf] %vm6007_vm6, %v6063_v46 }
0x12bb   :  { %6208 = vst.msk [vmem:[%s9415_s15 + $0x10] sm:$0xf] %vm6007_vm6, %v6067_v47  ;;  %6206 = vst.msk [vmem:[%s9415_s15 + $0x8] sm:$0xf] %vm6007_vm6, %v6065_v48  ;;  %6075 = vadd.xlane.f32.xlu1 %v6074_v15  ;;  %6072 = vadd.xlane.f32.xlu0 %v6071_v16  ;;  %v6083_v17 = vsel %vm6007_vm6, %v6067_v47, 0.0  ;;  %v6077_v33 = vsel %vm6007_vm6, %v6065_v48, 0.0 }
0x12bc   :  { %6210 = vst.msk [vmem:[%s9415_s15 + $0x18] sm:$0xf] %vm6007_vm6, %v6069_v49  ;;  %6207 = vst.msk [vmem:[%s9415_s15 + $0xc] sm:$0xf] %vm6007_vm6, %v6066_v50  ;;  %v6089_v1 = vsel %vm6007_vm6, %v6069_v49, 0.0  ;;  %v6080_v3 = vsel %vm6007_vm6, %v6066_v50, 0.0 }
0x12bd   :  { %6209 = vst.msk [vmem:[%s9415_s15 + $0x14] sm:$0xf] %vm6007_vm6, %v6068_v51  ;;  %6211 = vst.msk [vmem:[%s9415_s15 + $0x1c] sm:$0xf] %vm6007_vm6, %v6070_v53  ;;  %v6086_v54 = vsel %vm6007_vm6, %v6068_v51, 0.0  ;;  %v6092_v18 = vsel %vm6007_vm6, %v6070_v53, 0.0 }
0x12bf   :  { %6084 = vadd.xlane.f32.xlu1 %v6083_v17  ;;  %6078 = vadd.xlane.f32.xlu0 %v6077_v33 }
0x12c3   :  { %6090 = vadd.xlane.f32.xlu1 %v6089_v1  ;;  %6081 = vadd.xlane.f32.xlu0 %v6080_v3 }
0x12c7   :  { %6087 = vadd.xlane.f32.xlu0 %v6086_v54 }
0x12cb   :  { %6093 = vadd.xlane.f32.xlu0 %v6092_v18 }
0x1344   :  { %v6076_v58 = vpop.xlane.xlu1 %6075  ;;  %v6073_v59 = vpop.xlane.xlu0 %6072 }
0x1345   :  { %v6096_v61 = vmul.f32 %v6076_v58, %v9235_v24  ;;  %v6095_v52 = vmul.f32 %v6073_v59, %v9245_v44 }
0x1347   :  { %v6104_v12 = vsel %vm289_vm4, %v6096_v61, 0.0  ;;  %v6103_v32 = vsel %vm289_vm4, %v6095_v52, 0.0 }
0x1348   :  { %v6085_v62 = vpop.xlane.xlu1 %6084  ;;  %v6079_v2 = vpop.xlane.xlu0 %6078  ;;  %v6105_v31 = vadd.f32 %v6104_v12, %v6103_v32 }
0x1349   :  { %v6097_v13 = vmul.f32 %v6079_v2, %v9268_v25  ;;  %v6099_v11 = vmul.f32 %v6085_v62, %v9272_v36 }
0x134b   :  { %v6106_v43 = vsel %vm289_vm4, %v6097_v13, 0.0  ;;  %v6110_v20 = vsel %vm289_vm4, %v6099_v11, 0.0 }
0x134c   :  { %v6082_v4 = vpop.xlane.xlu0 %6081  ;;  %v6107_v6 = vadd.f32 %v6106_v43, %v6105_v31  ;;  %v6091_v24 = vpop.xlane.xlu1 %6090 }
0x134d   :  { %v6098_v5 = vmul.f32 %v6082_v4, %v9264_v29  ;;  %v6101_v21 = vmul.f32 %v6091_v24, %v9292_v8  ;;  %v6384_v8 = vld [vmem:[%s9414_s14] ss:$0 sm:$0xff] }
0x134f   :  { %v6108_v44 = vsel %vm289_vm4, %v6098_v5, 0.0  ;;  %v6114_v36 = vsel %vm289_vm4, %v6101_v21, 0.0 }
0x1350   :  { %v6109_v7 = vadd.f32 %v6108_v44, %v6107_v6  ;;  %v6088_v19 = vpop.xlane.xlu0 %6087 }
0x1351   :  { %v6100_v25 = vmul.f32 %v6088_v19, %v9266_v14 }
0x1352   :  { %v6111_v22 = vadd.f32 %v6110_v20, %v6109_v7 }
0x1353   :  { %v6112_v23 = vsel %vm289_vm4, %v6100_v25, 0.0 }
0x1354   :  { %v6113_v63 = vadd.f32 %v6112_v23, %v6111_v22  ;;  %v6094_v60 = vpop.xlane.xlu0 %6093 }
0x1355   :  { %v6102_v29 = vmul.f32 %v6094_v60, %v9294_v9 }
0x1356   :  { %v6115_v0 = vadd.f32 %v6114_v36, %v6113_v63 }
0x1357   :  { %v6116_v26 = vsel %vm289_vm4, %v6102_v29, 0.0 }
0x1358   :  { %v6117_v27 = vadd.f32 %v6116_v26, %v6115_v0 }
0x135a   :  { %7522 = vmatmul.mubr.msk.f32.vlgmr.msra.gmra.mxu0 %vm179_vm3, %v6117_v27 }
0x141a   :  { %v6198_v14 = vpop.f32.mrf.mxu0 }
0x141b   :  { %v6199_v28 = vadd.f32 %v6384_v8, %v6198_v14 }
0x141c   :  { %v7523_v37 = vpop.f32.mrf.mxu0 }
0x141d   :  { %6203 = vst.msk [vmem:[#allocation7] sm:$0xf] %vm6202_vm7, %v6199_v28 }
0x141e   :  { %7863 = shalt.err (!%p7860_p4)
}
0x141f   :  { %6223 = dma.vmem_to_hbm [thread:$0]  %s6221_s10, 64, %s9416_s16, [#allocation8]  }
0x1420   :  { %7872 = dma.done.wait [#allocation8], 64  }
0x1421   :  { %7873 = vsyncadd [#allocation8], 4294967232 }
0x1422   :  { %6229 = vsyncpa [#allocation8], 1 }

</bundles_post_ra>
